<compile_context>
chip_gen: v6e
topology: v6e:2x2x1
jax: 0.10.0
libtpu: 0.0.40
codegen_flags: <defaults>
</compile_context>

<pallas_src>
import jax
import jax.numpy as jnp
from jax.experimental import pallas as pl
from jax.experimental.pallas import tpu as pltpu


def _mix_ffn_kernel(x_ref, w1_ref, b1_ref, d_ref, b3_ref, w2_ref, b2_ref,
                    o_ref, y1p_ref):
    H, W, C = x_ref.shape
    CE = d_ref.shape[2]
    L = H * W

    # ---- dense1: 1x1 conv as matmul (bf16 operands, f32 accumulation) ----
    x2d = x_ref[...].reshape(L, C)
    y1 = jnp.dot(x2d.astype(jnp.bfloat16), w1_ref[...],
                 preferred_element_type=jnp.float32) + b1_ref[...]

    # ---- zero-padded halo in VMEM for the 3x3 grouped conv ----
    y1p_ref[...] = jnp.zeros((H + 2, W + 2, C), jnp.float32)
    y1p_ref[1:H + 1, 1:W + 1, :] = y1.reshape(H, W, C)

    # ---- grouped 3x3 conv (groups=C, multiplier=E) as 9 shifted lane-dense matmuls ----
    acc = jnp.zeros((L, CE), jnp.float32)
    for dy in range(3):
        for dx in range(3):
            t = dy * 3 + dx
            sl = y1p_ref[dy:dy + H, dx:dx + W, :].reshape(L, C)
            acc = acc + jnp.dot(sl.astype(jnp.bfloat16), d_ref[t],
                                preferred_element_type=jnp.float32)
    h = acc + b3_ref[...]

    # ---- GELU, f32 elementwise ----
    # TODO(synk): PyTorch nn.GELU() default is the exact erf form; the tanh
    # approximation (max abs error ~3e-4) is used since tanh is a guaranteed
    # Mosaic/EUP-supported transcendental.
    c0 = 0.7978845608028654  # sqrt(2/pi)
    h = 0.5 * h * (1.0 + jnp.tanh(c0 * (h + 0.044715 * (h * h * h))))

    # ---- dense2: 1x1 conv as matmul ----
    out = jnp.dot(h.astype(jnp.bfloat16), w2_ref[...],
                  preferred_element_type=jnp.float32) + b2_ref[...]
    o_ref[...] = out.astype(o_ref.dtype)


def mix_ffn_forward(x, params, expansion):
    B, C, H, W = x.shape
    E = expansion
    CE = C * E
    L = H * W

    # NCHW -> NHWC so channels map to the 128-lane axis inside the kernel.
    x_nhwc = jnp.transpose(x, (0, 2, 3, 1)).astype(jnp.float32)

    w1 = params['dense1_w'].reshape(C, C).T.astype(jnp.bfloat16)       # (C_in, C_out)
    b1 = params['dense1_b'].reshape(1, C).astype(jnp.float32)
    w2 = params['dense2_w'].reshape(C, CE).T.astype(jnp.bfloat16)      # (C*E, C)
    b2 = params['dense2_b'].reshape(1, C).astype(jnp.float32)
    b3 = params['conv_b'].reshape(1, CE).astype(jnp.float32)

    # Scatter-expand the grouped-conv weight into 9 (C, C*E) tap matrices:
    #   D[t, c, c*E + e] = conv_w[c*E + e, 0, dy, dx],  t = dy*3 + dx
    wt = params['conv_w'].reshape(CE, 9)                               # (C*E, 9)
    group = (jnp.arange(CE)[None, :] // E) == jnp.arange(C)[:, None]   # (C, C*E)
    D = (group.astype(jnp.float32)[None, :, :]
         * wt.T[:, None, :]).astype(jnp.bfloat16)                      # (9, C, C*E)

    out_tokens = pl.pallas_call(
        _mix_ffn_kernel,
        out_shape=jax.ShapeDtypeStruct((B, L, C), jnp.float32),
        grid=(B,),
        in_specs=[
            pl.BlockSpec((pl.Squeezed(), H, W, C), lambda b: (b, 0, 0, 0)),  # x (NHWC)
            pl.BlockSpec((C, C), lambda b: (0, 0)),                          # W1^T (bf16)
            pl.BlockSpec((1, C), lambda b: (0, 0)),                          # b1
            pl.BlockSpec((9, C, CE), lambda b: (0, 0, 0)),                   # conv tap mats
            pl.BlockSpec((1, CE), lambda b: (0, 0)),                         # conv bias
            pl.BlockSpec((CE, C), lambda b: (0, 0)),                         # W2^T (bf16)
            pl.BlockSpec((1, C), lambda b: (0, 0)),                          # b2
        ],
        out_specs=pl.BlockSpec((pl.Squeezed(), L, C), lambda b: (b, 0, 0)),
        scratch_shapes=[pltpu.VMEM((H + 2, W + 2, C), jnp.float32)],
        compiler_params=pltpu.CompilerParams(
            dimension_semantics=("parallel",),
            vmem_limit_bytes=32 * 1024 * 1024,
        ),
    )(x_nhwc, w1, b1, D, b3, w2, b2)

    # tokens-x-channels -> NCHW (matches the PyTorch module's output layout).
    return out_tokens.reshape(B, H, W, C).transpose(0, 3, 1, 2)


# -----------------------------------------------------------------------------------
# Pure-JAX reference (independent formulation: lax convolutions, exact-erf GELU).
# -----------------------------------------------------------------------------------
def reference(x, params, expansion):
    B, C, H, W = x.shape
    y = jax.lax.conv_general_dilated(
        x, params['dense1_w'], window_strides=(1, 1), padding='VALID',
        dimension_numbers=('NCHW', 'OIHW', 'NCHW'))
    y = y + params['dense1_b'][None, :, None, None]
    y = jax.lax.conv_general_dilated(
        y, params['conv_w'], window_strides=(1, 1), padding=((1, 1), (1, 1)),
        dimension_numbers=('NCHW', 'OIHW', 'NCHW'), feature_group_count=C)
    y = y + params['conv_b'][None, :, None, None]
    y = 0.5 * y * (1.0 + jax.lax.erf(y / jnp.sqrt(2.0)))   # exact GELU
    y = jax.lax.conv_general_dilated(
        y, params['dense2_w'], window_strides=(1, 1), padding='VALID',
        dimension_numbers=('NCHW', 'OIHW', 'NCHW'))
    y = y + params['dense2_b'][None, :, None, None]
    return y


if __name__ == "__main__":
    B, C, H, W = 2, 32, 16, 16
    expansion = 4  # hidden = C * expansion = 128 (lane-dense)

    ks = jax.random.split(jax.random.PRNGKey(0), 7)
    params = {
        'dense1_w': 0.1 * jax.random.normal(ks[0], (C, C, 1, 1), jnp.float32),
        'dense1_b': 0.1 * jax.random.normal(ks[1], (C,), jnp.float32),
        'conv_w':   0.1 * jax.random.normal(ks[2], (C * expansion, 1, 3, 3), jnp.float32),
        'conv_b':   0.1 * jax.random.normal(ks[3], (C * expansion,), jnp.float32),
        'dense2_w': 0.1 * jax.random.normal(ks[4], (C, C * expansion, 1, 1), jnp.float32),
        'dense2_b': 0.1 * jax.random.normal(ks[5], (C,), jnp.float32),
    }
    x = jax.random.normal(ks[6], (B, C, H, W), jnp.float32)

    out = mix_ffn_forward(x, params, expansion)
    out = jax.block_until_ready(out)
    assert out.shape == (B, C, H, W)

    ref = reference(x, params, expansion)
    rel = jnp.linalg.norm(out - ref) / (jnp.linalg.norm(ref) + 1e-12)
    if not bool(rel < 2e-2):
        raise AssertionError(f"kernel/reference mismatch, rel error = {float(rel)}")
    print("KERNEL_OK")
</pallas_src>

<mosaic_0001>
module attributes {stable_mosaic.version = 11 : i64} {
  func.func @_mix_ffn_kernel(%arg0: i32, %arg1: memref<1x16x16x32xf32, #tpu.memory_space<vmem>>, %arg2: memref<32x32xbf16, #tpu.memory_space<vmem>>, %arg3: memref<1x32xf32, #tpu.memory_space<vmem>>, %arg4: memref<9x32x128xbf16, #tpu.memory_space<vmem>>, %arg5: memref<1x128xf32, #tpu.memory_space<vmem>>, %arg6: memref<128x32xbf16, #tpu.memory_space<vmem>>, %arg7: memref<1x32xf32, #tpu.memory_space<vmem>>, %arg8: memref<1x256x32xf32, #tpu.memory_space<vmem>>, %arg9: memref<18x18x32xf32, #tpu.memory_space<vmem>>) attributes {dimension_semantics = [#tpu.dimension_semantics<parallel>], iteration_bounds = array<i64: 2>, scalar_prefetch = 0 : i64, scratch_operands = 1 : i64, tpu.core_type = #tpu.core_type<tc>, window_params = [{transform_indices = @transform_0, window_bounds = array<i64: 1, 16, 16, 32>}, {pipeline_mode = #tpu.pipeline_mode<synchronous>, transform_indices = @transform_1, window_bounds = array<i64: 32, 32>}, {pipeline_mode = #tpu.pipeline_mode<synchronous>, transform_indices = @transform_2, window_bounds = array<i64: 1, 32>}, {pipeline_mode = #tpu.pipeline_mode<synchronous>, transform_indices = @transform_3, window_bounds = array<i64: 9, 32, 128>}, {pipeline_mode = #tpu.pipeline_mode<synchronous>, transform_indices = @transform_4, window_bounds = array<i64: 1, 128>}, {pipeline_mode = #tpu.pipeline_mode<synchronous>, transform_indices = @transform_5, window_bounds = array<i64: 128, 32>}, {pipeline_mode = #tpu.pipeline_mode<synchronous>, transform_indices = @transform_6, window_bounds = array<i64: 1, 32>}, {transform_indices = @transform_7, window_bounds = array<i64: 1, 256, 32>}]} {
    %c0 = arith.constant 0 : index
    %c0_0 = arith.constant 0 : index
    %c0_1 = arith.constant 0 : index
    %c0_2 = arith.constant 0 : index
    %0 = vector.load %arg1[%c0, %c0_0, %c0_1, %c0_2] : memref<1x16x16x32xf32, #tpu.memory_space<vmem>>, vector<1x16x16x32xf32>
    %1 = vector.shape_cast %0 : vector<1x16x16x32xf32> to vector<16x16x32xf32>
    %2 = vector.shape_cast %1 : vector<16x16x32xf32> to vector<256x32xf32>
    %3 = arith.truncf %2 : vector<256x32xf32> to vector<256x32xbf16>
    %c0_3 = arith.constant 0 : index
    %c0_4 = arith.constant 0 : index
    %4 = vector.load %arg2[%c0_3, %c0_4] : memref<32x32xbf16, #tpu.memory_space<vmem>>, vector<32x32xbf16>
    %cst = arith.constant dense<0.000000e+00> : vector<256x32xf32>
    %5 = tpu.matmul %3, %4, %cst {dimension_numbers = #tpu.dot_dimension_numbers<[1], [0], [0], [1], [0, 0, 1, 1], [], []>} : vector<256x32xbf16>, vector<32x32xbf16>, vector<256x32xf32> -> vector<256x32xf32>
    %c0_5 = arith.constant 0 : index
    %c0_6 = arith.constant 0 : index
    %6 = vector.load %arg3[%c0_5, %c0_6] : memref<1x32xf32, #tpu.memory_space<vmem>>, vector<1x32xf32>
    %7 = vector.broadcast %6 : vector<1x32xf32> to vector<256x32xf32>
    %8 = arith.addf %5, %7 : vector<256x32xf32>
    %cst_7 = arith.constant 0.000000e+00 : f32
    %9 = vector.broadcast %cst_7 : f32 to vector<18x18x32xf32>
    %c0_8 = arith.constant 0 : index
    %c0_9 = arith.constant 0 : index
    %c0_10 = arith.constant 0 : index
    %10 = vector.load %arg9[%c0_8, %c0_9, %c0_10] : memref<18x18x32xf32, #tpu.memory_space<vmem>>, vector<18x18x32xf32>
    tpu.vector_store %arg9[%c0_8, %c0_9, %c0_10], %9 {strides = array<i32>} : memref<18x18x32xf32, #tpu.memory_space<vmem>>, vector<18x18x32xf32>,
    %11 = vector.shape_cast %8 : vector<256x32xf32> to vector<16x16x32xf32>
    %c1 = arith.constant 1 : index
    %c1_11 = arith.constant 1 : index
    %c0_12 = arith.constant 0 : index
    %12 = vector.load %arg9[%c1, %c1_11, %c0_12] : memref<18x18x32xf32, #tpu.memory_space<vmem>>, vector<16x16x32xf32>
    tpu.vector_store %arg9[%c1, %c1_11, %c0_12], %11 {strides = array<i32>} : memref<18x18x32xf32, #tpu.memory_space<vmem>>, vector<16x16x32xf32>,
    %cst_13 = arith.constant 0.000000e+00 : f32
    %13 = vector.broadcast %cst_13 : f32 to vector<256x128xf32>
    %c0_14 = arith.constant 0 : index
    %c0_15 = arith.constant 0 : index
    %c0_16 = arith.constant 0 : index
    %14 = vector.load %arg9[%c0_14, %c0_15, %c0_16] : memref<18x18x32xf32, #tpu.memory_space<vmem>>, vector<16x16x32xf32>
    %15 = vector.shape_cast %14 : vector<16x16x32xf32> to vector<256x32xf32>
    %16 = arith.truncf %15 : vector<256x32xf32> to vector<256x32xbf16>
    %c0_17 = arith.constant 0 : index
    %c0_18 = arith.constant 0 : index
    %c0_19 = arith.constant 0 : index
    %17 = vector.load %arg4[%c0_17, %c0_18, %c0_19] : memref<9x32x128xbf16, #tpu.memory_space<vmem>>, vector<1x32x128xbf16>
    %18 = vector.shape_cast %17 : vector<1x32x128xbf16> to vector<32x128xbf16>
    %cst_20 = arith.constant dense<0.000000e+00> : vector<256x128xf32>
    %19 = tpu.matmul %16, %18, %cst_20 {dimension_numbers = #tpu.dot_dimension_numbers<[1], [0], [0], [1], [0, 0, 1, 1], [], []>} : vector<256x32xbf16>, vector<32x128xbf16>, vector<256x128xf32> -> vector<256x128xf32>
    %20 = arith.addf %13, %19 : vector<256x128xf32>
    %c0_21 = arith.constant 0 : index
    %c1_22 = arith.constant 1 : index
    %c0_23 = arith.constant 0 : index
    %21 = vector.load %arg9[%c0_21, %c1_22, %c0_23] : memref<18x18x32xf32, #tpu.memory_space<vmem>>, vector<16x16x32xf32>
    %22 = vector.shape_cast %21 : vector<16x16x32xf32> to vector<256x32xf32>
    %23 = arith.truncf %22 : vector<256x32xf32> to vector<256x32xbf16>
    %c1_24 = arith.constant 1 : index
    %c0_25 = arith.constant 0 : index
    %c0_26 = arith.constant 0 : index
    %24 = vector.load %arg4[%c1_24, %c0_25, %c0_26] : memref<9x32x128xbf16, #tpu.memory_space<vmem>>, vector<1x32x128xbf16>
    %25 = vector.shape_cast %24 : vector<1x32x128xbf16> to vector<32x128xbf16>
    %cst_27 = arith.constant dense<0.000000e+00> : vector<256x128xf32>
    %26 = tpu.matmul %23, %25, %cst_27 {dimension_numbers = #tpu.dot_dimension_numbers<[1], [0], [0], [1], [0, 0, 1, 1], [], []>} : vector<256x32xbf16>, vector<32x128xbf16>, vector<256x128xf32> -> vector<256x128xf32>
    %27 = arith.addf %20, %26 : vector<256x128xf32>
    %c0_28 = arith.constant 0 : index
    %c2 = arith.constant 2 : index
    %c0_29 = arith.constant 0 : index
    %28 = vector.load %arg9[%c0_28, %c2, %c0_29] : memref<18x18x32xf32, #tpu.memory_space<vmem>>, vector<16x16x32xf32>
    %29 = vector.shape_cast %28 : vector<16x16x32xf32> to vector<256x32xf32>
    %30 = arith.truncf %29 : vector<256x32xf32> to vector<256x32xbf16>
    %c2_30 = arith.constant 2 : index
    %c0_31 = arith.constant 0 : index
    %c0_32 = arith.constant 0 : index
    %31 = vector.load %arg4[%c2_30, %c0_31, %c0_32] : memref<9x32x128xbf16, #tpu.memory_space<vmem>>, vector<1x32x128xbf16>
    %32 = vector.shape_cast %31 : vector<1x32x128xbf16> to vector<32x128xbf16>
    %cst_33 = arith.constant dense<0.000000e+00> : vector<256x128xf32>
    %33 = tpu.matmul %30, %32, %cst_33 {dimension_numbers = #tpu.dot_dimension_numbers<[1], [0], [0], [1], [0, 0, 1, 1], [], []>} : vector<256x32xbf16>, vector<32x128xbf16>, vector<256x128xf32> -> vector<256x128xf32>
    %34 = arith.addf %27, %33 : vector<256x128xf32>
    %c1_34 = arith.constant 1 : index
    %c0_35 = arith.constant 0 : index
    %c0_36 = arith.constant 0 : index
    %35 = vector.load %arg9[%c1_34, %c0_35, %c0_36] : memref<18x18x32xf32, #tpu.memory_space<vmem>>, vector<16x16x32xf32>
    %36 = vector.shape_cast %35 : vector<16x16x32xf32> to vector<256x32xf32>
    %37 = arith.truncf %36 : vector<256x32xf32> to vector<256x32xbf16>
    %c3 = arith.constant 3 : index
    %c0_37 = arith.constant 0 : index
    %c0_38 = arith.constant 0 : index
    %38 = vector.load %arg4[%c3, %c0_37, %c0_38] : memref<9x32x128xbf16, #tpu.memory_space<vmem>>, vector<1x32x128xbf16>
    %39 = vector.shape_cast %38 : vector<1x32x128xbf16> to vector<32x128xbf16>
    %cst_39 = arith.constant dense<0.000000e+00> : vector<256x128xf32>
    %40 = tpu.matmul %37, %39, %cst_39 {dimension_numbers = #tpu.dot_dimension_numbers<[1], [0], [0], [1], [0, 0, 1, 1], [], []>} : vector<256x32xbf16>, vector<32x128xbf16>, vector<256x128xf32> -> vector<256x128xf32>
    %41 = arith.addf %34, %40 : vector<256x128xf32>
    %c1_40 = arith.constant 1 : index
    %c1_41 = arith.constant 1 : index
    %c0_42 = arith.constant 0 : index
    %42 = vector.load %arg9[%c1_40, %c1_41, %c0_42] : memref<18x18x32xf32, #tpu.memory_space<vmem>>, vector<16x16x32xf32>
    %43 = vector.shape_cast %42 : vector<16x16x32xf32> to vector<256x32xf32>
    %44 = arith.truncf %43 : vector<256x32xf32> to vector<256x32xbf16>
    %c4 = arith.constant 4 : index
    %c0_43 = arith.constant 0 : index
    %c0_44 = arith.constant 0 : index
    %45 = vector.load %arg4[%c4, %c0_43, %c0_44] : memref<9x32x128xbf16, #tpu.memory_space<vmem>>, vector<1x32x128xbf16>
    %46 = vector.shape_cast %45 : vector<1x32x128xbf16> to vector<32x128xbf16>
    %cst_45 = arith.constant dense<0.000000e+00> : vector<256x128xf32>
    %47 = tpu.matmul %44, %46, %cst_45 {dimension_numbers = #tpu.dot_dimension_numbers<[1], [0], [0], [1], [0, 0, 1, 1], [], []>} : vector<256x32xbf16>, vector<32x128xbf16>, vector<256x128xf32> -> vector<256x128xf32>
    %48 = arith.addf %41, %47 : vector<256x128xf32>
    %c1_46 = arith.constant 1 : index
    %c2_47 = arith.constant 2 : index
    %c0_48 = arith.constant 0 : index
    %49 = vector.load %arg9[%c1_46, %c2_47, %c0_48] : memref<18x18x32xf32, #tpu.memory_space<vmem>>, vector<16x16x32xf32>
    %50 = vector.shape_cast %49 : vector<16x16x32xf32> to vector<256x32xf32>
    %51 = arith.truncf %50 : vector<256x32xf32> to vector<256x32xbf16>
    %c5 = arith.constant 5 : index
    %c0_49 = arith.constant 0 : index
    %c0_50 = arith.constant 0 : index
    %52 = vector.load %arg4[%c5, %c0_49, %c0_50] : memref<9x32x128xbf16, #tpu.memory_space<vmem>>, vector<1x32x128xbf16>
    %53 = vector.shape_cast %52 : vector<1x32x128xbf16> to vector<32x128xbf16>
    %cst_51 = arith.constant dense<0.000000e+00> : vector<256x128xf32>
    %54 = tpu.matmul %51, %53, %cst_51 {dimension_numbers = #tpu.dot_dimension_numbers<[1], [0], [0], [1], [0, 0, 1, 1], [], []>} : vector<256x32xbf16>, vector<32x128xbf16>, vector<256x128xf32> -> vector<256x128xf32>
    %55 = arith.addf %48, %54 : vector<256x128xf32>
    %c2_52 = arith.constant 2 : index
    %c0_53 = arith.constant 0 : index
    %c0_54 = arith.constant 0 : index
    %56 = vector.load %arg9[%c2_52, %c0_53, %c0_54] : memref<18x18x32xf32, #tpu.memory_space<vmem>>, vector<16x16x32xf32>
    %57 = vector.shape_cast %56 : vector<16x16x32xf32> to vector<256x32xf32>
    %58 = arith.truncf %57 : vector<256x32xf32> to vector<256x32xbf16>
    %c6 = arith.constant 6 : index
    %c0_55 = arith.constant 0 : index
    %c0_56 = arith.constant 0 : index
    %59 = vector.load %arg4[%c6, %c0_55, %c0_56] : memref<9x32x128xbf16, #tpu.memory_space<vmem>>, vector<1x32x128xbf16>
    %60 = vector.shape_cast %59 : vector<1x32x128xbf16> to vector<32x128xbf16>
    %cst_57 = arith.constant dense<0.000000e+00> : vector<256x128xf32>
    %61 = tpu.matmul %58, %60, %cst_57 {dimension_numbers = #tpu.dot_dimension_numbers<[1], [0], [0], [1], [0, 0, 1, 1], [], []>} : vector<256x32xbf16>, vector<32x128xbf16>, vector<256x128xf32> -> vector<256x128xf32>
    %62 = arith.addf %55, %61 : vector<256x128xf32>
    %c2_58 = arith.constant 2 : index
    %c1_59 = arith.constant 1 : index
    %c0_60 = arith.constant 0 : index
    %63 = vector.load %arg9[%c2_58, %c1_59, %c0_60] : memref<18x18x32xf32, #tpu.memory_space<vmem>>, vector<16x16x32xf32>
    %64 = vector.shape_cast %63 : vector<16x16x32xf32> to vector<256x32xf32>
    %65 = arith.truncf %64 : vector<256x32xf32> to vector<256x32xbf16>
    %c7 = arith.constant 7 : index
    %c0_61 = arith.constant 0 : index
    %c0_62 = arith.constant 0 : index
    %66 = vector.load %arg4[%c7, %c0_61, %c0_62] : memref<9x32x128xbf16, #tpu.memory_space<vmem>>, vector<1x32x128xbf16>
    %67 = vector.shape_cast %66 : vector<1x32x128xbf16> to vector<32x128xbf16>
    %cst_63 = arith.constant dense<0.000000e+00> : vector<256x128xf32>
    %68 = tpu.matmul %65, %67, %cst_63 {dimension_numbers = #tpu.dot_dimension_numbers<[1], [0], [0], [1], [0, 0, 1, 1], [], []>} : vector<256x32xbf16>, vector<32x128xbf16>, vector<256x128xf32> -> vector<256x128xf32>
    %69 = arith.addf %62, %68 : vector<256x128xf32>
    %c2_64 = arith.constant 2 : index
    %c2_65 = arith.constant 2 : index
    %c0_66 = arith.constant 0 : index
    %70 = vector.load %arg9[%c2_64, %c2_65, %c0_66] : memref<18x18x32xf32, #tpu.memory_space<vmem>>, vector<16x16x32xf32>
    %71 = vector.shape_cast %70 : vector<16x16x32xf32> to vector<256x32xf32>
    %72 = arith.truncf %71 : vector<256x32xf32> to vector<256x32xbf16>
    %c8 = arith.constant 8 : index
    %c0_67 = arith.constant 0 : index
    %c0_68 = arith.constant 0 : index
    %73 = vector.load %arg4[%c8, %c0_67, %c0_68] : memref<9x32x128xbf16, #tpu.memory_space<vmem>>, vector<1x32x128xbf16>
    %74 = vector.shape_cast %73 : vector<1x32x128xbf16> to vector<32x128xbf16>
    %cst_69 = arith.constant dense<0.000000e+00> : vector<256x128xf32>
    %75 = tpu.matmul %72, %74, %cst_69 {dimension_numbers = #tpu.dot_dimension_numbers<[1], [0], [0], [1], [0, 0, 1, 1], [], []>} : vector<256x32xbf16>, vector<32x128xbf16>, vector<256x128xf32> -> vector<256x128xf32>
    %76 = arith.addf %69, %75 : vector<256x128xf32>
    %c0_70 = arith.constant 0 : index
    %c0_71 = arith.constant 0 : index
    %77 = vector.load %arg5[%c0_70, %c0_71] : memref<1x128xf32, #tpu.memory_space<vmem>>, vector<1x128xf32>
    %78 = vector.broadcast %77 : vector<1x128xf32> to vector<256x128xf32>
    %79 = arith.addf %76, %78 : vector<256x128xf32>
    %cst_72 = arith.constant 5.000000e-01 : f32
    %80 = vector.broadcast %cst_72 : f32 to vector<256x128xf32>
    %81 = arith.mulf %80, %79 : vector<256x128xf32>
    %82 = arith.mulf %79, %79 : vector<256x128xf32>
    %83 = arith.mulf %82, %79 : vector<256x128xf32>
    %cst_73 = arith.constant 4.471500e-02 : f32
    %84 = vector.broadcast %cst_73 : f32 to vector<256x128xf32>
    %85 = arith.mulf %84, %83 : vector<256x128xf32>
    %86 = arith.addf %79, %85 : vector<256x128xf32>
    %cst_74 = arith.constant 0.797884583 : f32
    %87 = vector.broadcast %cst_74 : f32 to vector<256x128xf32>
    %88 = arith.mulf %87, %86 : vector<256x128xf32>
    %89 = math.tanh %88 : vector<256x128xf32>
    %cst_75 = arith.constant 1.000000e+00 : f32
    %90 = vector.broadcast %cst_75 : f32 to vector<256x128xf32>
    %91 = arith.addf %90, %89 : vector<256x128xf32>
    %92 = arith.mulf %81, %91 : vector<256x128xf32>
    %93 = arith.truncf %92 : vector<256x128xf32> to vector<256x128xbf16>
    %c0_76 = arith.constant 0 : index
    %c0_77 = arith.constant 0 : index
    %94 = vector.load %arg6[%c0_76, %c0_77] : memref<128x32xbf16, #tpu.memory_space<vmem>>, vector<128x32xbf16>
    %cst_78 = arith.constant dense<0.000000e+00> : vector<256x32xf32>
    %95 = tpu.matmul %93, %94, %cst_78 {dimension_numbers = #tpu.dot_dimension_numbers<[1], [0], [0], [1], [0, 0, 1, 1], [], []>} : vector<256x128xbf16>, vector<128x32xbf16>, vector<256x32xf32> -> vector<256x32xf32>
    %c0_79 = arith.constant 0 : index
    %c0_80 = arith.constant 0 : index
    %96 = vector.load %arg7[%c0_79, %c0_80] : memref<1x32xf32, #tpu.memory_space<vmem>>, vector<1x32xf32>
    %97 = vector.broadcast %96 : vector<1x32xf32> to vector<256x32xf32>
    %98 = arith.addf %95, %97 : vector<256x32xf32>
    %c0_81 = arith.constant 0 : index
    %c0_82 = arith.constant 0 : index
    %c0_83 = arith.constant 0 : index
    %99 = vector.load %arg8[%c0_81, %c0_82, %c0_83] : memref<1x256x32xf32, #tpu.memory_space<vmem>>, vector<1x256x32xf32>
    %100 = vector.shape_cast %99 : vector<1x256x32xf32> to vector<256x32xf32>
    %101 = vector.shape_cast %98 : vector<256x32xf32> to vector<1x256x32xf32>
    tpu.vector_store %arg8[%c0_81, %c0_82, %c0_83], %101 {strides = array<i32>} : memref<1x256x32xf32, #tpu.memory_space<vmem>>, vector<1x256x32xf32>,
    return
  }
  func.func @transform_0(%arg0: i32) -> (i32, i32, i32, i32) {
    %c0_i32 = arith.constant 0 : i32
    %c0_i32_0 = arith.constant 0 : i32
    %c0_i32_1 = arith.constant 0 : i32
    %c0_i32_2 = arith.constant 0 : i32
    return %arg0, %c0_i32, %c0_i32_0, %c0_i32_1 : i32, i32, i32, i32
  }
  func.func @transform_1(%arg0: i32) -> (i32, i32) {
    %c0_i32 = arith.constant 0 : i32
    %c0_i32_0 = arith.constant 0 : i32
    %c0_i32_1 = arith.constant 0 : i32
    return %c0_i32, %c0_i32_0 : i32, i32
  }
  func.func @transform_2(%arg0: i32) -> (i32, i32) {
    %c0_i32 = arith.constant 0 : i32
    %c0_i32_0 = arith.constant 0 : i32
    %c0_i32_1 = arith.constant 0 : i32
    return %c0_i32, %c0_i32_0 : i32, i32
  }
  func.func @transform_3(%arg0: i32) -> (i32, i32, i32) {
    %c0_i32 = arith.constant 0 : i32
    %c0_i32_0 = arith.constant 0 : i32
    %c0_i32_1 = arith.constant 0 : i32
    %c0_i32_2 = arith.constant 0 : i32
    return %c0_i32, %c0_i32_0, %c0_i32_1 : i32, i32, i32
  }
  func.func @transform_4(%arg0: i32) -> (i32, i32) {
    %c0_i32 = arith.constant 0 : i32
    %c0_i32_0 = arith.constant 0 : i32
    %c0_i32_1 = arith.constant 0 : i32
    return %c0_i32, %c0_i32_0 : i32, i32
  }
  func.func @transform_5(%arg0: i32) -> (i32, i32) {
    %c0_i32 = arith.constant 0 : i32
    %c0_i32_0 = arith.constant 0 : i32
    %c0_i32_1 = arith.constant 0 : i32
    return %c0_i32, %c0_i32_0 : i32, i32
  }
  func.func @transform_6(%arg0: i32) -> (i32, i32) {
    %c0_i32 = arith.constant 0 : i32
    %c0_i32_0 = arith.constant 0 : i32
    %c0_i32_1 = arith.constant 0 : i32
    return %c0_i32, %c0_i32_0 : i32, i32
  }
  func.func @transform_7(%arg0: i32) -> (i32, i32, i32) {
    %c0_i32 = arith.constant 0 : i32
    %c0_i32_0 = arith.constant 0 : i32
    %c0_i32_1 = arith.constant 0 : i32
    return %arg0, %c0_i32, %c0_i32_0 : i32, i32, i32
  }
}

</mosaic_0001>

<bundles_post_ra>
// kernel: tpu_custom_call.1
= control target key start
LH: loop header
LB: loop body
LE: loop exit
PB: predicated region body
PF: predicated region fallthrough
CT: control target
= control target key end

     0   :  { %12 = vsyncpa [#allocation4], 0  ;;  %s6859_s0 = inlined_call_operand.hbm [shape: f32[2,16,16,32], index: 0, kind: input, shape index: {}]   ;;  %s6860_s1 = inlined_call_operand.vmem [shape: bf16[32,32], index: 1, kind: input, shape index: {}]   ;;  %s6861_s2 = inlined_call_operand.vmem [shape: f32[1,32], index: 2, kind: input, shape index: {}]   ;;  %s6862_s3 = inlined_call_operand.hbm [shape: bf16[9,32,128], index: 3, kind: input, shape index: {}]   ;;  %s6863_s4 = inlined_call_operand.vmem [shape: f32[1,128], index: 4, kind: input, shape index: {}]   ;;  %s6864_s5 = inlined_call_operand.vmem [shape: bf16[128,32], index: 5, kind: input, shape index: {}]   ;;  %s6865_s6 = inlined_call_operand.vmem [shape: f32[1,32], index: 6, kind: input, shape index: {}]   ;;  %s6866_s7 = inlined_call_operand.vmem [shape: f32[2,256,32], index: 7, kind: output, shape index: {}]  }
   0x1   :  { %14 = vsyncpa [#allocation4 + $0x1], 0 }
   0x2   :  { %15 = vsyncpa [#allocation6], 0  ;;  %s5169_s24 = smov 0   ;;  %s5171_s25 = smov 0  }
   0x3   :  { %s5173_s26 = smov 0   ;;  %s5175_s27 = smov 0  }
   0x4 LB: > { %s5188_s28 = sadd.s32 4294967295, %s5120_s27   ;;  %p41_p0 = scmp.ne.s32.totalorder %s5112_s25, %s5108_s24  ;;  %s5120_s27 = sphi %s5175_s27, %s6901_s27   ;;  %s5116_s26 = sphi %s5173_s26, %s6900_s26   ;;  %s5112_s25 = sphi %s5171_s25, %s6899_s25   ;;  %s5108_s24 = sphi %s5169_s24, %s6898_s24  }
   0x5   : > { %p6867_p1 = scmp.eq.s32.totalorder %s5188_s28, 0  ;;  %p4059_p2 = scmp.ge.s32.totalorder %s5120_s27, 1 }
   0x6   : > { %p204_p3 = scmp.lt.s32.totalorder %s5120_s27, 3  ;;  %s5122_s8 = smov [#allocation5]  }
   0x7   : > { %p5196_p4 = por %p6867_p1, %p41_p0  ;;  %s222_s9 = sshll.u32 %s5122_s8, 4  ;;  %s223_s9 = int_to_ptr.vmem [resolvable:$true] %s222_s9 }
   0x8   : > { %p5200_p5 = pnand %p4059_p2, %p204_p3  ;;  %s5213_s11 = sadd.s32 1, %s5120_s27  }
   0x9   : > { %s6871_s29 = scalar_select %p5196_p4, 1, 0 }
   0xa   : > { %s6872_s30 = scalar_select %p5200_p5, 1, 0 }
   0xb   : > { %p4887_p6 = pneg %p5200_p5  ;;  %s28_s12 = sadd.s32 1, %s5116_s26 }
   0xc   : > { %s25_s13 = ssub.s32 %s5120_s27, %s5213_s11  ;;  %s5039_s14 = scalar_lea.vmem %s223_s9, 2304 }
   0xd   : > { %p5208_p7 = pnand %p4887_p6, %p6867_p1  ;;  %p5040_p9 = scmp.ne.s32.totalorder %s223_s9, %s5039_s14 }
   0xe   : > { %p5047_p12 = scmp.lt.s32.totalorder %s223_s9, %s223_s9  ;;  %p5048_p13 = scmp.lt.s32.totalorder %s5039_s14, %s5039_s14 }
   0xf   : > { %p5030_p8 = pneg %p5208_p7 }
  0x10   : > { %p5049_p0 = por %p5048_p13, %p5047_p12 }
  0x11   : > { %p5042_p10 = pnand %p5040_p9, %p5030_p8 }
  0x13   : > { %p5043_p11 = pneg %p5042_p10 }
  0x15   : > { %p5050_p2 = pnand %p5049_p0, %p5043_p11 }
  0x17   : > { %5053 = shalt.err (!%p5050_p2)
}
  0x18   : > { %s5123_s15 = smov 64   ;;  %s5124_s16 = smov 4  }
  0x19   : > { %4890 = dma.hbm_to_vmem [thread:$0]  (!%p5208_p7), %s6862_s3, 2304, %s223_s9, [#allocation6], %s5123_s15, %s5123_s15, %s5124_s16  }
  0x1a   : > { %p26_p3 = scmp.eq.s32.totalorder %s25_s13, 0  ;;  %p35_p6 = scmp.ne.s32.totalorder %s5116_s26, %s5112_s25 }
  0x1b   : > { %p36_p8 = scmp.eq.s32.totalorder %s5120_s27, 0  ;;  %p4896_p9 = scmp.lt.s32.totalorder %s5120_s27, 2 }
  0x1c   : > { %s5230_s19 = scalar_select %p26_p3, %s5116_s26, %s28_s12  }
  0x1d   : > { %p37_p10 = por %p36_p8, %p35_p6  ;;  %s245_s20 = sand.u32 1, %s5116_s26  }
  0x1e   : > { %s4062_s21 = sshll.u32 %s245_s20, 8  ;;  %s4263_s22 = sshll.u32 %s5120_s27, 12 }
  0x1f   : > { %s5237_s8 = scalar_lea.hbm %s6859_s0, %s4263_s22  ;;  %s249_s10 = scalar_lea.vmem [#allocation3], %s4062_s21 }
  0x20   : > { %s256_s9 = sshll.u32 %s249_s10, 4  ;;  %p5241_p7 = pnand %p4896_p9, %p37_p10  ;;  %s5239_s9 = int_to_ptr.vmem [resolvable:$true] %s256_s9 }
  0x21   : > { %s5245_s12 = scalar_lea.sflag [#allocation4], %s245_s20  ;;  %s5054_s27 = scalar_lea.hbm %s5237_s8, 4096 }
  0x22   : > { %p5055_p11 = scmp.ne.s32.totalorder %s5237_s8, %s5054_s27  ;;  %p5056_p12 = pneg %p5241_p7 }
  0x23   : > { %s5059_s16 = scalar_lea.hbm %s6859_s0, 8192  ;;  %p5060_p2 = scmp.lt.s32.totalorder %s5237_s8, %s6859_s0 }
  0x24   : > { %p5057_p13 = pnand %p5056_p12, %p5055_p11  ;;  %p5061_p3 = scmp.lt.s32.totalorder %s5059_s16, %s5054_s27 }
  0x26   : > { %p5058_p0 = pneg %p5057_p13  ;;  %p5062_p6 = por %p5061_p3, %p5060_p2 }
  0x28   : > { %p5063_p8 = pnand %p5062_p6, %p5058_p0 }
  0x2a   : > { %5066 = shalt.err (!%p5063_p8)
}
  0x2b   : > { %s5067_s20 = scalar_lea.vmem %s5239_s9, 4096  ;;  %s5125_s21 = smov [#allocation3]  }
  0x2c   : > { %p5068_p9 = scmp.ne.s32.totalorder %s5239_s9, %s5067_s20  ;;  %s5072_s22 = sshll.u32 %s5125_s21, 4  ;;  %s5073_s22 = int_to_ptr.vmem [resolvable:$false] %s5072_s22 }
  0x2d   : > { %s5074_s23 = scalar_lea.vmem %s5073_s22, 8192  ;;  %p5075_p13 = scmp.lt.s32.totalorder %s5239_s9, %s5073_s22 }
  0x2e   : > { %p5070_p10 = pnand %p5068_p9, %p5056_p12  ;;  %p5076_p1 = scmp.lt.s32.totalorder %s5074_s23, %s5067_s20 }
  0x30   : > { %p5071_p11 = pneg %p5070_p10  ;;  %p5077_p4 = por %p5076_p1, %p5075_p13 }
  0x32   : > { %p5078_p5 = pnand %p5077_p4, %p5071_p11 }
  0x34   : > { %5081 = shalt.err (!%p5078_p5)
}
  0x35   : > { %s5126_s24 = smov 128   ;;  %s5127_s10 = smov 8  }
  0x36   : > { %4894 = dma.hbm_to_vmem [thread:$0]  (!%p5241_p7), %s5237_s8, 4096, %s5239_s9, %s5245_s12, %s5126_s24, %s5126_s24, %s5127_s10  }
  0x37   : > { %p6875_p12 = scmp.ne.s32.totalorder %s6872_s30, 0 }
  0x39   : > { %268 = sbr.rel (%p6875_p12) target bundleno = 1070 (0x42e), region = 48 }
  0x3e   : > { %s270_s27 = sand.u32 1, %s5112_s25   ;;  %p6876_p1 = scmp.ne.s32.totalorder %s6871_s29, 0 }
  0x3f   : > { %s4066_s14 = sshll.u32 %s270_s27, 8  ;;  %s271_s15 = scalar_lea.sflag [#allocation4], %s270_s27 }
  0x40   : > { %s5269_s16 = scalar_lea.vmem [#allocation3], %s4066_s14 }
  0x41   : > { %5099 = dma.done.wait (%p6876_p1), %s271_s15, 4096  }
  0x42   : > { %5101 = vsyncadd (%p6876_p1), %s271_s15, 4294963200  ;;  %p6877_p4 = scmp.eq.s32.totalorder %s5188_s28, 0 }
  0x44   : > { %5103 = dma.done.wait (%p6877_p4), [#allocation6], 2304   ;;  %p6878_p5 = pmov %p6877_p4 }
  0x45   : > { %v4936_v0 = vld [vmem:[%s6860_s1 + $0x8] sm:$0xff]   ;;  %v4937_v1 = vld [vmem:[%s6860_s1] sm:$0xff]   ;;  %v315_v2 = vld [vmem:[%s5269_s16] sm:$0xff]  ;;  %vm386_vm0 = vcmask 261120   ;;  %v5128_v51 = vmov 0.0   ;;  %vm598_vm1 = vcmask 254976  }
  0x46   : > { %5105 = vsyncadd (%p6878_p5), [#allocation6], 4294964992  ;;  %4469 = vmatprep.subr.bf16.mxu0 %v4936_v0  ;;  %v316_v3 = vld [vmem:[%s5269_s16 + $0x8] sm:$0xff]  ;;  %4877 = vmatprep.subr.bf16.mxu1 %v4936_v0  ;;  %v317_v5 = vld [vmem:[%s5269_s16 + $0x10] sm:$0xff]  ;;  %603 = vst.msk [vmem:[#allocation2 + $0x30] sm:$0xff] %vm386_vm0, %v5128_v51  ;;  %p309_p7 = scmp.lt.s32.totalorder %s5188_s28, 1 }
  0x47   : > { %4470 = vmatpush3.bf16.msra.mxu0 %v4936_v0  ;;  %v347_v4 = vpack.c.bf16 %v316_v3, %v315_v2  ;;  %v318_v6 = vld [vmem:[%s5269_s16 + $0x18] sm:$0xff]  ;;  %4879 = vmatpush3.bf16.msra.mxu1 %v4936_v0  ;;  %v319_v7 = vld [vmem:[%s5269_s16 + $0x20] sm:$0xff]  ;;  %v320_v8 = vld [vmem:[%s5269_s16 + $0x28] sm:$0xff]  ;;  %604 = vst.msk [vmem:[#allocation2 + $0x38] sm:$0xff] %vm386_vm0, %v5128_v51 }
  0x48   : > { %4471 = vmatprep.subr.bf16.mxu0 %v4937_v1  ;;  %4878 = vmatprep.subr.bf16.mxu1 %v4937_v1  ;;  %v348_v9 = vpack.c.bf16 %v318_v6, %v317_v5  ;;  %v349_v10 = vpack.c.bf16 %v320_v8, %v319_v7  ;;  %v331_v11 = vld [vmem:[%s5269_s16 + $0x80] sm:$0xff]  ;;  %v332_v12 = vld [vmem:[%s5269_s16 + $0x88] sm:$0xff]  ;;  %v333_v14 = vld [vmem:[%s5269_s16 + $0x90] sm:$0xff]  ;;  %596 = vst.msk [vmem:[#allocation2] sm:$0xff] %vm386_vm0, %v5128_v51  ;;  %s6903_s28 = smov (!%p309_p7, %s5188_s28), 1 }
  0x49   : > { %4473 = vmatprep.mubr.msk.bf16.mxu0 %vm386_vm0, %v347_v4  ;;  %v355_v13 = vpack.c.bf16 %v332_v12, %v331_v11  ;;  %v334_v15 = vld [vmem:[%s5269_s16 + $0x98] sm:$0xff]  ;;  %v335_v16 = vld [vmem:[%s5269_s16 + $0xa0] sm:$0xff]  ;;  %v336_v18 = vld [vmem:[%s5269_s16 + $0xa8] sm:$0xff]  ;;  %597 = vst.msk [vmem:[#allocation2 + $0x8] sm:$0xff] %vm386_vm0, %v5128_v51  ;;  %s4264_s17 = sshll.u32 %s6903_s28, 8 }
  0x4a   : > { %v356_v17 = vpack.c.bf16 %v334_v15, %v333_v14  ;;  %v321_v19 = vld [vmem:[%s5269_s16 + $0x30] sm:$0xff]  ;;  %v322_v20 = vld [vmem:[%s5269_s16 + $0x38] sm:$0xff]  ;;  %v323_v21 = vld [vmem:[%s5269_s16 + $0x40] sm:$0xff]  ;;  %v357_v22 = vpack.c.bf16 %v336_v18, %v335_v16  ;;  %600 = vst.msk [vmem:[#allocation2 + $0x18] sm:$0xff] %vm386_vm0, %v5128_v51  ;;  %s6748_s23 = scalar_lea.vmem %s6866_s7, %s4264_s17 }
  0x4b   : > { %4472 = vmatpush3.bf16.msra.mxu0 %v4937_v1  ;;  %4880 = vmatpush3.bf16.msra.mxu1 %v4937_v1  ;;  %v324_v23 = vld [vmem:[%s5269_s16 + $0x48] sm:$0xff]  ;;  %v337_v24 = vld [vmem:[%s5269_s16 + $0xb0] sm:$0xff]  ;;  %v338_v25 = vld [vmem:[%s5269_s16 + $0xb8] sm:$0xff]  ;;  %v350_v29 = vpack.c.bf16 %v322_v20, %v321_v19  ;;  %601 = vst.msk [vmem:[#allocation2 + $0x20] sm:$0xff] %vm386_vm0, %v5128_v51 }
  0x4c   : > { %4489 = vmatprep.mubr.msk.bf16.mxu1 %vm386_vm0, %v355_v13  ;;  %v339_v26 = vld [vmem:[%s5269_s16 + $0xc0] sm:$0xff]  ;;  %v340_v27 = vld [vmem:[%s5269_s16 + $0xc8] sm:$0xff]  ;;  %v4938_v28 = vld [vmem:[#allocation5 + $0x18] sm:$0xff]   ;;  %v351_v30 = vpack.c.bf16 %v324_v23, %v323_v21  ;;  %v358_v31 = vpack.c.bf16 %v338_v25, %v337_v24  ;;  %606 = vst.msk [vmem:[#allocation2 + $0x48] sm:$0xff] %vm386_vm0, %v5128_v51 }
  0x4d   : > { %4505 = vmatprep.subr.bf16.mxu1 %v4938_v28  ;;  %v359_v32 = vpack.c.bf16 %v340_v27, %v339_v26  ;;  %v325_v33 = vld [vmem:[%s5269_s16 + $0x50] sm:$0xff]  ;;  %v326_v34 = vld [vmem:[%s5269_s16 + $0x58] sm:$0xff]  ;;  %v327_v35 = vld [vmem:[%s5269_s16 + $0x60] sm:$0xff]  ;;  %607 = vst.msk [vmem:[#allocation2 + $0x50] sm:$0xff] %vm386_vm0, %v5128_v51 }
  0x4e   : > { %4474 = vmatmul.mubr.msk.bf16.vlgmr.msra.gmra.mxu0 %vm386_vm0, %v348_v9  ;;  %4490 = vmatmul.mubr.msk.bf16.vlgmr.msra.gmra.mxu1 %vm386_vm0, %v356_v17  ;;  %v328_v36 = vld [vmem:[%s5269_s16 + $0x68] sm:$0xff]  ;;  %v341_v37 = vld [vmem:[%s5269_s16 + $0xd0] sm:$0xff]  ;;  %v342_v38 = vld [vmem:[%s5269_s16 + $0xd8] sm:$0xff]  ;;  %v352_v41 = vpack.c.bf16 %v326_v34, %v325_v33  ;;  %609 = vst.msk [vmem:[#allocation2 + $0x60] sm:$0xff] %vm386_vm0, %v5128_v51 }
  0x4f   : > { %4477 = vmatprep.mubr.msk.bf16.mxu0 %vm386_vm0, %v349_v10  ;;  %4493 = vmatprep.mubr.msk.bf16.mxu1 %vm386_vm0, %v357_v22  ;;  %v343_v39 = vld [vmem:[%s5269_s16 + $0xe0] sm:$0xff]  ;;  %v344_v40 = vld [vmem:[%s5269_s16 + $0xe8] sm:$0xff]  ;;  %v353_v42 = vpack.c.bf16 %v328_v36, %v327_v35  ;;  %v360_v43 = vpack.c.bf16 %v342_v38, %v341_v37  ;;  %v329_v45 = vld [vmem:[%s5269_s16 + $0x70] sm:$0xff]  ;;  %610 = vst.msk [vmem:[#allocation2 + $0x68] sm:$0xff] %vm386_vm0, %v5128_v51 }
  0x50   : > { %4506 = vmatpush3.bf16.msra.mxu1 %v4938_v28  ;;  %v361_v44 = vpack.c.bf16 %v344_v40, %v343_v39  ;;  %v330_v46 = vld [vmem:[%s5269_s16 + $0x78] sm:$0xff]  ;;  %v345_v47 = vld [vmem:[%s5269_s16 + $0xf0] sm:$0xff]  ;;  %612 = vst.msk [vmem:[#allocation2 + $0x78] sm:$0xff] %vm386_vm0, %v5128_v51  ;;  %613 = vst.msk [vmem:[#allocation2 + $0x80] sm:$0xff] %vm386_vm0, %v5128_v51 }
  0x51   : > { %v346_v48 = vld [vmem:[%s5269_s16 + $0xf8] sm:$0xff]  ;;  %v354_v49 = vpack.c.bf16 %v330_v46, %v329_v45  ;;  %615 = vst.msk [vmem:[#allocation2 + $0x90] sm:$0xff] %vm386_vm0, %v5128_v51  ;;  %616 = vst.msk [vmem:[#allocation2 + $0x98] sm:$0xff] %vm386_vm0, %v5128_v51  ;;  %v4939_v52 = vld [vmem:[#allocation5 + $0x10] sm:$0xff]  }
  0x52   : > { %v362_v50 = vpack.c.bf16 %v346_v48, %v345_v47  ;;  %618 = vst.msk [vmem:[#allocation2 + $0xa8] sm:$0xff] %vm386_vm0, %v5128_v51  ;;  %619 = vst.msk [vmem:[#allocation2 + $0xb0] sm:$0xff] %vm386_vm0, %v5128_v51  ;;  %4507 = vmatprep.subr.bf16.mxu1 %v4939_v52  ;;  %v4940_v53 = vld [vmem:[#allocation5 + $0x8] sm:$0xff]   ;;  %v4941_v54 = vld [vmem:[#allocation5] sm:$0xff]  }
  0x53   : > { %621 = vst.msk [vmem:[#allocation2 + $0xc0] sm:$0xff] %vm386_vm0, %v5128_v51  ;;  %622 = vst.msk [vmem:[#allocation2 + $0xc8] sm:$0xff] %vm386_vm0, %v5128_v51  ;;  %4541 = vmatprep.subr.bf16.mxu0 %v4940_v53  ;;  %v736_v55 = vld [vmem:[#allocation2 + $0x1] sm:$0xff]  ;;  %v5389_v61 = vld [vmem:[#allocation5 + $0x28] sm:$0xff]  }
  0x54   : > { %624 = vst.msk [vmem:[#allocation2 + $0xd8] sm:$0xff] %vm386_vm0, %v5128_v51  ;;  %625 = vst.msk [vmem:[#allocation2 + $0xe0] sm:$0xff] %vm386_vm0, %v5128_v51  ;;  %4508 = vmatpush3.bf16.msra.mxu1 %v4939_v52  ;;  %4542 = vmatpush3.bf16.msra.mxu0 %v4940_v53  ;;  %v684_v57 = vld [vmem:[#allocation2] sm:$0xff]  ;;  %v685_v59 = vld [vmem:[#allocation2 + $0x8] sm:$0xff] }
  0x55   : > { %627 = vst.msk [vmem:[#allocation2 + $0xf0] sm:$0xff] %vm386_vm0, %v5128_v51  ;;  %628 = vst.msk [vmem:[#allocation2 + $0xf8] sm:$0xff] %vm386_vm0, %v5128_v51  ;;  %4543 = vmatprep.subr.bf16.mxu0 %v4941_v54  ;;  %v716_v60 = vpack.c.bf16 %v685_v59, %v684_v57  ;;  %4577 = vmatprep.subr.bf16.mxu1 %v5389_v61  ;;  %v5392_v62 = vld [vmem:[#allocation5 + $0x38] sm:$0xff]   ;;  %v5398_v63 = vld [vmem:[%s6861_s2] ss:$0 sm:$0xff] }
  0x56   : > { %4478 = vmatmul.mubr.msk.bf16.gmra.mxu0 %vm386_vm0, %v350_v29  ;;  %4494 = vmatmul.mubr.msk.bf16.gmra.mxu1 %vm386_vm0, %v358_v31  ;;  %630 = vst.msk [vmem:[#allocation2 + $0x108] sm:$0xff] %vm386_vm0, %v5128_v51  ;;  %631 = vst.msk [vmem:[#allocation2 + $0x110] sm:$0xff] %vm386_vm0, %v5128_v51  ;;  %v4945_v52 = vld [vmem:[#allocation5 + $0x30] sm:$0xff]   ;;  %v5457_v57 = vld [vmem:[#allocation5 + $0x48] sm:$0xff]  }
  0x57   : > { %4481 = vmatprep.mubr.msk.bf16.mxu0 %vm386_vm0, %v351_v30  ;;  %4497 = vmatprep.mubr.msk.bf16.mxu1 %vm386_vm0, %v359_v32  ;;  %633 = vst.msk [vmem:[#allocation2 + $0x120] sm:$0xff] %vm386_vm0, %v5128_v51  ;;  %634 = vst.msk [vmem:[#allocation2 + $0x128] sm:$0xff] %vm386_vm0, %v5128_v51 }
  0x58   : > { %636 = vst.msk [vmem:[#allocation2 + $0x138] sm:$0xff] %vm386_vm0, %v5128_v51  ;;  %637 = vst.msk [vmem:[#allocation2 + $0x140] sm:$0xff] %vm386_vm0, %v5128_v51  ;;  %4544 = vmatpush3.bf16.msra.mxu0 %v4941_v54 }
  0x59   : > { %639 = vst.msk [vmem:[#allocation2 + $0x150] sm:$0xff] %vm386_vm0, %v5128_v51  ;;  %640 = vst.msk [vmem:[#allocation2 + $0x158] sm:$0xff] %vm386_vm0, %v5128_v51  ;;  %4613 = vmatprep.subr.bf16.mxu0 %v5392_v62 }
  0x5a   : > { %642 = vst.msk [vmem:[#allocation2 + $0x168] sm:$0xff] %vm386_vm0, %v5128_v51  ;;  %643 = vst.msk [vmem:[#allocation2 + $0x170] sm:$0xff] %vm386_vm0, %v5128_v51 }
  0x5b   : > { %645 = vst.msk [vmem:[#allocation2 + $0x180] sm:$0xff] %vm386_vm0, %v5128_v51  ;;  %646 = vst.msk [vmem:[#allocation2 + $0x188] sm:$0xff] %vm386_vm0, %v5128_v51 }
  0x5c   : > { %648 = vst.msk [vmem:[#allocation2 + $0x198] sm:$0xff] %vm386_vm0, %v5128_v51  ;;  %649 = vst.msk [vmem:[#allocation2 + $0x1a0] sm:$0xff] %vm386_vm0, %v5128_v51 }
  0x5d   : > { %605 = vst.msk [vmem:[#allocation2 + $0x40] sm:$0x3] %vm598_vm1, %v5128_v51  ;;  %599 = vst.msk [vmem:[#allocation2 + $0x10] sm:$0x3] %vm598_vm1, %v5128_v51 }
  0x5e   : > { %4482 = vmatmul.mubr.msk.bf16.gmra.mxu0 %vm386_vm0, %v352_v41  ;;  %4498 = vmatmul.mubr.msk.bf16.gmra.mxu1 %vm386_vm0, %v360_v43  ;;  %602 = vst.msk [vmem:[#allocation2 + $0x28] sm:$0x3] %vm598_vm1, %v5128_v51  ;;  %608 = vst.msk [vmem:[#allocation2 + $0x58] sm:$0x3] %vm598_vm1, %v5128_v51 }
  0x5f   : > { %4485 = vmatprep.mubr.msk.bf16.mxu0 %vm386_vm0, %v353_v42  ;;  %4501 = vmatprep.mubr.msk.bf16.mxu1 %vm386_vm0, %v361_v44  ;;  %611 = vst.msk [vmem:[#allocation2 + $0x70] sm:$0x3] %vm598_vm1, %v5128_v51  ;;  %614 = vst.msk [vmem:[#allocation2 + $0x88] sm:$0x3] %vm598_vm1, %v5128_v51  ;;  %v4943_v44 = vld [vmem:[#allocation5 + $0x20] sm:$0xff]  }
  0x60   : > { %617 = vst.msk [vmem:[#allocation2 + $0xa0] sm:$0x3] %vm598_vm1, %v5128_v51  ;;  %620 = vst.msk [vmem:[#allocation2 + $0xb8] sm:$0x3] %vm598_vm1, %v5128_v51 }
  0x61   : > { %623 = vst.msk [vmem:[#allocation2 + $0xd0] sm:$0x3] %vm598_vm1, %v5128_v51  ;;  %626 = vst.msk [vmem:[#allocation2 + $0xe8] sm:$0x3] %vm598_vm1, %v5128_v51 }
  0x62   : > { %629 = vst.msk [vmem:[#allocation2 + $0x100] sm:$0x3] %vm598_vm1, %v5128_v51  ;;  %632 = vst.msk [vmem:[#allocation2 + $0x118] sm:$0x3] %vm598_vm1, %v5128_v51 }
  0x63   : > { %635 = vst.msk [vmem:[#allocation2 + $0x130] sm:$0x3] %vm598_vm1, %v5128_v51  ;;  %638 = vst.msk [vmem:[#allocation2 + $0x148] sm:$0x3] %vm598_vm1, %v5128_v51 }
  0x64   : > { %641 = vst.msk [vmem:[#allocation2 + $0x160] sm:$0x3] %vm598_vm1, %v5128_v51  ;;  %644 = vst.msk [vmem:[#allocation2 + $0x178] sm:$0x3] %vm598_vm1, %v5128_v51  ;;  %v737_v56 = vld [vmem:[#allocation2 + $0x9] sm:$0xff] }
  0x65   : > { %647 = vst.msk [vmem:[#allocation2 + $0x190] sm:$0x3] %vm598_vm1, %v5128_v51  ;;  %650 = vst.msk [vmem:[#allocation2 + $0x1a8] sm:$0x3] %vm598_vm1, %v5128_v51  ;;  %v768_v58 = vpack.c.bf16 %v737_v56, %v736_v55 }
  0x66   : > { %4486 = vmatmul.mubr.msk.bf16.gmra.mxu0 %vm386_vm0, %v354_v49  ;;  %4502 = vmatmul.mubr.msk.bf16.gmra.mxu1 %vm386_vm0, %v362_v50 }
  0x67   : > { %4509 = vmatprep.mubr.msk.bf16.mxu1 %vm386_vm0, %v768_v58  ;;  %4545 = vmatprep.mubr.msk.bf16.mxu0 %vm386_vm0, %v716_v60 }
 0x10e   : > { %v4475_v0 = vpop.f32.mrf.mxu0  ;;  %v4491_v2 = vpop.f32.mrf.mxu1 }
 0x10f   : > { %v478_v1 = vadd.f32 %v4475_v0, %v5398_v63  ;;  %v542_v4 = vadd.f32 %v4491_v2, %v5398_v63 }
 0x110   : > { %v469_v3 = vpop.f32.mrf.mxu0  ;;  %v533_v6 = vpop.f32.mrf.mxu1 }
 0x111   : > { %654 = vst.msk [vmem:[#allocation2 + $0x31] sm:$0xff] %vm386_vm0, %v478_v1  ;;  %v470_v5 = vadd.f32 %v5398_v63, %v469_v3  ;;  %670 = vst.msk [vmem:[#allocation2 + $0xf1] sm:$0xff] %vm386_vm0, %v542_v4  ;;  %v534_v8 = vadd.f32 %v5398_v63, %v533_v6 }
 0x112   : > { %v4476_v7 = vpop.f32.mrf.mxu0  ;;  %v4492_v10 = vpop.f32.mrf.mxu1 }
 0x113   : > { %652 = vst.msk [vmem:[#allocation2 + $0x19] sm:$0xff] %vm386_vm0, %v470_v5  ;;  %v481_v9 = vadd.f32 %v4476_v7, %v5398_v63  ;;  %668 = vst.msk [vmem:[#allocation2 + $0xd9] sm:$0xff] %vm386_vm0, %v534_v8  ;;  %v545_v12 = vadd.f32 %v4492_v10, %v5398_v63 }
 0x114   : > { %v472_v11 = vpop.f32.mrf.mxu0  ;;  %v536_v14 = vpop.f32.mrf.mxu1 }
 0x115   : > { %655 = vst.msk [vmem:[#allocation2 + $0x39] sm:$0xff] %vm386_vm0, %v481_v9  ;;  %v473_v13 = vadd.f32 %v5398_v63, %v472_v11  ;;  %671 = vst.msk [vmem:[#allocation2 + $0xf9] sm:$0xff] %vm386_vm0, %v545_v12  ;;  %v537_v16 = vadd.f32 %v5398_v63, %v536_v14 }
 0x116   : > { %v4479_v15 = vpop.f32.mrf.mxu0  ;;  %v4495_v18 = vpop.f32.mrf.mxu1 }
 0x117   : > { %653 = vst.msk [vmem:[#allocation2 + $0x21] sm:$0xff] %vm386_vm0, %v473_v13  ;;  %v494_v17 = vadd.f32 %v4479_v15, %v5398_v63  ;;  %669 = vst.msk [vmem:[#allocation2 + $0xe1] sm:$0xff] %vm386_vm0, %v537_v16  ;;  %v558_v20 = vadd.f32 %v4495_v18, %v5398_v63  ;;  %v5473_v13 = vld [vmem:[#allocation5 + $0x58] sm:$0xff]  }
 0x118   : > { %v485_v19 = vpop.f32.mrf.mxu0  ;;  %v549_v22 = vpop.f32.mrf.mxu1  ;;  %v740_v42 = vld [vmem:[#allocation2 + $0x31] sm:$0xff] }
 0x119   : > { %658 = vst.msk [vmem:[#allocation2 + $0x61] sm:$0xff] %vm386_vm0, %v494_v17  ;;  %v486_v21 = vadd.f32 %v5398_v63, %v485_v19  ;;  %674 = vst.msk [vmem:[#allocation2 + $0x121] sm:$0xff] %vm386_vm0, %v558_v20  ;;  %v550_v24 = vadd.f32 %v5398_v63, %v549_v22  ;;  %v688_v47 = vld [vmem:[#allocation2 + $0x30] sm:$0xff] }
 0x11a   : > { %v4480_v23 = vpop.f32.mrf.mxu0  ;;  %v4496_v26 = vpop.f32.mrf.mxu1  ;;  %v738_v30 = vld [vmem:[#allocation2 + $0x19] sm:$0xff] }
 0x11b   : > { %656 = vst.msk [vmem:[#allocation2 + $0x49] sm:$0xff] %vm386_vm0, %v486_v21  ;;  %v497_v25 = vadd.f32 %v4480_v23, %v5398_v63  ;;  %672 = vst.msk [vmem:[#allocation2 + $0x109] sm:$0xff] %vm386_vm0, %v550_v24  ;;  %v561_v28 = vadd.f32 %v4496_v26, %v5398_v63  ;;  %v686_v31 = vld [vmem:[#allocation2 + $0x18] sm:$0xff] }
 0x11c   : > { %v488_v27 = vpop.f32.mrf.mxu0  ;;  %v741_v32 = vld [vmem:[#allocation2 + $0x39] sm:$0xff]  ;;  %v552_v33 = vpop.f32.mrf.mxu1 }
 0x11d   : > { %659 = vst.msk [vmem:[#allocation2 + $0x69] sm:$0xff] %vm386_vm0, %v497_v25  ;;  %v489_v29 = vadd.f32 %v5398_v63, %v488_v27  ;;  %v689_v37 = vld [vmem:[#allocation2 + $0x38] sm:$0xff]  ;;  %675 = vst.msk [vmem:[#allocation2 + $0x129] sm:$0xff] %vm386_vm0, %v561_v28  ;;  %v553_v38 = vadd.f32 %v5398_v63, %v552_v33  ;;  %v5436_v46 = vpack.c.bf16 %v741_v32, %v740_v42 }
 0x11e   : > { %v4483_v34 = vpop.f32.mrf.mxu0  ;;  %v739_v35 = vld [vmem:[#allocation2 + $0x21] sm:$0xff]  ;;  %v4499_v43 = vpop.f32.mrf.mxu1  ;;  %v5446_v50 = vpack.c.bf16 %v689_v37, %v688_v47 }
 0x11f   : > { %v687_v36 = vld [vmem:[#allocation2 + $0x20] sm:$0xff]  ;;  %657 = vst.msk [vmem:[#allocation2 + $0x51] sm:$0xff] %vm386_vm0, %v489_v29  ;;  %v510_v39 = vadd.f32 %v4483_v34, %v5398_v63  ;;  %v5432_v40 = vpack.c.bf16 %v739_v35, %v738_v30  ;;  %673 = vst.msk [vmem:[#allocation2 + $0x111] sm:$0xff] %vm386_vm0, %v553_v38  ;;  %v574_v48 = vadd.f32 %v4499_v43, %v5398_v63 }
 0x120   : > { %v5434_v41 = vpack.c.bf16 %v687_v36, %v686_v31  ;;  %v501_v45 = vpop.f32.mrf.mxu0  ;;  %v565_v51 = vpop.f32.mrf.mxu1  ;;  %v744_v10 = vld [vmem:[#allocation2 + $0x61] sm:$0xff] }
 0x121   : > { %662 = vst.msk [vmem:[#allocation2 + $0x91] sm:$0xff] %vm386_vm0, %v510_v39  ;;  %v502_v49 = vadd.f32 %v5398_v63, %v501_v45  ;;  %4510 = vmatmul.mubr.msk.bf16.vlgmr.msra.gmra.mxu1 %vm386_vm0, %v5432_v40  ;;  %678 = vst.msk [vmem:[#allocation2 + $0x151] sm:$0xff] %vm386_vm0, %v574_v48  ;;  %v566_v54 = vadd.f32 %v5398_v63, %v565_v51  ;;  %v692_v11 = vld [vmem:[#allocation2 + $0x60] sm:$0xff] }
 0x122   : > { %4546 = vmatmul.mubr.msk.bf16.vlgmr.msra.gmra.mxu0 %vm386_vm0, %v5434_v41  ;;  %4578 = vmatpush3.bf16.msra.mxu1 %v5389_v61  ;;  %v4484_v53 = vpop.f32.mrf.mxu0  ;;  %v4500_v56 = vpop.f32.mrf.mxu1  ;;  %v742_v61 = vld [vmem:[#allocation2 + $0x49] sm:$0xff] }
 0x123   : > { %4513 = vmatprep.mubr.msk.bf16.mxu1 %vm386_vm0, %v5436_v46  ;;  %660 = vst.msk [vmem:[#allocation2 + $0x79] sm:$0xff] %vm386_vm0, %v502_v49  ;;  %v513_v55 = vadd.f32 %v4484_v53, %v5398_v63  ;;  %4549 = vmatprep.mubr.msk.bf16.mxu0 %vm386_vm0, %v5446_v50  ;;  %676 = vst.msk [vmem:[#allocation2 + $0x139] sm:$0xff] %vm386_vm0, %v566_v54  ;;  %v577_v59 = vadd.f32 %v4500_v56, %v5398_v63  ;;  %v690_v5 = vld [vmem:[#allocation2 + $0x48] sm:$0xff]  ;;  %v754_v56 = vld [vmem:[#allocation2 + $0xd9] sm:$0xff] }
 0x124   : > { %4579 = vmatprep.subr.bf16.mxu1 %v4943_v44  ;;  %v504_v58 = vpop.f32.mrf.mxu0  ;;  %4614 = vmatpush3.bf16.msra.mxu0 %v5392_v62  ;;  %v745_v0 = vld [vmem:[#allocation2 + $0x69] sm:$0xff]  ;;  %v568_v2 = vpop.f32.mrf.mxu1 }
 0x125   : > { %663 = vst.msk [vmem:[#allocation2 + $0x99] sm:$0xff] %vm386_vm0, %v513_v55  ;;  %v505_v60 = vadd.f32 %v5398_v63, %v504_v58  ;;  %v693_v1 = vld [vmem:[#allocation2 + $0x68] sm:$0xff]  ;;  %4615 = vmatprep.subr.bf16.mxu0 %v4945_v52  ;;  %679 = vst.msk [vmem:[#allocation2 + $0x159] sm:$0xff] %vm386_vm0, %v577_v59  ;;  %v569_v7 = vadd.f32 %v5398_v63, %v568_v2  ;;  %v5475_v15 = vpack.c.bf16 %v745_v0, %v744_v10  ;;  %v756_v58 = vld [vmem:[#allocation2 + $0xf1] sm:$0xff] }
 0x126   : > { %v4487_v3 = vpop.f32.mrf.mxu0  ;;  %v743_v4 = vld [vmem:[#allocation2 + $0x51] sm:$0xff]  ;;  %4580 = vmatpush3.bf16.msra.mxu1 %v4943_v44  ;;  %v4503_v12 = vpop.f32.mrf.mxu1  ;;  %v5477_v16 = vpack.c.bf16 %v693_v1, %v692_v11  ;;  %v755_v59 = vld [vmem:[#allocation2 + $0xe1] sm:$0xff]  ;;  %v757_v0 = vld [vmem:[#allocation2 + $0xf9] sm:$0xff] }
 0x127   : > { %v691_v6 = vld [vmem:[#allocation2 + $0x50] sm:$0xff]  ;;  %661 = vst.msk [vmem:[#allocation2 + $0x81] sm:$0xff] %vm386_vm0, %v505_v60  ;;  %v526_v62 = vadd.f32 %v4487_v3, %v5398_v63  ;;  %v5468_v8 = vpack.c.bf16 %v743_v4, %v742_v61  ;;  %4649 = vmatprep.subr.bf16.mxu1 %v5457_v57  ;;  %677 = vst.msk [vmem:[#allocation2 + $0x141] sm:$0xff] %vm386_vm0, %v569_v7  ;;  %v590_v17 = vadd.f32 %v4503_v12, %v5398_v63  ;;  %v702_v60 = vld [vmem:[#allocation2 + $0xd8] sm:$0xff] }
 0x128   : > { %v5470_v9 = vpack.c.bf16 %v691_v6, %v690_v5  ;;  %v517_v14 = vpop.f32.mrf.mxu0  ;;  %4616 = vmatpush3.bf16.msra.mxu0 %v4945_v52  ;;  %v581_v19 = vpop.f32.mrf.mxu1  ;;  %v748_v37 = vld [vmem:[#allocation2 + $0x91] sm:$0xff]  ;;  %v703_v61 = vld [vmem:[#allocation2 + $0xe0] sm:$0xff]  ;;  %v5536_v3 = vpack.c.bf16 %v755_v59, %v754_v56  ;;  %v5540_v5 = vpack.c.bf16 %v757_v0, %v756_v58  ;;  %v758_v7 = vld [vmem:[#allocation2 + $0x109] sm:$0xff] }
 0x129   : > { %666 = vst.msk [vmem:[#allocation2 + $0xc1] sm:$0xff] %vm386_vm0, %v526_v62  ;;  %v518_v18 = vadd.f32 %v5398_v63, %v517_v14  ;;  %4514 = vmatmul.mubr.msk.bf16.gmra.mxu1 %vm386_vm0, %v5468_v8  ;;  %682 = vst.msk [vmem:[#allocation2 + $0x181] sm:$0xff] %vm386_vm0, %v590_v17  ;;  %v582_v21 = vadd.f32 %v5398_v63, %v581_v19  ;;  %4685 = vmatprep.subr.bf16.mxu0 %v5473_v13  ;;  %v696_v38 = vld [vmem:[#allocation2 + $0x90] sm:$0xff]  ;;  %v705_v2 = vld [vmem:[#allocation2 + $0xf8] sm:$0xff] }
 0x12a   : > { %4550 = vmatmul.mubr.msk.bf16.gmra.mxu0 %vm386_vm0, %v5470_v9  ;;  %v4488_v20 = vpop.f32.mrf.mxu0  ;;  %4517 = vmatprep.mubr.msk.bf16.mxu1 %vm386_vm0, %v5475_v15  ;;  %v4504_v23 = vpop.f32.mrf.mxu1  ;;  %v746_v27 = vld [vmem:[#allocation2 + $0x79] sm:$0xff]  ;;  %v704_v1 = vld [vmem:[#allocation2 + $0xf0] sm:$0xff]  ;;  %v5538_v4 = vpack.c.bf16 %v703_v61, %v702_v60  ;;  %v760_v62 = vld [vmem:[#allocation2 + $0x121] sm:$0xff] }
 0x12b   : > { %4553 = vmatprep.mubr.msk.bf16.mxu0 %vm386_vm0, %v5477_v16  ;;  %664 = vst.msk [vmem:[#allocation2 + $0xa9] sm:$0xff] %vm386_vm0, %v518_v18  ;;  %v529_v22 = vadd.f32 %v4488_v20, %v5398_v63  ;;  %680 = vst.msk [vmem:[#allocation2 + $0x169] sm:$0xff] %vm386_vm0, %v582_v21  ;;  %v593_v25 = vadd.f32 %v4504_v23, %v5398_v63  ;;  %v694_v32 = vld [vmem:[#allocation2 + $0x78] sm:$0xff]  ;;  %v5542_v6 = vpack.c.bf16 %v705_v2, %v704_v1  ;;  %v706_v11 = vld [vmem:[#allocation2 + $0x108] sm:$0xff] }
 0x12c   : > { %v520_v24 = vpop.f32.mrf.mxu0  ;;  %v749_v28 = vld [vmem:[#allocation2 + $0x99] sm:$0xff]  ;;  %v584_v30 = vpop.f32.mrf.mxu1  ;;  %v759_v10 = vld [vmem:[#allocation2 + $0x111] sm:$0xff]  ;;  %v761_v14 = vld [vmem:[#allocation2 + $0x129] sm:$0xff] }
 0x12d   : > { %667 = vst.msk [vmem:[#allocation2 + $0xc9] sm:$0xff] %vm386_vm0, %v529_v22  ;;  %v521_v26 = vadd.f32 %v5398_v63, %v520_v24  ;;  %v697_v29 = vld [vmem:[#allocation2 + $0x98] sm:$0xff]  ;;  %683 = vst.msk [vmem:[#allocation2 + $0x189] sm:$0xff] %vm386_vm0, %v593_v25  ;;  %v585_v34 = vadd.f32 %v5398_v63, %v584_v30  ;;  %v5507_v39 = vpack.c.bf16 %v749_v28, %v748_v37  ;;  %v707_v12 = vld [vmem:[#allocation2 + $0x110] sm:$0xff] }
 0x12e   : > { %v747_v31 = vld [vmem:[#allocation2 + $0x81] sm:$0xff]  ;;  %v5509_v42 = vpack.c.bf16 %v697_v29, %v696_v38  ;;  %v5552_v19 = vpack.c.bf16 %v759_v10, %v758_v7  ;;  %v5554_v20 = vpack.c.bf16 %v707_v12, %v706_v11  ;;  %v5556_v21 = vpack.c.bf16 %v761_v14, %v760_v62  ;;  %v762_v23 = vld [vmem:[#allocation2 + $0x139] sm:$0xff]  ;;  %v764_v24 = vld [vmem:[#allocation2 + $0x151] sm:$0xff] }
 0x12f   : > { %v695_v33 = vld [vmem:[#allocation2 + $0x80] sm:$0xff]  ;;  %665 = vst.msk [vmem:[#allocation2 + $0xb1] sm:$0xff] %vm386_vm0, %v521_v26  ;;  %v5503_v35 = vpack.c.bf16 %v747_v31, %v746_v27  ;;  %681 = vst.msk [vmem:[#allocation2 + $0x171] sm:$0xff] %vm386_vm0, %v585_v34  ;;  %v709_v18 = vld [vmem:[#allocation2 + $0x128] sm:$0xff] }
 0x130   : > { %v5505_v36 = vpack.c.bf16 %v695_v33, %v694_v32  ;;  %v752_v52 = vld [vmem:[#allocation2 + $0xc1] sm:$0xff]  ;;  %v710_v26 = vld [vmem:[#allocation2 + $0x138] sm:$0xff]  ;;  %v712_v29 = vld [vmem:[#allocation2 + $0x150] sm:$0xff] }
 0x131   : > { %4518 = vmatmul.mubr.msk.bf16.gmra.mxu1 %vm386_vm0, %v5503_v35  ;;  %v700_v53 = vld [vmem:[#allocation2 + $0xc0] sm:$0xff]  ;;  %v713_v30 = vld [vmem:[#allocation2 + $0x158] sm:$0xff]  ;;  %v4947_v61 = vld [vmem:[#allocation5 + $0x40] sm:$0xff]  }
 0x132   : > { %4554 = vmatmul.mubr.msk.bf16.gmra.mxu0 %vm386_vm0, %v5505_v36  ;;  %4521 = vmatprep.mubr.msk.bf16.mxu1 %vm386_vm0, %v5507_v39  ;;  %v750_v63 = vld [vmem:[#allocation2 + $0xa9] sm:$0xff]  ;;  %v708_v17 = vld [vmem:[#allocation2 + $0x120] sm:$0xff]  ;;  %v5574_v34 = vpack.c.bf16 %v713_v30, %v712_v29  ;;  %v1235_v58 = vld [vmem:[#allocation2 + $0x32] sm:$0xff] }
 0x133   : > { %4557 = vmatprep.mubr.msk.bf16.mxu0 %vm386_vm0, %v5509_v42  ;;  %v698_v47 = vld [vmem:[#allocation2 + $0xa8] sm:$0xff]  ;;  %v5558_v22 = vpack.c.bf16 %v709_v18, %v708_v17  ;;  %v711_v27 = vld [vmem:[#allocation2 + $0x140] sm:$0xff]  ;;  %v1238_v7 = vld [vmem:[#allocation2 + $0x52] sm:$0xff] }
 0x134   : > { %v753_v43 = vld [vmem:[#allocation2 + $0xc9] sm:$0xff]  ;;  %v763_v25 = vld [vmem:[#allocation2 + $0x141] sm:$0xff]  ;;  %v765_v28 = vld [vmem:[#allocation2 + $0x159] sm:$0xff]  ;;  %v5570_v32 = vpack.c.bf16 %v711_v27, %v710_v26 }
 0x135   : > { %v701_v44 = vld [vmem:[#allocation2 + $0xc8] sm:$0xff]  ;;  %v5524_v54 = vpack.c.bf16 %v753_v43, %v752_v52  ;;  %v5568_v31 = vpack.c.bf16 %v763_v25, %v762_v23  ;;  %v5572_v33 = vpack.c.bf16 %v765_v28, %v764_v24  ;;  %v1236_v59 = vld [vmem:[#allocation2 + $0x3a] sm:$0xff]  ;;  %v1243_v17 = vld [vmem:[#allocation2 + $0x92] sm:$0xff] }
 0x136   : > { %v751_v45 = vld [vmem:[#allocation2 + $0xb1] sm:$0xff]  ;;  %v5526_v55 = vpack.c.bf16 %v701_v44, %v700_v53  ;;  %v766_v37 = vld [vmem:[#allocation2 + $0x169] sm:$0xff]  ;;  %v1233_v53 = vld [vmem:[#allocation2 + $0x1a] sm:$0xff]  ;;  %v5597_v0 = vpack.c.bf16 %v1236_v59, %v1235_v58 }
 0x137   : > { %v699_v48 = vld [vmem:[#allocation2 + $0xb0] sm:$0xff]  ;;  %v5520_v49 = vpack.c.bf16 %v751_v45, %v750_v63  ;;  %v1231_v38 = vld [vmem:[#allocation2 + $0x2] sm:$0xff]  ;;  %v1244_v18 = vld [vmem:[#allocation2 + $0x9a] sm:$0xff] }
 0x138   : > { %v5522_v51 = vpack.c.bf16 %v699_v48, %v698_v47  ;;  %v1232_v63 = vld [vmem:[#allocation2 + $0xa] sm:$0xff]  ;;  %v1234_v56 = vld [vmem:[#allocation2 + $0x22] sm:$0xff]  ;;  %v5629_v24 = vpack.c.bf16 %v1244_v18, %v1243_v17  ;;  %v1246_v26 = vld [vmem:[#allocation2 + $0xb2] sm:$0xff] }
 0x139   : > { %4522 = vmatmul.mubr.msk.bf16.gmra.mxu1 %vm386_vm0, %v5520_v49  ;;  %v767_v43 = vld [vmem:[#allocation2 + $0x171] sm:$0xff]  ;;  %v714_v44 = vld [vmem:[#allocation2 + $0x168] sm:$0xff]  ;;  %v1263_v47 = vpack.c.bf16 %v1232_v63, %v1231_v38  ;;  %v5595_v60 = vpack.c.bf16 %v1234_v56, %v1233_v53  ;;  %v4949_v1 = vld [vmem:[#allocation5 + $0x50] sm:$0xff]  }
 0x13a   : > { %4558 = vmatmul.mubr.msk.bf16.gmra.mxu0 %vm386_vm0, %v5522_v51  ;;  %4525 = vmatprep.mubr.msk.bf16.mxu1 %vm386_vm0, %v5524_v54  ;;  %v715_v45 = vld [vmem:[#allocation2 + $0x170] sm:$0xff]  ;;  %v5584_v48 = vpack.c.bf16 %v767_v43, %v766_v37  ;;  %v1239_v62 = vld [vmem:[#allocation2 + $0x62] sm:$0xff]  ;;  %v1249_v37 = vld [vmem:[#allocation2 + $0xda] sm:$0xff] }
 0x13b   : > { %4561 = vmatprep.mubr.msk.bf16.mxu0 %vm386_vm0, %v5526_v55  ;;  %v5586_v52 = vpack.c.bf16 %v715_v45, %v714_v44  ;;  %v1237_v2 = vld [vmem:[#allocation2 + $0x4a] sm:$0xff]  ;;  %v1242_v14 = vld [vmem:[#allocation2 + $0x82] sm:$0xff]  ;;  %v1251_v63 = vld [vmem:[#allocation2 + $0xf2] sm:$0xff] }
 0x13c   : > { %v1240_v10 = vld [vmem:[#allocation2 + $0x6a] sm:$0xff]  ;;  %v5611_v11 = vpack.c.bf16 %v1238_v7, %v1237_v2  ;;  %v1247_v27 = vld [vmem:[#allocation2 + $0xc2] sm:$0xff]  ;;  %v1252_v43 = vld [vmem:[#allocation2 + $0xfa] sm:$0xff] }
 0x13d   : > { %v5616_v12 = vpack.c.bf16 %v1240_v10, %v1239_v62  ;;  %v1245_v25 = vld [vmem:[#allocation2 + $0xaa] sm:$0xff]  ;;  %v1250_v38 = vld [vmem:[#allocation2 + $0xe2] sm:$0xff]  ;;  %v1273_v45 = vpack.c.bf16 %v1252_v43, %v1251_v63  ;;  %v1254_v53 = vld [vmem:[#allocation2 + $0x112] sm:$0xff] }
 0x13e   : > { %v1248_v28 = vld [vmem:[#allocation2 + $0xca] sm:$0xff]  ;;  %v5639_v29 = vpack.c.bf16 %v1246_v26, %v1245_v25  ;;  %v1272_v44 = vpack.c.bf16 %v1250_v38, %v1249_v37  ;;  %v1255_v56 = vld [vmem:[#allocation2 + $0x122] sm:$0xff]  ;;  %v1259_v7 = vld [vmem:[#allocation2 + $0x152] sm:$0xff] }
 0x13f   : > { %v5641_v30 = vpack.c.bf16 %v1248_v28, %v1247_v27  ;;  %v1256_v58 = vld [vmem:[#allocation2 + $0x12a] sm:$0xff]  ;;  %v1258_v2 = vld [vmem:[#allocation2 + $0x142] sm:$0xff]  ;;  %v1260_v62 = vld [vmem:[#allocation2 + $0x15a] sm:$0xff] }
 0x140   : > { %v1261_v17 = vld [vmem:[#allocation2 + $0x16a] sm:$0xff]  ;;  %v1262_v18 = vld [vmem:[#allocation2 + $0x172] sm:$0xff]  ;;  %v4953_v37 = vld [vmem:[#allocation5 + $0x70] sm:$0xff]  }
 0x141   : > { %4526 = vmatmul.mubr.msk.bf16.gmra.mxu1 %vm386_vm0, %v5536_v3  ;;  %v1568_v25 = vld [vmem:[#allocation2 + $0x188] sm:$0xff]  ;;  %v1278_v26 = vpack.c.bf16 %v1262_v18, %v1261_v17  ;;  %v4951_v28 = vld [vmem:[#allocation5 + $0x60] sm:$0xff]  }
 0x142   : > { %4562 = vmatmul.mubr.msk.bf16.gmra.mxu0 %vm386_vm0, %v5538_v4  ;;  %4529 = vmatprep.mubr.msk.bf16.mxu1 %vm386_vm0, %v5540_v5 }
 0x143   : > { %4565 = vmatprep.mubr.msk.bf16.mxu0 %vm386_vm0, %v5542_v6 }
 0x149   : > { %4530 = vmatmul.mubr.msk.bf16.gmra.mxu1 %vm386_vm0, %v5552_v19 }
 0x14a   : > { %4566 = vmatmul.mubr.msk.bf16.gmra.mxu0 %vm386_vm0, %v5554_v20  ;;  %4533 = vmatprep.mubr.msk.bf16.mxu1 %vm386_vm0, %v5556_v21 }
 0x14b   : > { %4569 = vmatprep.mubr.msk.bf16.mxu0 %vm386_vm0, %v5558_v22 }
 0x151   : > { %4534 = vmatmul.mubr.msk.bf16.gmra.mxu1 %vm386_vm0, %v5568_v31 }
 0x152   : > { %4570 = vmatmul.mubr.msk.bf16.gmra.mxu0 %vm386_vm0, %v5570_v32  ;;  %4537 = vmatprep.mubr.msk.bf16.mxu1 %vm386_vm0, %v5572_v33 }
 0x153   : > { %4573 = vmatprep.mubr.msk.bf16.mxu0 %vm386_vm0, %v5574_v34 }
 0x159   : > { %4538 = vmatmul.mubr.msk.bf16.gmra.mxu1 %vm386_vm0, %v5584_v48 }
 0x15a   : > { %4574 = vmatmul.mubr.msk.bf16.gmra.mxu0 %vm386_vm0, %v5586_v52  ;;  %4581 = vmatprep.mubr.msk.bf16.mxu1 %vm386_vm0, %v1263_v47  ;;  %v1253_v47 = vld [vmem:[#allocation2 + $0x10a] sm:$0xff] }
 0x15b   : > { %4617 = vmatprep.mubr.msk.bf16.mxu0 %vm386_vm0, %v5434_v41  ;;  %v5608_v41 = vld [vmem:[#allocation5 + $0x68] sm:$0xff]   ;;  %v1274_v59 = vpack.c.bf16 %v1254_v53, %v1253_v47 }
 0x161   : > { %4582 = vmatmul.mubr.msk.bf16.vlgmr.msra.gmra.mxu1 %vm386_vm0, %v5595_v60 }
 0x162   : > { %4618 = vmatmul.mubr.msk.bf16.vlgmr.msra.gmra.mxu0 %vm386_vm0, %v5446_v50  ;;  %4650 = vmatpush3.bf16.msra.mxu1 %v5457_v57  ;;  %v5614_v57 = vld [vmem:[#allocation5 + $0x78] sm:$0xff]  }
 0x163   : > { %4585 = vmatprep.mubr.msk.bf16.mxu1 %vm386_vm0, %v5597_v0  ;;  %4621 = vmatprep.mubr.msk.bf16.mxu0 %vm386_vm0, %v5470_v9 }
 0x164   : > { %4651 = vmatprep.subr.bf16.mxu1 %v4947_v61  ;;  %4686 = vmatpush3.bf16.msra.mxu0 %v5473_v13  ;;  %v1241_v13 = vld [vmem:[#allocation2 + $0x7a] sm:$0xff] }
 0x165   : > { %4687 = vmatprep.subr.bf16.mxu0 %v4949_v1  ;;  %v5627_v23 = vpack.c.bf16 %v1242_v14, %v1241_v13  ;;  %v1277_v13 = vpack.c.bf16 %v1260_v62, %v1259_v7  ;;  %v1567_v14 = vld [vmem:[#allocation2 + $0x180] sm:$0xff] }
 0x166   : > { %4652 = vmatpush3.bf16.msra.mxu1 %v4947_v61  ;;  %v1275_v61 = vpack.c.bf16 %v1256_v58, %v1255_v56  ;;  %v5669_v27 = vpack.c.bf16 %v1568_v25, %v1567_v14 }
 0x167   : > { %4721 = vmatprep.subr.bf16.mxu1 %v5608_v41 }
 0x168   : > { %4688 = vmatpush3.bf16.msra.mxu0 %v4949_v1  ;;  %v1257_v1 = vld [vmem:[#allocation2 + $0x13a] sm:$0xff] }
 0x169   : > { %4586 = vmatmul.mubr.msk.bf16.gmra.mxu1 %vm386_vm0, %v5611_v11  ;;  %4757 = vmatprep.subr.bf16.mxu0 %v5614_v57  ;;  %v1276_v10 = vpack.c.bf16 %v1258_v2, %v1257_v1 }
 0x16a   : > { %4622 = vmatmul.mubr.msk.bf16.gmra.mxu0 %vm386_vm0, %v5477_v16  ;;  %4589 = vmatprep.mubr.msk.bf16.mxu1 %vm386_vm0, %v5616_v12 }
 0x16b   : > { %4625 = vmatprep.mubr.msk.bf16.mxu0 %vm386_vm0, %v5505_v36 }
 0x171   : > { %4590 = vmatmul.mubr.msk.bf16.gmra.mxu1 %vm386_vm0, %v5627_v23 }
 0x172   : > { %4626 = vmatmul.mubr.msk.bf16.gmra.mxu0 %vm386_vm0, %v5509_v42  ;;  %4593 = vmatprep.mubr.msk.bf16.mxu1 %vm386_vm0, %v5629_v24 }
 0x173   : > { %4629 = vmatprep.mubr.msk.bf16.mxu0 %vm386_vm0, %v5522_v51 }
 0x179   : > { %4594 = vmatmul.mubr.msk.bf16.gmra.mxu1 %vm386_vm0, %v5639_v29 }
 0x17a   : > { %4630 = vmatmul.mubr.msk.bf16.gmra.mxu0 %vm386_vm0, %v5526_v55  ;;  %4597 = vmatprep.mubr.msk.bf16.mxu1 %vm386_vm0, %v5641_v30 }
 0x17b   : > { %4633 = vmatprep.mubr.msk.bf16.mxu0 %vm386_vm0, %v5538_v4 }
 0x181   : > { %4598 = vmatmul.mubr.msk.bf16.gmra.mxu1 %vm386_vm0, %v1272_v44 }
 0x182   : > { %4634 = vmatmul.mubr.msk.bf16.gmra.mxu0 %vm386_vm0, %v5542_v6  ;;  %4601 = vmatprep.mubr.msk.bf16.mxu1 %vm386_vm0, %v1273_v45 }
 0x183   : > { %4637 = vmatprep.mubr.msk.bf16.mxu0 %vm386_vm0, %v5554_v20 }
 0x189   : > { %4602 = vmatmul.mubr.msk.bf16.gmra.mxu1 %vm386_vm0, %v1274_v59 }
 0x18a   : > { %4638 = vmatmul.mubr.msk.bf16.gmra.mxu0 %vm386_vm0, %v5558_v22  ;;  %4605 = vmatprep.mubr.msk.bf16.mxu1 %vm386_vm0, %v1275_v61 }
 0x18b   : > { %4641 = vmatprep.mubr.msk.bf16.mxu0 %vm386_vm0, %v5570_v32 }
 0x191   : > { %4606 = vmatmul.mubr.msk.bf16.gmra.mxu1 %vm386_vm0, %v1276_v10 }
 0x192   : > { %4642 = vmatmul.mubr.msk.bf16.gmra.mxu0 %vm386_vm0, %v5574_v34  ;;  %4609 = vmatprep.mubr.msk.bf16.mxu1 %vm386_vm0, %v1277_v13 }
 0x193   : > { %4645 = vmatprep.mubr.msk.bf16.mxu0 %vm386_vm0, %v5586_v52 }
 0x199   : > { %4610 = vmatmul.mubr.msk.bf16.gmra.mxu1 %vm386_vm0, %v1278_v26 }
 0x19a   : > { %4646 = vmatmul.mubr.msk.bf16.gmra.mxu0 %vm386_vm0, %v5669_v27  ;;  %4653 = vmatprep.mubr.msk.bf16.mxu1 %vm386_vm0, %v5432_v40  ;;  %v4954_v40 = vld [vmem:[#allocation5 + $0x88] sm:$0xff]  }
 0x19b   : > { %4689 = vmatprep.mubr.msk.bf16.mxu0 %vm386_vm0, %v5595_v60  ;;  %v1873_v60 = vld [vmem:[#allocation2 + $0x181] sm:$0xff] }
 0x1a1   : > { %4654 = vmatmul.mubr.msk.bf16.vlgmr.msra.gmra.mxu1 %vm386_vm0, %v5436_v46 }
 0x1a2   : > { %4690 = vmatmul.mubr.msk.bf16.vlgmr.msra.gmra.mxu0 %vm386_vm0, %v5597_v0  ;;  %4722 = vmatpush3.bf16.msra.mxu1 %v5608_v41  ;;  %v1874_v41 = vld [vmem:[#allocation2 + $0x189] sm:$0xff] }
 0x1a3   : > { %4657 = vmatprep.mubr.msk.bf16.mxu1 %vm386_vm0, %v5468_v8  ;;  %4693 = vmatprep.mubr.msk.bf16.mxu0 %vm386_vm0, %v5611_v11 }
 0x1a4   : > { %4723 = vmatprep.subr.bf16.mxu1 %v4951_v28  ;;  %4758 = vmatpush3.bf16.msra.mxu0 %v5614_v57  ;;  %v2179_v57 = vld [vmem:[#allocation2 + $0x182] sm:$0xff] }
 0x1a5   : > { %4759 = vmatprep.subr.bf16.mxu0 %v4953_v37 }
 0x1a6   : > { %4724 = vmatpush3.bf16.msra.mxu1 %v4951_v28 }
 0x1a7   : > { %4793 = vmatprep.subr.bf16.mxu1 %v4954_v40 }
 0x1a8   : > { %4760 = vmatpush3.bf16.msra.mxu0 %v4953_v37 }
 0x1a9   : > { %4658 = vmatmul.mubr.msk.bf16.gmra.mxu1 %vm386_vm0, %v5475_v15 }
 0x1aa   : > { %4694 = vmatmul.mubr.msk.bf16.gmra.mxu0 %vm386_vm0, %v5616_v12  ;;  %4661 = vmatprep.mubr.msk.bf16.mxu1 %vm386_vm0, %v5503_v35 }
 0x1ab   : > { %4697 = vmatprep.mubr.msk.bf16.mxu0 %vm386_vm0, %v5627_v23  ;;  %v2180_v23 = vld [vmem:[#allocation2 + $0x18a] sm:$0xff] }
 0x1b1   : > { %4662 = vmatmul.mubr.msk.bf16.gmra.mxu1 %vm386_vm0, %v5507_v39 }
 0x1b2   : > { %4698 = vmatmul.mubr.msk.bf16.gmra.mxu0 %vm386_vm0, %v5629_v24  ;;  %4665 = vmatprep.mubr.msk.bf16.mxu1 %vm386_vm0, %v5520_v49  ;;  %v5729_v24 = vpack.c.bf16 %v1874_v41, %v1873_v60 }
 0x1b3   : > { %4701 = vmatprep.mubr.msk.bf16.mxu0 %vm386_vm0, %v5639_v29  ;;  %v5731_v29 = vpack.c.bf16 %v2180_v23, %v2179_v57 }
 0x1b9   : > { %4666 = vmatmul.mubr.msk.bf16.gmra.mxu1 %vm386_vm0, %v5524_v54 }
 0x1ba   : > { %4702 = vmatmul.mubr.msk.bf16.gmra.mxu0 %vm386_vm0, %v5641_v30  ;;  %4669 = vmatprep.mubr.msk.bf16.mxu1 %vm386_vm0, %v5536_v3  ;;  %v4955_v30 = vld [vmem:[#allocation5 + $0x80] sm:$0xff]  }
 0x1bb   : > { %4705 = vmatprep.mubr.msk.bf16.mxu0 %vm386_vm0, %v1272_v44 }
 0x1c1   : > { %4670 = vmatmul.mubr.msk.bf16.gmra.mxu1 %vm386_vm0, %v5540_v5 }
 0x1c2   : > { %4706 = vmatmul.mubr.msk.bf16.gmra.mxu0 %vm386_vm0, %v1273_v45  ;;  %4673 = vmatprep.mubr.msk.bf16.mxu1 %vm386_vm0, %v5552_v19 }
 0x1c3   : > { %4709 = vmatprep.mubr.msk.bf16.mxu0 %vm386_vm0, %v1274_v59 }
 0x1c9   : > { %4674 = vmatmul.mubr.msk.bf16.gmra.mxu1 %vm386_vm0, %v5556_v21 }
 0x1ca   : > { %4710 = vmatmul.mubr.msk.bf16.gmra.mxu0 %vm386_vm0, %v1275_v61  ;;  %4677 = vmatprep.mubr.msk.bf16.mxu1 %vm386_vm0, %v5568_v31 }
 0x1cb   : > { %4713 = vmatprep.mubr.msk.bf16.mxu0 %vm386_vm0, %v1276_v10 }
 0x1d1   : > { %4678 = vmatmul.mubr.msk.bf16.gmra.mxu1 %vm386_vm0, %v5572_v33 }
 0x1d2   : > { %4714 = vmatmul.mubr.msk.bf16.gmra.mxu0 %vm386_vm0, %v1277_v13  ;;  %4681 = vmatprep.mubr.msk.bf16.mxu1 %vm386_vm0, %v5584_v48 }
 0x1d3   : > { %4717 = vmatprep.mubr.msk.bf16.mxu0 %vm386_vm0, %v1278_v26 }
 0x1d9   : > { %4682 = vmatmul.mubr.msk.bf16.gmra.mxu1 %vm386_vm0, %v5729_v24 }
 0x1da   : > { %4718 = vmatmul.mubr.msk.bf16.gmra.mxu0 %vm386_vm0, %v5731_v29  ;;  %4725 = vmatprep.mubr.msk.bf16.mxu1 %vm386_vm0, %v5446_v50 }
 0x1db   : > { %4761 = vmatprep.mubr.msk.bf16.mxu0 %vm386_vm0, %v5436_v46 }
 0x1e1   : > { %v4511_v38 = vpop.f32.mrf.mxu1  ;;  %4726 = vmatmul.mubr.msk.bf16.vlgmr.msra.gmra.mxu1 %vm386_vm0, %v5470_v9 }
 0x1e2   : > { %v4547_v63 = vpop.f32.mrf.mxu0  ;;  %4762 = vmatmul.mubr.msk.bf16.vlgmr.msra.gmra.mxu0 %vm386_vm0, %v5468_v8  ;;  %4794 = vmatpush3.bf16.msra.mxu1 %v4954_v40 }
 0x1e3   : > { %v5745_v43 = vadd.f32 %v4547_v63, %v4511_v38  ;;  %4729 = vmatprep.mubr.msk.bf16.mxu1 %vm386_vm0, %v5477_v16  ;;  %4765 = vmatprep.mubr.msk.bf16.mxu0 %vm386_vm0, %v5475_v15  ;;  %v883_v50 = vpop.f32.mrf.mxu1 }
 0x1e4   : > { %v1104_v46 = vpop.f32.mrf.mxu0  ;;  %4795 = vmatprep.subr.bf16.mxu1 %v4955_v30 }
 0x1e5   : > { %v5751_v44 = vadd.f32 %v1104_v46, %v883_v50  ;;  %v4512_v45 = vpop.f32.mrf.mxu1 }
 0x1e6   : > { %v4548_v47 = vpop.f32.mrf.mxu0  ;;  %4796 = vmatpush3.bf16.msra.mxu1 %v4955_v30 }
 0x1e7   : > { %v5753_v9 = vadd.f32 %v4548_v47, %v4512_v45  ;;  %v886_v8 = vpop.f32.mrf.mxu1 }
 0x1e8   : > { %v1107_v53 = vpop.f32.mrf.mxu0 }
 0x1e9   : > { %v5755_v56 = vadd.f32 %v1107_v53, %v886_v8  ;;  %v4515_v58 = vpop.f32.mrf.mxu1  ;;  %4730 = vmatmul.mubr.msk.bf16.gmra.mxu1 %vm386_vm0, %v5505_v36 }
 0x1ea   : > { %v4551_v59 = vpop.f32.mrf.mxu0  ;;  %4766 = vmatmul.mubr.msk.bf16.gmra.mxu0 %vm386_vm0, %v5503_v35  ;;  %4733 = vmatprep.mubr.msk.bf16.mxu1 %vm386_vm0, %v5509_v42 }
 0x1eb   : > { %v5761_v15 = vadd.f32 %v4551_v59, %v4515_v58  ;;  %4769 = vmatprep.mubr.msk.bf16.mxu0 %vm386_vm0, %v5507_v39  ;;  %v899_v16 = vpop.f32.mrf.mxu1 }
 0x1ec   : > { %v1120_v61 = vpop.f32.mrf.mxu0 }
 0x1ed   : > { %v5767_v1 = vadd.f32 %v1120_v61, %v899_v16  ;;  %v4516_v2 = vpop.f32.mrf.mxu1 }
 0x1ee   : > { %v4552_v7 = vpop.f32.mrf.mxu0 }
 0x1ef   : > { %v5769_v62 = vadd.f32 %v4552_v7, %v4516_v2  ;;  %v902_v36 = vpop.f32.mrf.mxu1 }
 0x1f0   : > { %v1123_v10 = vpop.f32.mrf.mxu0 }
 0x1f1   : > { %v5771_v13 = vadd.f32 %v1123_v10, %v902_v36  ;;  %v4519_v35 = vpop.f32.mrf.mxu1  ;;  %4734 = vmatmul.mubr.msk.bf16.gmra.mxu1 %vm386_vm0, %v5522_v51 }
 0x1f2   : > { %v4555_v14 = vpop.f32.mrf.mxu0  ;;  %4770 = vmatmul.mubr.msk.bf16.gmra.mxu0 %vm386_vm0, %v5520_v49  ;;  %4737 = vmatprep.mubr.msk.bf16.mxu1 %vm386_vm0, %v5526_v55 }
 0x1f3   : > { %v5777_v39 = vadd.f32 %v4555_v14, %v4519_v35  ;;  %4773 = vmatprep.mubr.msk.bf16.mxu0 %vm386_vm0, %v5524_v54  ;;  %v915_v42 = vpop.f32.mrf.mxu1 }
 0x1f4   : > { %v1136_v17 = vpop.f32.mrf.mxu0 }
 0x1f5   : > { %v5783_v18 = vadd.f32 %v1136_v17, %v915_v42  ;;  %v4520_v25 = vpop.f32.mrf.mxu1  ;;  %v2487_v42 = vld [vmem:[#allocation2 + $0x1a0] sm:$0xff] }
 0x1f6   : > { %v4556_v26 = vpop.f32.mrf.mxu0  ;;  %v2792_v17 = vld [vmem:[#allocation2 + $0x199] sm:$0xff] }
 0x1f7   : > { %v5785_v28 = vadd.f32 %v4556_v26, %v4520_v25  ;;  %v918_v51 = vpop.f32.mrf.mxu1  ;;  %v2793_v25 = vld [vmem:[#allocation2 + $0x1a1] sm:$0xff] }
 0x1f8   : > { %v1139_v37 = vpop.f32.mrf.mxu0 }
 0x1f9   : > { %v5787_v40 = vadd.f32 %v1139_v37, %v918_v51  ;;  %v4523_v49 = vpop.f32.mrf.mxu1  ;;  %4738 = vmatmul.mubr.msk.bf16.gmra.mxu1 %vm386_vm0, %v5538_v4 }
 0x1fa   : > { %v4559_v60 = vpop.f32.mrf.mxu0  ;;  %4774 = vmatmul.mubr.msk.bf16.gmra.mxu0 %vm386_vm0, %v5536_v3  ;;  %4741 = vmatprep.mubr.msk.bf16.mxu1 %vm386_vm0, %v5542_v6 }
 0x1fb   : > { %v5793_v54 = vadd.f32 %v4559_v60, %v4523_v49  ;;  %4777 = vmatprep.mubr.msk.bf16.mxu0 %vm386_vm0, %v5540_v5  ;;  %v931_v55 = vpop.f32.mrf.mxu1 }
 0x1fc   : > { %v1152_v41 = vpop.f32.mrf.mxu0 }
 0x1fd   : > { %v5799_v57 = vadd.f32 %v1152_v41, %v931_v55  ;;  %v4524_v23 = vpop.f32.mrf.mxu1 }
 0x1fe   : > { %v4560_v30 = vpop.f32.mrf.mxu0 }
 0x1ff   : > { %v5801_v38 = vadd.f32 %v4560_v30, %v4524_v23  ;;  %v934_v4 = vpop.f32.mrf.mxu1 }
 0x200   : > { %v1155_v63 = vpop.f32.mrf.mxu0 }
 0x201   : > { %v5803_v50 = vadd.f32 %v1155_v63, %v934_v4  ;;  %v4527_v3 = vpop.f32.mrf.mxu1  ;;  %4742 = vmatmul.mubr.msk.bf16.gmra.mxu1 %vm386_vm0, %v5554_v20 }
 0x202   : > { %v4563_v46 = vpop.f32.mrf.mxu0  ;;  %4778 = vmatmul.mubr.msk.bf16.gmra.mxu0 %vm386_vm0, %v5552_v19  ;;  %4745 = vmatprep.mubr.msk.bf16.mxu1 %vm386_vm0, %v5558_v22 }
 0x203   : > { %v5809_v5 = vadd.f32 %v4563_v46, %v4527_v3  ;;  %4781 = vmatprep.mubr.msk.bf16.mxu0 %vm386_vm0, %v5556_v21  ;;  %v947_v6 = vpop.f32.mrf.mxu1 }
 0x204   : > { %v1168_v45 = vpop.f32.mrf.mxu0 }
 0x205   : > { %v5815_v47 = vadd.f32 %v1168_v45, %v947_v6  ;;  %v4528_v8 = vpop.f32.mrf.mxu1 }
 0x206   : > { %v4564_v53 = vpop.f32.mrf.mxu0 }
 0x207   : > { %v5817_v58 = vadd.f32 %v4564_v53, %v4528_v8  ;;  %v5819_v20 = vpop.f32.mrf.mxu1 }
 0x208   : > { %v5821_v59 = vpop.f32.mrf.mxu0 }
 0x209   : > { %v4531_v19 = vpop.f32.mrf.mxu1  ;;  %4746 = vmatmul.mubr.msk.bf16.gmra.mxu1 %vm386_vm0, %v5570_v32 }
 0x20a   : > { %v4567_v16 = vpop.f32.mrf.mxu0  ;;  %4782 = vmatmul.mubr.msk.bf16.gmra.mxu0 %vm386_vm0, %v5568_v31  ;;  %4749 = vmatprep.mubr.msk.bf16.mxu1 %vm386_vm0, %v5574_v34 }
 0x20b   : > { %v5827_v21 = vadd.f32 %v4567_v16, %v4531_v19  ;;  %4785 = vmatprep.mubr.msk.bf16.mxu0 %vm386_vm0, %v5572_v33  ;;  %v963_v22 = vpop.f32.mrf.mxu1  ;;  %v2486_v33 = vld [vmem:[#allocation2 + $0x198] sm:$0xff] }
 0x20c   : > { %v1184_v61 = vpop.f32.mrf.mxu0  ;;  %v2503_v60 = vpack.c.bf16 %v2487_v42, %v2486_v33 }
 0x20d   : > { %v5833_v2 = vadd.f32 %v1184_v61, %v963_v22  ;;  %v4532_v7 = vpop.f32.mrf.mxu1 }
 0x20e   : > { %v4568_v36 = vpop.f32.mrf.mxu0 }
 0x20f   : > { %v5835_v10 = vadd.f32 %v4568_v36, %v4532_v7  ;;  %v5837_v32 = vpop.f32.mrf.mxu1 }
 0x210   : > { %v5839_v35 = vpop.f32.mrf.mxu0 }
 0x211   : > { %v4535_v31 = vpop.f32.mrf.mxu1  ;;  %4750 = vmatmul.mubr.msk.bf16.gmra.mxu1 %vm386_vm0, %v5586_v52 }
 0x212   : > { %v4571_v14 = vpop.f32.mrf.mxu0  ;;  %4786 = vmatmul.mubr.msk.bf16.gmra.mxu0 %vm386_vm0, %v5584_v48  ;;  %4753 = vmatprep.mubr.msk.bf16.mxu1 %vm386_vm0, %v5669_v27  ;;  %v2809_v48 = vpack.c.bf16 %v2793_v25, %v2792_v17  ;;  %v3076_v17 = vld [vmem:[#allocation2 + $0x92] sm:$0xff]  ;;  %v3077_v25 = vld [vmem:[#allocation2 + $0x9a] sm:$0xff] }
 0x213   : > { %v5845_v34 = vadd.f32 %v4571_v14, %v4535_v31  ;;  %4789 = vmatprep.mubr.msk.bf16.mxu0 %vm386_vm0, %v5729_v24  ;;  %v979_v26 = vpop.f32.mrf.mxu1  ;;  %v3074_v31 = vld [vmem:[#allocation2 + $0x7a] sm:$0xff]  ;;  %v3075_v14 = vld [vmem:[#allocation2 + $0x82] sm:$0xff] }
 0x214   : > { %v1200_v51 = vpop.f32.mrf.mxu0 }
 0x215   : > { %v5851_v37 = vadd.f32 %v1200_v51, %v979_v26  ;;  %v4536_v52 = vpop.f32.mrf.mxu1 }
 0x216   : > { %v4572_v49 = vpop.f32.mrf.mxu0 }
 0x217   : > { %v5853_v55 = vadd.f32 %v4572_v49, %v4536_v52  ;;  %v5855_v41 = vpop.f32.mrf.mxu1 }
 0x218   : > { %v5857_v23 = vpop.f32.mrf.mxu0 }
 0x219   : > { %v4539_v27 = vpop.f32.mrf.mxu1  ;;  %4754 = vmatmul.mubr.msk.bf16.gmra.mxu1 %vm386_vm0, %v2503_v60 }
 0x21a   : > { %v4575_v30 = vpop.f32.mrf.mxu0  ;;  %4790 = vmatmul.mubr.msk.bf16.gmra.mxu0 %vm386_vm0, %v2809_v48  ;;  %4797 = vmatprep.mubr.msk.bf16.mxu1 %vm386_vm0, %v5597_v0 }
 0x21b   : > { %v5861_v24 = vadd.f32 %v4575_v30, %v4539_v27  ;;  %v995_v4 = vpop.f32.mrf.mxu1 }
 0x21c   : > { %v1216_v63 = vpop.f32.mrf.mxu0 }
 0x21d   : > { %v5865_v3 = vadd.f32 %v1216_v63, %v995_v4  ;;  %v4540_v46 = vpop.f32.mrf.mxu1 }
 0x21e   : > { %v4576_v6 = vpop.f32.mrf.mxu0 }
 0x21f   : > { %v5867_v45 = vadd.f32 %v4576_v6, %v4540_v46  ;;  %v5869_v8 = vpop.f32.mrf.mxu1  ;;  %v3078_v46 = vld [vmem:[#allocation2 + $0xaa] sm:$0xff]  ;;  %v3079_v6 = vld [vmem:[#allocation2 + $0xb2] sm:$0xff] }
 0x220   : > { %v5871_v53 = vpop.f32.mrf.mxu0 }
 0x221   : > { %v4583_v19 = vpop.f32.mrf.mxu1  ;;  %4798 = vmatmul.mubr.msk.bf16.vlgmr.msra.gmra.mxu1 %vm386_vm0, %v5611_v11 }
 0x222   : > { %v4619_v16 = vpop.f32.mrf.mxu0  ;;  %v1507_v22 = vadd.f32 %v4583_v19, %v5745_v43  ;;  %4801 = vmatprep.mubr.msk.bf16.mxu1 %vm386_vm0, %v5616_v12  ;;  %v3103_v12 = vpack.c.bf16 %v3075_v14, %v3074_v31  ;;  %v3105_v31 = vpack.c.bf16 %v3079_v6, %v3078_v46 }
 0x223   : > { %v1378_v0 = vpop.f32.mrf.mxu1 }
 0x224   : > { %v1684_v61 = vpop.f32.mrf.mxu0  ;;  %v5878_v7 = vadd.f32 %v4619_v16, %v1507_v22  ;;  %v1505_v36 = vadd.f32 %v1378_v0, %v5751_v44  ;;  %v3104_v44 = vpack.c.bf16 %v3077_v25, %v3076_v17  ;;  %v3080_v16 = vld [vmem:[#allocation2 + $0xc2] sm:$0xff]  ;;  %v3081_v22 = vld [vmem:[#allocation2 + $0xca] sm:$0xff] }
 0x225   : > { %v4584_v33 = vpop.f32.mrf.mxu1 }
 0x226   : > { %v4620_v42 = vpop.f32.mrf.mxu0  ;;  %v5881_v26 = vadd.f32 %v1684_v61, %v1505_v36  ;;  %v1508_v11 = vadd.f32 %v4584_v33, %v5753_v9 }
 0x227   : > { %v1381_v43 = vpop.f32.mrf.mxu1 }
 0x228   : > { %v5884_v51 = vpop.f32.mrf.mxu0  ;;  %v5886_v52 = vadd.f32 %v4620_v42, %v1508_v11  ;;  %v5889_v49 = vadd.f32 %v1381_v43, %v5755_v56 }
 0x229   : > { %v4587_v60 = vpop.f32.mrf.mxu1  ;;  %4802 = vmatmul.mubr.msk.bf16.gmra.mxu1 %vm386_vm0, %v3103_v12 }
 0x22a   : > { %v4623_v48 = vpop.f32.mrf.mxu0  ;;  %v1511_v27 = vadd.f32 %v4587_v60, %v5761_v15  ;;  %4805 = vmatprep.mubr.msk.bf16.mxu1 %vm386_vm0, %v3104_v44  ;;  %v3082_v44 = vld [vmem:[#allocation2 + $0xda] sm:$0xff]  ;;  %v3083_v60 = vld [vmem:[#allocation2 + $0xe2] sm:$0xff] }
 0x22b   : > { %v1394_v30 = vpop.f32.mrf.mxu1  ;;  %v3107_v6 = vpack.c.bf16 %v3083_v60, %v3082_v44 }
 0x22c   : > { %v1700_v9 = vpop.f32.mrf.mxu0  ;;  %v5894_v4 = vadd.f32 %v4623_v48, %v1511_v27  ;;  %v1509_v63 = vadd.f32 %v1394_v30, %v5767_v1  ;;  %v3106_v1 = vpack.c.bf16 %v3081_v22, %v3080_v16  ;;  %v3084_v27 = vld [vmem:[#allocation2 + $0xf2] sm:$0xff]  ;;  %v3085_v30 = vld [vmem:[#allocation2 + $0xfa] sm:$0xff] }
 0x22d   : > { %v4588_v19 = vpop.f32.mrf.mxu1 }
 0x22e   : > { %v4624_v56 = vpop.f32.mrf.mxu0  ;;  %v5897_v0 = vadd.f32 %v1700_v9, %v1509_v63  ;;  %v1512_v61 = vadd.f32 %v4588_v19, %v5769_v62 }
 0x22f   : > { %v1397_v36 = vpop.f32.mrf.mxu1 }
 0x230   : > { %v5900_v15 = vpop.f32.mrf.mxu0  ;;  %v5902_v14 = vadd.f32 %v4624_v56, %v1512_v61  ;;  %v5905_v33 = vadd.f32 %v1397_v36, %v5771_v13 }
 0x231   : > { %v4591_v42 = vpop.f32.mrf.mxu1  ;;  %4806 = vmatmul.mubr.msk.bf16.gmra.mxu1 %vm386_vm0, %v3105_v31 }
 0x232   : > { %v4627_v17 = vpop.f32.mrf.mxu0  ;;  %v1515_v25 = vadd.f32 %v4591_v42, %v5777_v39  ;;  %4809 = vmatprep.mubr.msk.bf16.mxu1 %vm386_vm0, %v3106_v1  ;;  %v3086_v42 = vld [vmem:[#allocation2 + $0x10a] sm:$0xff] }
 0x233   : > { %v1410_v11 = vpop.f32.mrf.mxu1 }
 0x234   : > { %v1716_v62 = vpop.f32.mrf.mxu0  ;;  %v5910_v43 = vadd.f32 %v4627_v17, %v1515_v25  ;;  %v1513_v12 = vadd.f32 %v1410_v11, %v5783_v18  ;;  %v3108_v18 = vpack.c.bf16 %v3085_v30, %v3084_v27  ;;  %v3087_v17 = vld [vmem:[#allocation2 + $0x112] sm:$0xff]  ;;  %v3088_v11 = vld [vmem:[#allocation2 + $0x122] sm:$0xff] }
 0x235   : > { %v4592_v48 = vpop.f32.mrf.mxu1 }
 0x236   : > { %v4628_v13 = vpop.f32.mrf.mxu0  ;;  %v5913_v9 = vadd.f32 %v1716_v62, %v1513_v12  ;;  %v1516_v63 = vadd.f32 %v4592_v48, %v5785_v28  ;;  %v3089_v62 = vld [vmem:[#allocation2 + $0x12a] sm:$0xff]  ;;  %v3109_v48 = vpack.c.bf16 %v3087_v17, %v3086_v42  ;;  %v1172_v42 = vadd.f32 %v5821_v59, %v5819_v20 }
 0x237   : > { %v1413_v46 = vpop.f32.mrf.mxu1 }
 0x238   : > { %v5916_v39 = vpop.f32.mrf.mxu0  ;;  %v5918_v19 = vadd.f32 %v4628_v13, %v1516_v63  ;;  %v5921_v56 = vadd.f32 %v1413_v46, %v5787_v40 }
 0x239   : > { %v4595_v16 = vpop.f32.mrf.mxu1  ;;  %4810 = vmatmul.mubr.msk.bf16.gmra.mxu1 %vm386_vm0, %v3107_v6 }
 0x23a   : > { %v4631_v22 = vpop.f32.mrf.mxu0  ;;  %v1519_v61 = vadd.f32 %v4595_v16, %v5793_v54  ;;  %4813 = vmatprep.mubr.msk.bf16.mxu1 %vm386_vm0, %v3108_v18 }
 0x23b   : > { %v1426_v36 = vpop.f32.mrf.mxu1 }
 0x23c   : > { %v1732_v28 = vpop.f32.mrf.mxu0  ;;  %v5926_v31 = vadd.f32 %v4631_v22, %v1519_v61  ;;  %v1517_v1 = vadd.f32 %v1426_v36, %v5799_v57  ;;  %v3110_v57 = vpack.c.bf16 %v3089_v62, %v3088_v11  ;;  %v3090_v22 = vld [vmem:[#allocation2 + $0x13a] sm:$0xff]  ;;  %v3091_v61 = vld [vmem:[#allocation2 + $0x142] sm:$0xff] }
 0x23d   : > { %v4596_v25 = vpop.f32.mrf.mxu1  ;;  %v3111_v11 = vpack.c.bf16 %v3091_v61, %v3090_v22  ;;  %v1188_v61 = vadd.f32 %v5839_v35, %v5837_v32  ;;  %v3099_v35 = vld [vmem:[#allocation2 + $0x1a2] sm:$0xff] }
 0x23e   : > { %v4632_v40 = vpop.f32.mrf.mxu0  ;;  %v5929_v12 = vadd.f32 %v1732_v28, %v1517_v1  ;;  %v1520_v44 = vadd.f32 %v4596_v25, %v5801_v38  ;;  %v3092_v28 = vld [vmem:[#allocation2 + $0x152] sm:$0xff]  ;;  %v3093_v1 = vld [vmem:[#allocation2 + $0x15a] sm:$0xff] }
 0x23f   : > { %v1429_v60 = vpop.f32.mrf.mxu1 }
 0x240   : > { %v5932_v54 = vpop.f32.mrf.mxu0  ;;  %v5934_v13 = vadd.f32 %v4632_v40, %v1520_v44  ;;  %v5937_v27 = vadd.f32 %v1429_v60, %v5803_v50 }
 0x241   : > { %v4599_v30 = vpop.f32.mrf.mxu1  ;;  %4814 = vmatmul.mubr.msk.bf16.gmra.mxu1 %vm386_vm0, %v3109_v48 }
 0x242   : > { %v4635_v63 = vpop.f32.mrf.mxu0  ;;  %v1523_v46 = vadd.f32 %v4599_v30, %v5809_v5  ;;  %4817 = vmatprep.mubr.msk.bf16.mxu1 %vm386_vm0, %v3110_v57 }
 0x243   : > { %v1442_v6 = vpop.f32.mrf.mxu1 }
 0x244   : > { %v1748_v38 = vpop.f32.mrf.mxu0  ;;  %v5942_v18 = vadd.f32 %v4635_v63, %v1523_v46  ;;  %v1521_v16 = vadd.f32 %v1442_v6, %v5815_v47  ;;  %v3112_v47 = vpack.c.bf16 %v3093_v1, %v3092_v28  ;;  %v3094_v46 = vld [vmem:[#allocation2 + $0x16a] sm:$0xff]  ;;  %v3095_v6 = vld [vmem:[#allocation2 + $0x172] sm:$0xff] }
 0x245   : > { %v4600_v36 = vpop.f32.mrf.mxu1  ;;  %v3113_v1 = vpack.c.bf16 %v3095_v6, %v3094_v46 }
 0x246   : > { %v4636_v50 = vpop.f32.mrf.mxu0  ;;  %v5947_v17 = vadd.f32 %v1748_v38, %v1521_v16  ;;  %v1524_v5 = vadd.f32 %v4600_v36, %v5817_v58  ;;  %v4956_v38 = vld [vmem:[%s6864_s5 + $0x38] sm:$0xff]  }
 0x247   : > { %v1445_v25 = vpop.f32.mrf.mxu1  ;;  %4829 = vmatprep.subr.bf16.mxu0 %v4956_v38 }
 0x248   : > { %v1751_v40 = vpop.f32.mrf.mxu0  ;;  %v5950_v62 = vadd.f32 %v4636_v50, %v1524_v5  ;;  %v1522_v44 = vadd.f32 %v1445_v25, %v1172_v42  ;;  %4830 = vmatpush3.bf16.msra.mxu0 %v4956_v38 }
 0x249   : > { %v4603_v60 = vpop.f32.mrf.mxu1  ;;  %4818 = vmatmul.mubr.msk.bf16.gmra.mxu1 %vm386_vm0, %v3111_v11 }
 0x24a   : > { %v4639_v48 = vpop.f32.mrf.mxu0  ;;  %v5953_v57 = vadd.f32 %v1751_v40, %v1522_v44  ;;  %v1527_v30 = vadd.f32 %v4603_v60, %v5827_v21  ;;  %4821 = vmatprep.mubr.msk.bf16.mxu1 %vm386_vm0, %v3112_v47 }
 0x24b   : > { %v1458_v20 = vpop.f32.mrf.mxu1 }
 0x24c   : > { %v1764_v59 = vpop.f32.mrf.mxu0  ;;  %v5957_v58 = vadd.f32 %v4639_v48, %v1527_v30  ;;  %v1525_v63 = vadd.f32 %v1458_v20, %v5833_v2  ;;  %v4957_v48 = vld [vmem:[%s6864_s5 + $0x30] sm:$0xff]  }
 0x24d   : > { %v4604_v16 = vpop.f32.mrf.mxu1  ;;  %4831 = vmatprep.subr.bf16.mxu0 %v4957_v48 }
 0x24e   : > { %v4640_v22 = vpop.f32.mrf.mxu0  ;;  %v5965_v21 = vadd.f32 %v1764_v59, %v1525_v63  ;;  %v1528_v36 = vadd.f32 %v4604_v16, %v5835_v10  ;;  %v3098_v10 = vld [vmem:[#allocation2 + $0x19a] sm:$0xff]  ;;  %4832 = vmatpush3.bf16.msra.mxu0 %v4957_v48 }
 0x24f   : > { %v1461_v50 = vpop.f32.mrf.mxu1  ;;  %v3115_v59 = vpack.c.bf16 %v3099_v35, %v3098_v10 }
 0x250   : > { %v1767_v28 = vpop.f32.mrf.mxu0  ;;  %v5968_v2 = vadd.f32 %v4640_v22, %v1528_v36  ;;  %v1526_v42 = vadd.f32 %v1461_v50, %v1188_v61 }
 0x251   : > { %v4607_v5 = vpop.f32.mrf.mxu1  ;;  %4822 = vmatmul.mubr.msk.bf16.gmra.mxu1 %vm386_vm0, %v3113_v1 }
 0x252   : > { %v4643_v25 = vpop.f32.mrf.mxu0  ;;  %v5971_v40 = vadd.f32 %v1767_v28, %v1526_v42  ;;  %v1531_v32 = vadd.f32 %v4607_v5, %v5845_v34  ;;  %4825 = vmatprep.mubr.msk.bf16.mxu1 %vm386_vm0, %v5731_v29  ;;  %v1204_v34 = vadd.f32 %v5857_v23, %v5855_v41  ;;  %v4958_v41 = vld [vmem:[%s6864_s5 + $0x28] sm:$0xff]   ;;  %v1220_v5 = vadd.f32 %v5871_v53, %v5869_v8 }
 0x253   : > { %v1474_v11 = vpop.f32.mrf.mxu1  ;;  %4833 = vmatprep.subr.bf16.mxu0 %v4958_v41 }
 0x254   : > { %v1780_v44 = vpop.f32.mrf.mxu0  ;;  %v5976_v47 = vadd.f32 %v4643_v25, %v1531_v32  ;;  %v1529_v60 = vadd.f32 %v1474_v11, %v5851_v37  ;;  %4834 = vmatpush3.bf16.msra.mxu0 %v4958_v41 }
 0x255   : > { %v4608_v30 = vpop.f32.mrf.mxu1 }
 0x256   : > { %v4644_v20 = vpop.f32.mrf.mxu0  ;;  %v5984_v63 = vadd.f32 %v1780_v44, %v1529_v60  ;;  %v1532_v29 = vadd.f32 %v4608_v30, %v5853_v55 }
 0x257   : > { %v1477_v46 = vpop.f32.mrf.mxu1 }
 0x258   : > { %v1783_v6 = vpop.f32.mrf.mxu0  ;;  %v5987_v38 = vadd.f32 %v4644_v20, %v1532_v29  ;;  %v1530_v37 = vadd.f32 %v1477_v46, %v1204_v34 }
 0x259   : > { %v4611_v16 = vpop.f32.mrf.mxu1  ;;  %4826 = vmatmul.mubr.msk.bf16.gmra.mxu1 %vm386_vm0, %v3115_v59 }
 0x25a   : > { %v4647_v22 = vpop.f32.mrf.mxu0  ;;  %v5990_v61 = vadd.f32 %v1783_v6, %v1530_v37  ;;  %v1535_v36 = vadd.f32 %v4611_v16, %v5861_v24 }
 0x25b   : > { %v1490_v55 = vpop.f32.mrf.mxu1 }
 0x25c   : > { %v1796_v23 = vpop.f32.mrf.mxu0  ;;  %v5996_v50 = vadd.f32 %v4647_v22, %v1535_v36  ;;  %v1533_v28 = vadd.f32 %v1490_v55, %v5865_v3 }
 0x25d   : > { %v4612_v1 = vpop.f32.mrf.mxu1 }
 0x25e   : > { %v4648_v42 = vpop.f32.mrf.mxu0  ;;  %v6001_v25 = vadd.f32 %v1796_v23, %v1533_v28  ;;  %v1536_v24 = vadd.f32 %v4612_v1, %v5867_v45  ;;  %v1812_v45 = vadd.f32 %v5884_v51, %v5889_v49 }
 0x25f   : > { %v1493_v32 = vpop.f32.mrf.mxu1 }
 0x260   : > { %v1799_v10 = vpop.f32.mrf.mxu0  ;;  %v6004_v35 = vadd.f32 %v4648_v42, %v1536_v24  ;;  %v1534_v11 = vadd.f32 %v1493_v32, %v1220_v5 }
 0x261   : > { %v4655_v44 = vpop.f32.mrf.mxu1 }
 0x262   : > { %v4691_v60 = vpop.f32.mrf.mxu0  ;;  %v6006_v48 = vadd.f32 %v1799_v10, %v1534_v11  ;;  %v2119_v3 = vadd.f32 %v4655_v44, %v5878_v7 }
 0x263   : > { %v1990_v30 = vpop.f32.mrf.mxu1 }
 0x264   : > { %v2296_v20 = vpop.f32.mrf.mxu0  ;;  %v6009_v59 = vadd.f32 %v4691_v60, %v2119_v3  ;;  %v2117_v8 = vadd.f32 %v1990_v30, %v5881_v26 }
 0x265   : > { %v4656_v53 = vpop.f32.mrf.mxu1 }
 0x266   : > { %v6012_v34 = vpop.f32.mrf.mxu0  ;;  %v6016_v29 = vadd.f32 %v2296_v20, %v2117_v8  ;;  %v6019_v46 = vadd.f32 %v4656_v53, %v5886_v52  ;;  %v1816_v52 = vadd.f32 %v5900_v15, %v5905_v33 }
 0x267   : > { %v1993_v6 = vpop.f32.mrf.mxu1 }
 0x268   : > { %v6021_v37 = vpop.f32.mrf.mxu0  ;;  %v6023_v7 = vadd.f32 %v1993_v6, %v1812_v45 }
 0x269   : > { %v4659_v16 = vpop.f32.mrf.mxu1 }
 0x26a   : > { %v4695_v22 = vpop.f32.mrf.mxu0  ;;  %v2123_v26 = vadd.f32 %v4659_v16, %v5894_v4 }
 0x26b   : > { %v2006_v36 = vpop.f32.mrf.mxu1 }
 0x26c   : > { %v2312_v41 = vpop.f32.mrf.mxu0  ;;  %v6026_v55 = vadd.f32 %v4695_v22, %v2123_v26  ;;  %v2121_v51 = vadd.f32 %v2006_v36, %v5897_v0 }
 0x26d   : > { %v4660_v49 = vpop.f32.mrf.mxu1 }
 0x26e   : > { %v4696_v23 = vpop.f32.mrf.mxu0  ;;  %v6031_v28 = vadd.f32 %v2312_v41, %v2121_v51  ;;  %v2124_v1 = vadd.f32 %v4660_v49, %v5902_v14  ;;  %v1820_v14 = vadd.f32 %v5916_v39, %v5921_v56 }
 0x26f   : > { %v2009_v42 = vpop.f32.mrf.mxu1 }
 0x270   : > { %v2315_v5 = vpop.f32.mrf.mxu0  ;;  %v6034_v24 = vadd.f32 %v4696_v23, %v2124_v1  ;;  %v2122_v4 = vadd.f32 %v2009_v42, %v1816_v52 }
 0x271   : > { %v4663_v32 = vpop.f32.mrf.mxu1 }
 0x272   : > { %v4699_v10 = vpop.f32.mrf.mxu0  ;;  %v6036_v11 = vadd.f32 %v2315_v5, %v2122_v4  ;;  %v2127_v0 = vadd.f32 %v4663_v32, %v5910_v43  ;;  %v4959_v4 = vld [vmem:[%s6864_s5 + $0x20] sm:$0xff]  }
 0x273   : > { %v2022_v44 = vpop.f32.mrf.mxu1  ;;  %4835 = vmatprep.subr.bf16.mxu0 %v4959_v4 }
 0x274   : > { %v2328_v60 = vpop.f32.mrf.mxu0  ;;  %v6039_v3 = vadd.f32 %v4699_v10, %v2127_v0  ;;  %v2125_v15 = vadd.f32 %v2022_v44, %v5913_v9  ;;  %4836 = vmatpush3.bf16.msra.mxu0 %v4959_v4 }
 0x275   : > { %v4664_v33 = vpop.f32.mrf.mxu1 }
 0x276   : > { %v4700_v30 = vpop.f32.mrf.mxu0  ;;  %v6044_v20 = vadd.f32 %v2328_v60, %v2125_v15  ;;  %v2128_v8 = vadd.f32 %v4664_v33, %v5918_v19  ;;  %v1824_v19 = vadd.f32 %v5932_v54, %v5937_v27 }
 0x277   : > { %v2025_v53 = vpop.f32.mrf.mxu1 }
 0x278   : > { %v2331_v45 = vpop.f32.mrf.mxu0  ;;  %v6047_v6 = vadd.f32 %v4700_v30, %v2128_v8  ;;  %v2126_v43 = vadd.f32 %v2025_v53, %v1820_v14  ;;  %v4960_v14 = vld [vmem:[%s6864_s5 + $0x18] sm:$0xff]  }
 0x279   : > { %v4667_v16 = vpop.f32.mrf.mxu1  ;;  %4837 = vmatprep.subr.bf16.mxu0 %v4960_v14 }
 0x27a   : > { %v4703_v22 = vpop.f32.mrf.mxu0  ;;  %v6049_v26 = vadd.f32 %v2331_v45, %v2126_v43  ;;  %v2131_v9 = vadd.f32 %v4667_v16, %v5926_v31  ;;  %4838 = vmatpush3.bf16.msra.mxu0 %v4960_v14 }
 0x27b   : > { %v2038_v36 = vpop.f32.mrf.mxu1 }
 0x27c   : > { %v2344_v41 = vpop.f32.mrf.mxu0  ;;  %v6052_v51 = vadd.f32 %v4703_v22, %v2131_v9  ;;  %v2129_v39 = vadd.f32 %v2038_v36, %v5929_v12  ;;  %v4962_v9 = vld [vmem:[%s6864_s5 + $0x8] sm:$0xff]  }
 0x27d   : > { %v4668_v56 = vpop.f32.mrf.mxu1 }
 0x27e   : > { %v4704_v49 = vpop.f32.mrf.mxu0  ;;  %v6057_v23 = vadd.f32 %v2344_v41, %v2129_v39  ;;  %v2132_v52 = vadd.f32 %v4668_v56, %v5934_v13 }
 0x27f   : > { %v2041_v1 = vpop.f32.mrf.mxu1 }
 0x280   : > { %v2347_v42 = vpop.f32.mrf.mxu0  ;;  %v6060_v5 = vadd.f32 %v4704_v49, %v2132_v52  ;;  %v2130_v31 = vadd.f32 %v2041_v1, %v1824_v19 }
 0x281   : > { %v4671_v32 = vpop.f32.mrf.mxu1 }
 0x282   : > { %v4707_v12 = vpop.f32.mrf.mxu0  ;;  %v6065_v10 = vadd.f32 %v2347_v42, %v2130_v31  ;;  %v2135_v0 = vadd.f32 %v4671_v32, %v5942_v18  ;;  %v4961_v18 = vld [vmem:[%s6864_s5 + $0x10] sm:$0xff]  }
 0x283   : > { %v2054_v54 = vpop.f32.mrf.mxu1  ;;  %4839 = vmatprep.subr.bf16.mxu0 %v4961_v18 }
 0x284   : > { %v2360_v27 = vpop.f32.mrf.mxu0  ;;  %v6068_v13 = vadd.f32 %v4707_v12, %v2135_v0  ;;  %v2133_v44 = vadd.f32 %v2054_v54, %v5947_v17  ;;  %4840 = vmatpush3.bf16.msra.mxu0 %v4961_v18  ;;  %v4963_v0 = vld [vmem:[%s6864_s5] sm:$0xff]  }
 0x285   : > { %v4672_v60 = vpop.f32.mrf.mxu1  ;;  %4841 = vmatprep.subr.bf16.mxu0 %v4962_v9 }
 0x286   : > { %v4708_v15 = vpop.f32.mrf.mxu0  ;;  %v6071_v33 = vadd.f32 %v2360_v27, %v2133_v44  ;;  %v2136_v30 = vadd.f32 %v4672_v60, %v5950_v62 }
 0x287   : > { %v2057_v8 = vpop.f32.mrf.mxu1 }
 0x288   : > { %v2363_v53 = vpop.f32.mrf.mxu0  ;;  %v6080_v45 = vadd.f32 %v4708_v15, %v2136_v30  ;;  %v2134_v17 = vadd.f32 %v2057_v8, %v5953_v57  ;;  %4842 = vmatpush3.bf16.msra.mxu0 %v4962_v9 }
 0x289   : > { %v4675_v43 = vpop.f32.mrf.mxu1  ;;  %4843 = vmatprep.subr.bf16.mxu0 %v4963_v0 }
 0x28a   : > { %v4711_v16 = vpop.f32.mrf.mxu0  ;;  %v6083_v22 = vadd.f32 %v2363_v53, %v2134_v17  ;;  %v2139_v62 = vadd.f32 %v4675_v43, %v5957_v58 }
 0x28b   : > { %v2070_v36 = vpop.f32.mrf.mxu1 }
 0x28c   : > { %v2376_v41 = vpop.f32.mrf.mxu0  ;;  %v6089_v39 = vadd.f32 %v4711_v16, %v2139_v62  ;;  %v2137_v56 = vadd.f32 %v2070_v36, %v5965_v21  ;;  %4844 = vmatpush3.bf16.msra.mxu0 %v4963_v0 }
 0x28d   : > { %v4676_v57 = vpop.f32.mrf.mxu1 }
 0x28e   : > { %v4712_v49 = vpop.f32.mrf.mxu0  ;;  %v6092_v19 = vadd.f32 %v2376_v41, %v2137_v56  ;;  %v2140_v52 = vadd.f32 %v4676_v57, %v5968_v2 }
 0x28f   : > { %v2073_v58 = vpop.f32.mrf.mxu1 }
 0x290   : > { %v2379_v1 = vpop.f32.mrf.mxu0  ;;  %v6095_v42 = vadd.f32 %v4712_v49, %v2140_v52  ;;  %v2138_v31 = vadd.f32 %v2073_v58, %v5971_v40 }
 0x291   : > { %v4679_v4 = vpop.f32.mrf.mxu1 }
 0x292   : > { %v4715_v32 = vpop.f32.mrf.mxu0  ;;  %v6098_v12 = vadd.f32 %v2379_v1, %v2138_v31  ;;  %v2143_v21 = vadd.f32 %v4679_v4, %v5976_v47 }
 0x293   : > { %v2086_v54 = vpop.f32.mrf.mxu1 }
 0x294   : > { %v2392_v2 = vpop.f32.mrf.mxu0  ;;  %v6104_v27 = vadd.f32 %v4715_v32, %v2143_v21  ;;  %v2141_v44 = vadd.f32 %v2086_v54, %v5984_v63 }
 0x295   : > { %v4680_v60 = vpop.f32.mrf.mxu1 }
 0x296   : > { %v4716_v40 = vpop.f32.mrf.mxu0  ;;  %v6107_v15 = vadd.f32 %v2392_v2, %v2141_v44  ;;  %v2144_v30 = vadd.f32 %v4680_v60, %v5987_v38 }
 0x297   : > { %v2089_v14 = vpop.f32.mrf.mxu1 }
 0x298   : > { %v2395_v47 = vpop.f32.mrf.mxu0  ;;  %v6110_v18 = vadd.f32 %v4716_v40, %v2144_v30  ;;  %v2142_v8 = vadd.f32 %v2089_v14, %v5990_v61 }
 0x299   : > { %v4683_v53 = vpop.f32.mrf.mxu1 }
 0x29a   : > { %v4719_v17 = vpop.f32.mrf.mxu0  ;;  %v6113_v43 = vadd.f32 %v2395_v47, %v2142_v8  ;;  %v2147_v63 = vadd.f32 %v4683_v53, %v5996_v50 }
 0x29b   : > { %v2102_v16 = vpop.f32.mrf.mxu1 }
 0x29c   : > { %v2408_v62 = vpop.f32.mrf.mxu0  ;;  %v6116_v9 = vadd.f32 %v4719_v17, %v2147_v63  ;;  %v2145_v36 = vadd.f32 %v2102_v16, %v6001_v25 }
 0x29d   : > { %v4684_v41 = vpop.f32.mrf.mxu1 }
 0x29e   : > { %v4720_v38 = vpop.f32.mrf.mxu0  ;;  %v6119_v56 = vadd.f32 %v2408_v62, %v2145_v36  ;;  %v2148_v57 = vadd.f32 %v4684_v41, %v6004_v35 }
 0x29f   : > { %v2105_v49 = vpop.f32.mrf.mxu1 }
 0x2a0   : > { %v2411_v61 = vpop.f32.mrf.mxu0  ;;  %v6122_v52 = vadd.f32 %v4720_v38, %v2148_v57  ;;  %v2146_v58 = vadd.f32 %v2105_v49, %v6006_v48 }
 0x2a1   : > { %v4727_v1 = vpop.f32.mrf.mxu1 }
 0x2a2   : > { %v6125_v50 = vpop.f32.mrf.mxu0  ;;  %v6127_v31 = vadd.f32 %v2411_v61, %v2146_v58  ;;  %v6130_v4 = vadd.f32 %v4727_v1, %v6009_v59 }
 0x2a3   : > { %v2603_v25 = vpop.f32.mrf.mxu1 }
 0x2a4   : > { %v6132_v32 = vpop.f32.mrf.mxu0  ;;  %v6135_v21 = vadd.f32 %v2603_v25, %v6016_v29 }
 0x2a5   : > { %v6137_v35 = vpop.f32.mrf.mxu1 }
 0x2a6   : > { %v6139_v0 = vpop.f32.mrf.mxu0 }
 0x2a7   : > { %v6141_v54 = vpop.f32.mrf.mxu1 }
 0x2a8   : > { %v6143_v48 = vpop.f32.mrf.mxu0 }
 0x2a9   : > { %v4731_v2 = vpop.f32.mrf.mxu1 }
 0x2aa   : > { %v6145_v44 = vpop.f32.mrf.mxu0  ;;  %v6148_v59 = vadd.f32 %v4731_v2, %v6026_v55 }
 0x2ab   : > { %v2619_v60 = vpop.f32.mrf.mxu1 }
 0x2ac   : > { %v6150_v40 = vpop.f32.mrf.mxu0  ;;  %v6153_v29 = vadd.f32 %v2619_v60, %v6031_v28 }
 0x2ad   : > { %v4732_v30 = vpop.f32.mrf.mxu1 }
 0x2ae   : > { %v6155_v14 = vpop.f32.mrf.mxu0  ;;  %v6158_v47 = vadd.f32 %v4732_v30, %v6034_v24 }
 0x2af   : > { %v2622_v8 = vpop.f32.mrf.mxu1 }
 0x2b0   : > { %v6160_v53 = vpop.f32.mrf.mxu0  ;;  %v6163_v17 = vadd.f32 %v2622_v8, %v6036_v11 }
 0x2b1   : > { %v4735_v55 = vpop.f32.mrf.mxu1 }
 0x2b2   : > { %v6165_v63 = vpop.f32.mrf.mxu0  ;;  %v6168_v16 = vadd.f32 %v4735_v55, %v6039_v3 }
 0x2b3   : > { %v2635_v28 = vpop.f32.mrf.mxu1 }
 0x2b4   : > { %v6170_v62 = vpop.f32.mrf.mxu0  ;;  %v6173_v36 = vadd.f32 %v2635_v28, %v6044_v20 }
 0x2b5   : > { %v4736_v24 = vpop.f32.mrf.mxu1 }
 0x2b6   : > { %v6175_v41 = vpop.f32.mrf.mxu0  ;;  %v6178_v38 = vadd.f32 %v4736_v24, %v6047_v6 }
 0x2b7   : > { %v2638_v11 = vpop.f32.mrf.mxu1 }
 0x2b8   : > { %v6180_v57 = vpop.f32.mrf.mxu0  ;;  %v6183_v49 = vadd.f32 %v2638_v11, %v6049_v26 }
 0x2b9   : > { %v4739_v3 = vpop.f32.mrf.mxu1 }
 0x2ba   : > { %v6185_v61 = vpop.f32.mrf.mxu0  ;;  %v6188_v58 = vadd.f32 %v4739_v3, %v6052_v51 }
 0x2bb   : > { %v2651_v20 = vpop.f32.mrf.mxu1 }
 0x2bc   : > { %v6190_v1 = vpop.f32.mrf.mxu0  ;;  %v6193_v25 = vadd.f32 %v2651_v20, %v6057_v23 }
 0x2bd   : > { %v4740_v6 = vpop.f32.mrf.mxu1 }
 0x2be   : > { %v6195_v2 = vpop.f32.mrf.mxu0  ;;  %v6198_v60 = vadd.f32 %v4740_v6, %v6060_v5 }
 0x2bf   : > { %v2654_v26 = vpop.f32.mrf.mxu1 }
 0x2c0   : > { %v6200_v30 = vpop.f32.mrf.mxu0  ;;  %v6203_v8 = vadd.f32 %v2654_v26, %v6065_v10 }
 0x2c1   : > { %v4743_v51 = vpop.f32.mrf.mxu1 }
 0x2c2   : > { %v6205_v55 = vpop.f32.mrf.mxu0  ;;  %v6208_v28 = vadd.f32 %v4743_v51, %v6068_v13 }
 0x2c3   : > { %v2667_v23 = vpop.f32.mrf.mxu1 }
 0x2c4   : > { %v6210_v24 = vpop.f32.mrf.mxu0  ;;  %v6213_v11 = vadd.f32 %v2667_v23, %v6071_v33 }
 0x2c5   : > { %6879 = vst [vmem:[#allocation9_spill] sm:$0xff] %v6210_v24  ;;  %v4744_v5 = vpop.f32.mrf.mxu1 }
 0x2c6   : > { %v6215_v3 = vpop.f32.mrf.mxu0  ;;  %v6218_v20 = vadd.f32 %v4744_v5, %v6080_v45 }
 0x2c7   : > { %6880 = vst [vmem:[#allocation10_spill] sm:$0xff] %v6215_v3  ;;  %v2670_v10 = vpop.f32.mrf.mxu1 }
 0x2c8   : > { %v6220_v6 = vpop.f32.mrf.mxu0  ;;  %v6223_v26 = vadd.f32 %v2670_v10, %v6083_v22 }
 0x2c9   : > { %6881 = vst [vmem:[#allocation11_spill] sm:$0xff] %v6220_v6  ;;  %v4747_v13 = vpop.f32.mrf.mxu1 }
 0x2ca   : > { %6882 = vst [vmem:[#allocation12_spill] sm:$0xff] %v6223_v26  ;;  %v6225_v51 = vpop.f32.mrf.mxu0  ;;  %v6228_v24 = vadd.f32 %v4747_v13, %v6089_v39 }
 0x2cb   : > { %6883 = vst [vmem:[#allocation13_spill] sm:$0xff] %v6225_v51  ;;  %v2683_v33 = vpop.f32.mrf.mxu1 }
 0x2cc   : > { %v6230_v23 = vpop.f32.mrf.mxu0  ;;  %v6233_v3 = vadd.f32 %v2683_v33, %v6092_v19 }
 0x2cd   : > { %6884 = vst [vmem:[#allocation14_spill] sm:$0xff] %v6230_v23  ;;  %v4748_v45 = vpop.f32.mrf.mxu1 }
 0x2ce   : > { %v6236_v5 = vadd.f32 %v4748_v45, %v6095_v42  ;;  %v6238_v6 = vpop.f32.mrf.mxu0 }
 0x2cf   : > { %v2686_v22 = vpop.f32.mrf.mxu1 }
 0x2d0   : > { %v6241_v10 = vadd.f32 %v2686_v22, %v6098_v12  ;;  %v6243_v26 = vpop.f32.mrf.mxu0 }
 0x2d1   : > { %v4751_v51 = vpop.f32.mrf.mxu1 }
 0x2d2   : > { %6885 = vst [vmem:[#allocation15_spill] sm:$0xff] %v6241_v10  ;;  %v6246_v39 = vadd.f32 %v4751_v51, %v6104_v27  ;;  %v6251_v23 = vpop.f32.mrf.mxu0 }
 0x2d3   : > { %v2699_v13 = vpop.f32.mrf.mxu1 }
 0x2d4   : > { %v6249_v19 = vadd.f32 %v2699_v13, %v6107_v15  ;;  %v6259_v10 = vpop.f32.mrf.mxu0  ;;  %v2426_v13 = vadd.f32 %v6012_v34, %v6019_v46  ;;  %v6284_v46 = vld [vmem:[%s6863_s4] ss:$0 sm:$0xff] }
 0x2d5   : > { %v4752_v33 = vpop.f32.mrf.mxu1 }
 0x2d6   : > { %v6254_v42 = vadd.f32 %v4752_v33, %v6110_v18  ;;  %v2424_v18 = vadd.f32 %v6021_v37, %v6023_v7  ;;  %v3036_v37 = vadd.f32 %v6132_v32, %v6135_v21 }
 0x2d7   : > { %v2702_v45 = vpop.f32.mrf.mxu1 }
 0x2d8   : > { %6886 = vst [vmem:[#allocation16_spill] sm:$0xff] %v6254_v42  ;;  %v6257_v12 = vadd.f32 %v2702_v45, %v6113_v43  ;;  %v4788_v42 = vpop.f32.mrf.mxu0  ;;  %v2733_v45 = vadd.f32 %v6137_v35, %v2426_v13  ;;  %v3043_v13 = vadd.f32 %v6155_v14, %v6158_v47  ;;  %v6321_v14 = vadd.f32 %v6185_v61, %v6188_v58 }
 0x2d9   : > { %v4755_v22 = vpop.f32.mrf.mxu1 }
 0x2da   : > { %v6262_v27 = vadd.f32 %v4755_v22, %v6116_v9  ;;  %v2731_v9 = vadd.f32 %v6141_v54, %v2424_v18  ;;  %v3008_v7 = vpop.f32.mrf.mxu0  ;;  %v3039_v35 = vadd.f32 %v6139_v0, %v2733_v45  ;;  %v6298_v18 = vadd.f32 %v6160_v53, %v6163_v17 }
 0x2db   : > { %v2715_v51 = vpop.f32.mrf.mxu1 }
 0x2dc   : > { %v6265_v15 = vadd.f32 %v2715_v51, %v6119_v56  ;;  %v3038_v56 = vadd.f32 %v6125_v50, %v6130_v4  ;;  %v3037_v54 = vadd.f32 %v6143_v48, %v2731_v9  ;;  %v3042_v50 = vadd.f32 %v6145_v44, %v6148_v59  ;;  %v4791_v32 = vpop.f32.mrf.mxu0  ;;  %v6892_v9 = vld [vmem:[#allocation14_spill] sm:$0xff] }
 0x2dd   : > { %v4756_v33 = vpop.f32.mrf.mxu1  ;;  %v6305_v48 = vadd.f32 %v6165_v63, %v6168_v16  ;;  %v6309_v44 = vadd.f32 %v6170_v62, %v6173_v36  ;;  %v6313_v59 = vadd.f32 %v6175_v41, %v6178_v38  ;;  %v6330_v63 = vadd.f32 %v6190_v1, %v6193_v25  ;;  %v6887_v1 = vld [vmem:[#allocation9_spill] sm:$0xff] }
 0x2de   : > { %v6272_v43 = vadd.f32 %v4756_v33, %v6122_v52  ;;  %v6334_v16 = vadd.f32 %v6195_v2, %v6198_v60  ;;  %v6338_v62 = vadd.f32 %v6200_v30, %v6203_v8  ;;  %v6342_v36 = vadd.f32 %v6205_v55, %v6208_v28  ;;  %v3021_v38 = vpop.f32.mrf.mxu0  ;;  %v6888_v2 = vld [vmem:[#allocation10_spill] sm:$0xff]  ;;  %v6889_v30 = vld [vmem:[#allocation12_spill] sm:$0xff]  ;;  %v6890_v8 = vld [vmem:[#allocation11_spill] sm:$0xff] }
 0x2df   : > { %v2718_v22 = vpop.f32.mrf.mxu1  ;;  %v6350_v25 = vadd.f32 %v6887_v1, %v6213_v11  ;;  %v6354_v60 = vadd.f32 %v6888_v2, %v6218_v20  ;;  %v6358_v55 = vadd.f32 %v6890_v8, %v6889_v30  ;;  %v6891_v28 = vld [vmem:[#allocation13_spill] sm:$0xff]  ;;  %v6370_v11 = vadd.f32 %v6238_v6, %v6236_v5 }
 0x2e0   : > { %v6279_v51 = vadd.f32 %v2718_v22, %v6127_v31  ;;  %v3040_v31 = vadd.f32 %v6150_v40, %v6153_v29  ;;  %v6317_v40 = vadd.f32 %v6180_v57, %v6183_v49  ;;  %v6362_v33 = vadd.f32 %v6891_v28, %v6228_v24 }
 0x2e1   : > { %v4799_v34 = vpop.f32.mrf.mxu1  ;;  %v6366_v22 = vadd.f32 %v6892_v9, %v6233_v3 }
 0x2e2   : > { %v3344_v52 = vadd.f32 %v4799_v34, %v3038_v56  ;;  %v6893_v34 = vld [vmem:[#allocation15_spill] sm:$0xff] }
 0x2e3   : > { %v3215_v4 = vpop.f32.mrf.mxu1 }
 0x2e4   : > { %v6301_v21 = vadd.f32 %v6284_v46, %v3344_v52  ;;  %v3342_v0 = vadd.f32 %v3215_v4, %v3036_v37  ;;  %v6374_v37 = vadd.f32 %v6243_v26, %v6893_v34  ;;  %v6378_v52 = vadd.f32 %v6251_v23, %v6246_v39 }
 0x2e5   : > { %v4800_v29 = vpop.f32.mrf.mxu1  ;;  %v6387_v26 = vadd.f32 %v6259_v10, %v6249_v19  ;;  %v6393_v23 = vadd.f32 %v3008_v7, %v6257_v12  ;;  %v6402_v10 = vadd.f32 %v4791_v32, %v6262_v27  ;;  %v6405_v19 = vadd.f32 %v3021_v38, %v6265_v15 }
 0x2e6   : > { %v3447_v47 = vmul.f32 %v6301_v21, %v6301_v21  ;;  %v6326_v53 = vadd.f32 %v6284_v46, %v3342_v0  ;;  %v3345_v17 = vadd.f32 %v4800_v29, %v3039_v35  ;;  %v6894_v29 = vld [vmem:[#allocation16_spill] sm:$0xff] }
 0x2e7   : > { %v3218_v41 = vpop.f32.mrf.mxu1 }
 0x2e8   : > { %v3479_v57 = vmul.f32 %v3447_v47, %v6301_v21  ;;  %v3445_v49 = vmul.f32 %v6326_v53, %v6326_v53  ;;  %v3384_v61 = vadd.f32 %v6284_v46, %v3345_v17  ;;  %v3343_v58 = vadd.f32 %v3218_v41, %v3037_v54  ;;  %v4792_v54 = vpop.f32.mrf.mxu0 }
 0x2e9   : > { %v4803_v45 = vpop.f32.mrf.mxu1  ;;  %v6390_v47 = vadd.f32 %v4788_v42, %v6894_v29  ;;  %v6410_v30 = vadd.f32 %v4792_v54, %v6272_v43 }
 0x2ea   : > { %v3511_v56 = vmul.f32 0.044715, %v3479_v57  ;;  %v3448_v20 = vmul.f32 %v3384_v61, %v3384_v61  ;;  %v6381_v24 = vadd.f32 %v6284_v46, %v3343_v58  ;;  %v3348_v35 = vadd.f32 %v4803_v45, %v3042_v50 }
 0x2eb   : > { %v3231_v3 = vpop.f32.mrf.mxu1  ;;  %v3477_v6 = vmul.f32 %v3445_v49, %v6326_v53  ;;  %v3024_v49 = vpop.f32.mrf.mxu0  ;;  %v6428_v54 = vmul.f32 0.5, %v3384_v61 }
 0x2ec   : > { %v3543_v4 = vadd.f32 %v3511_v56, %v6301_v21  ;;  %v3480_v5 = vmul.f32 %v3448_v20, %v3384_v61  ;;  %v3346_v0 = vadd.f32 %v3231_v3, %v3040_v31  ;;  %v3387_v39 = vadd.f32 %v6284_v46, %v3348_v35 }
 0x2ed   : > { %v4804_v50 = vpop.f32.mrf.mxu1  ;;  %v3446_v57 = vmul.f32 %v6381_v24, %v6381_v24  ;;  %v3509_v58 = vmul.f32 0.044715, %v3477_v6  ;;  %v6418_v9 = vadd.f32 %v3024_v49, %v6279_v51  ;;  %v6421_v56 = vmul.f32 0.5, %v6301_v21 }
 0x2ee   : > { %v3575_v17 = vmul.f32 0.7978846, %v3543_v4  ;;  %v3512_v41 = vmul.f32 0.044715, %v3480_v5  ;;  %v6399_v31 = vadd.f32 %v6284_v46, %v3346_v0  ;;  %v3451_v42 = vmul.f32 %v3387_v39, %v3387_v39 }
 0x2ef   : > { %v3349_v12 = vadd.f32 %v4804_v50, %v3043_v13  ;;  %v3234_v7 = vpop.f32.mrf.mxu1  ;;  %v3478_v13 = vmul.f32 %v3446_v57, %v6381_v24  ;;  %v3541_v35 = vadd.f32 %v3509_v58, %v6326_v53  ;;  %v6432_v21 = vmul.f32 0.5, %v6326_v53 }
 0x2f0   : > { %4964 = vtanh.f32 %v3575_v17  ;;  %v3544_v1 = vadd.f32 %v3512_v41, %v3384_v61  ;;  %v3449_v2 = vmul.f32 %v6399_v31, %v6399_v31  ;;  %v3483_v8 = vmul.f32 %v3451_v42, %v3387_v39 }
 0x2f1   : > { %v3388_v27 = vadd.f32 %v6284_v46, %v3349_v12  ;;  %v3347_v32 = vadd.f32 %v3234_v7, %v6298_v18  ;;  %v4807_v15 = vpop.f32.mrf.mxu1  ;;  %v3510_v6 = vmul.f32 0.044715, %v3478_v13  ;;  %v3573_v42 = vmul.f32 0.7978846, %v3541_v35 }
 0x2f2   : > { %v3576_v38 = vmul.f32 0.7978846, %v3544_v1  ;;  %v3481_v28 = vmul.f32 %v3449_v2, %v6399_v31  ;;  %v3352_v45 = vadd.f32 %v4807_v15, %v6305_v48  ;;  %v3515_v43 = vmul.f32 0.044715, %v3483_v8 }
 0x2f3   : > { %v3452_v20 = vmul.f32 %v3388_v27, %v3388_v27  ;;  %v3247_v34 = vpop.f32.mrf.mxu1  ;;  %v6425_v18 = vadd.f32 %v6284_v46, %v3347_v32  ;;  %v6446_v2 = vmul.f32 0.5, %v6381_v24  ;;  %v3542_v8 = vadd.f32 %v3510_v6, %v6381_v24 }
 0x2f4   : > { %4966 = vtanh.f32 %v3576_v38  ;;  %v3391_v3 = vadd.f32 %v6284_v46, %v3352_v45  ;;  %v3350_v51 = vadd.f32 %v3247_v34, %v6309_v44  ;;  %v3513_v5 = vmul.f32 0.044715, %v3481_v28 }
 0x2f5   : > { %v3484_v48 = vmul.f32 %v3452_v20, %v3388_v27  ;;  %v4808_v4 = vpop.f32.mrf.mxu1  ;;  %v3450_v0 = vmul.f32 %v6425_v18, %v6425_v18  ;;  %v3547_v50 = vadd.f32 %v3515_v43, %v3387_v39  ;;  %4968 = vtanh.f32 %v3573_v42 }
 0x2f6   : > { %v3455_v29 = vmul.f32 %v3391_v3, %v3391_v3  ;;  %v6437_v41 = vadd.f32 %v6284_v46, %v3350_v51  ;;  %v3353_v61 = vadd.f32 %v4808_v4, %v6313_v59  ;;  %v3545_v59 = vadd.f32 %v3513_v5, %v6399_v31 }
 0x2f7   : > { %v3516_v17 = vmul.f32 0.044715, %v3484_v48  ;;  %v3250_v57 = vpop.f32.mrf.mxu1  ;;  %v3482_v44 = vmul.f32 %v3450_v0, %v6425_v18  ;;  %v3579_v38 = vmul.f32 0.7978846, %v3547_v50  ;;  %v6457_v24 = vmul.f32 0.5, %v3388_v27 }
 0x2f8   : > { %v3487_v12 = vmul.f32 %v3455_v29, %v3391_v3  ;;  %v3351_v53 = vadd.f32 %v3250_v57, %v6317_v40  ;;  %v3453_v49 = vmul.f32 %v6437_v41, %v6437_v41  ;;  %v3392_v58 = vadd.f32 %v6284_v46, %v3353_v61 }
 0x2f9   : > { %v3548_v7 = vadd.f32 %v3516_v17, %v3388_v27  ;;  %v4811_v1 = vpop.f32.mrf.mxu1  ;;  %v6454_v40 = vmul.f32 0.5, %v3387_v39  ;;  %v3514_v13 = vmul.f32 0.044715, %v3482_v44  ;;  %v6463_v4 = vmul.f32 0.7978846, %v3542_v8 }
 0x2fa   : > { %v6451_v32 = vadd.f32 %v6284_v46, %v3351_v53  ;;  %v3356_v15 = vadd.f32 %v4811_v1, %v6321_v14  ;;  %v3456_v28 = vmul.f32 %v3392_v58, %v3392_v58  ;;  %v3519_v20 = vmul.f32 0.044715, %v3487_v12 }
 0x2fb   : > { %v3263_v45 = vpop.f32.mrf.mxu1  ;;  %v3580_v43 = vmul.f32 0.7978846, %v3548_v7  ;;  %v3485_v48 = vmul.f32 %v3453_v49, %v6437_v41  ;;  %v6465_v6 = vmul.f32 0.7978846, %v3545_v59  ;;  %v6467_v5 = vmul.f32 0.5, %v3391_v3 }
 0x2fc   : > { %v3395_v34 = vadd.f32 %v6284_v46, %v3356_v15  ;;  %v3454_v51 = vmul.f32 %v6451_v32, %v6451_v32  ;;  %v3354_v14 = vadd.f32 %v3263_v45, %v6330_v63  ;;  %v3488_v0 = vmul.f32 %v3456_v28, %v3392_v58 }
 0x2fd   : > { %v4965_v35 = vpop.eup %4964  ;;  %v4812_v39 = vpop.f32.mrf.mxu1  ;;  %4970 = vtanh.f32 %v3579_v38  ;;  %v3546_v29 = vadd.f32 %v3514_v13, %v6425_v18  ;;  %v6470_v27 = vmul.f32 0.5, %v3392_v58  ;;  %v3551_v57 = vadd.f32 %v3519_v20, %v3391_v3 }
 0x2fe   : > { %v3459_v50 = vmul.f32 %v3395_v34, %v3395_v34  ;;  %v3639_v61 = vadd.f32 1.0, %v4965_v35  ;;  %4972 = vtanh.f32 %v3580_v43  ;;  %v6473_v63 = vadd.f32 %v6284_v46, %v3354_v14 }
 0x2ff   : > { %v3266_v17 = vpop.f32.mrf.mxu1  ;;  %v3517_v44 = vmul.f32 0.044715, %v3485_v48  ;;  %v3486_v12 = vmul.f32 %v3454_v51, %v6451_v32  ;;  %v3357_v7 = vadd.f32 %v4812_v39, %v6334_v16  ;;  %v3520_v8 = vmul.f32 0.044715, %v3488_v0 }
 0x300   : > { %6895 = vst [vmem:[#allocation9_spill] sm:$0xff] %v6473_v63  ;;  %v3491_v53 = vmul.f32 %v3459_v50, %v3395_v34  ;;  %v3457_v59 = vmul.f32 %v6473_v63, %v6473_v63  ;;  %v3355_v15 = vadd.f32 %v3266_v17, %v6338_v62  ;;  %v6480_v38 = vmul.f32 0.7978846, %v3546_v29 }
 0x301   : > { %v4967_v42 = vpop.eup %4966  ;;  %v4815_v49 = vpop.f32.mrf.mxu1  ;;  %v3396_v13 = vadd.f32 %v6284_v46, %v3357_v7  ;;  %v6485_v43 = vmul.f32 %v3639_v61, %v6421_v56  ;;  %v3583_v20 = vmul.f32 0.7978846, %v3551_v57  ;;  %v3549_v62 = vadd.f32 %v3517_v44, %v6437_v41 }
 0x302   : > { %v3640_v1 = vadd.f32 1.0, %v4967_v42  ;;  %v3523_v3 = vmul.f32 0.044715, %v3491_v53  ;;  %v3360_v28 = vadd.f32 %v4815_v49, %v6342_v36  ;;  %v6491_v35 = vadd.f32 %v6284_v46, %v3355_v15  ;;  %v4969_v53 = vpop.eup %4968 }
 0x303   : > { %v3279_v45 = vpop.f32.mrf.mxu1  ;;  %v3518_v48 = vmul.f32 0.044715, %v3486_v12  ;;  %v3489_v51 = vmul.f32 %v3457_v59, %v6473_v63  ;;  %v3460_v14 = vmul.f32 %v3396_v13, %v3396_v13  ;;  %v3552_v0 = vadd.f32 %v3520_v8, %v3392_v58 }
 0x304   : > { %v6488_v16 = vmul.f32 %v3640_v1, %v6428_v54  ;;  %v3458_v56 = vmul.f32 %v6491_v35, %v6491_v35  ;;  %v3399_v54 = vadd.f32 %v6284_v46, %v3360_v28  ;;  %v3555_v29 = vadd.f32 %v3523_v3, %v3395_v34 }
 0x305   : > { %v4816_v39 = vpop.f32.mrf.mxu1  ;;  %v3492_v50 = vmul.f32 %v3460_v14, %v3396_v13  ;;  %v3358_v17 = vadd.f32 %v3279_v45, %v6350_v25  ;;  %4974 = vtanh.f32 %v3583_v20  ;;  %v6502_v42 = vmul.f32 0.5, %v3395_v34 }
 0x306   : > { %v3361_v61 = vadd.f32 %v4816_v39, %v6354_v60  ;;  %v3490_v44 = vmul.f32 %v3458_v56, %v6491_v35  ;;  %v3463_v12 = vmul.f32 %v3399_v54, %v3399_v54  ;;  %v6505_v58 = vmul.f32 0.7978846, %v3549_v62 }
 0x307   : > { %v3282_v57 = vpop.f32.mrf.mxu1  ;;  %v3521_v7 = vmul.f32 0.044715, %v3489_v51  ;;  %v6508_v49 = vadd.f32 %v6284_v46, %v3358_v17  ;;  %v3550_v25 = vadd.f32 %v3518_v48, %v6451_v32  ;;  %v3524_v60 = vmul.f32 0.044715, %v3492_v50 }
 0x308   : > { %v3400_v1 = vadd.f32 %v6284_v46, %v3361_v61  ;;  %v3495_v59 = vmul.f32 %v3463_v12, %v3399_v54  ;;  %v3359_v34 = vadd.f32 %v3282_v57, %v6358_v55  ;;  %v3584_v15 = vmul.f32 0.7978846, %v3552_v0 }
 0x309   : > { %v4819_v8 = vpop.f32.mrf.mxu1  ;;  %v3587_v3 = vmul.f32 0.7978846, %v3555_v29  ;;  %v3461_v28 = vmul.f32 %v6508_v49, %v6508_v49  ;;  %v3522_v51 = vmul.f32 0.044715, %v3490_v44  ;;  %v3553_v55 = vadd.f32 %v3521_v7, %v6473_v63 }
 0x30a   : > { %v3464_v45 = vmul.f32 %v3400_v1, %v3400_v1  ;;  %v6515_v62 = vpop.eup %4970  ;;  %v3527_v14 = vmul.f32 0.044715, %v3495_v59  ;;  %v6518_v39 = vadd.f32 %v6284_v46, %v3359_v34  ;;  %v3364_v48 = vadd.f32 %v4819_v8, %v6362_v33 }
 0x30b   : > { %v3295_v20 = vpop.f32.mrf.mxu1  ;;  %v6521_v56 = vpop.eup %4972  ;;  %v3493_v0 = vmul.f32 %v3461_v28, %v6508_v49  ;;  %4976 = vtanh.f32 %v6463_v4  ;;  %v6526_v17 = vmul.f32 0.7978846, %v3550_v25  ;;  %v3556_v61 = vadd.f32 %v3524_v60, %v3396_v13 }
 0x30c   : > { %v3496_v29 = vmul.f32 %v3464_v45, %v3400_v1  ;;  %v3462_v57 = vmul.f32 %v6518_v39, %v6518_v39  ;;  %v3403_v44 = vadd.f32 %v6284_v46, %v3364_v48  ;;  %4978 = vtanh.f32 %v3584_v15 }
 0x30d   : > { %v4820_v50 = vpop.f32.mrf.mxu1  ;;  %v6531_v33 = vmul.f32 0.5, %v3396_v13  ;;  %v6533_v12 = vmul.f32 0.5, %v3399_v54  ;;  %4980 = vtanh.f32 %v3587_v3  ;;  %v3554_v59 = vadd.f32 %v3522_v51, %v6491_v35 }
 0x30e   : > { %v3528_v7 = vmul.f32 0.044715, %v3496_v29  ;;  %v3559_v4 = vadd.f32 %v3527_v14, %v3399_v54  ;;  %v3467_v34 = vmul.f32 %v3403_v44, %v3403_v44  ;;  %v6536_v25 = vmul.f32 0.7978846, %v3553_v55 }
 0x30f   : > { %v3298_v8 = vpop.f32.mrf.mxu1  ;;  %v3525_v60 = vmul.f32 0.044715, %v3493_v0  ;;  %v6538_v28 = vmul.f32 0.5, %v3400_v1  ;;  %v3362_v45 = vadd.f32 %v3295_v20, %v6366_v22  ;;  %v3588_v15 = vmul.f32 0.7978846, %v3556_v61 }
 0x310   : > { %v3494_v13 = vmul.f32 %v3462_v57, %v6518_v39  ;;  %v3499_v36 = vmul.f32 %v3467_v34, %v3403_v44  ;;  %v3365_v29 = vadd.f32 %v4820_v50, %v6370_v11  ;;  %v3560_v63 = vadd.f32 %v3528_v7, %v3400_v1 }
 0x311   : > { %v4823_v48 = vpop.f32.mrf.mxu1  ;;  %v3637_v3 = vadd.f32 1.0, %v4969_v53  ;;  %v6544_v51 = vadd.f32 %v6284_v46, %v3362_v45  ;;  %v3363_v54 = vadd.f32 %v3298_v8, %v6374_v37  ;;  %v6547_v55 = vmul.f32 0.7978846, %v3554_v59 }
 0x312   : > { %v3591_v0 = vmul.f32 0.7978846, %v3559_v4  ;;  %v3404_v22 = vadd.f32 %v6284_v46, %v3365_v29  ;;  %v3368_v20 = vadd.f32 %v4823_v48, %v6378_v52  ;;  %v6551_v61 = vpop.eup %4974  ;;  %v3557_v57 = vadd.f32 %v3525_v60, %v6508_v49 }
 0x313   : > { %v3311_v14 = vpop.f32.mrf.mxu1  ;;  %v3531_v11 = vmul.f32 0.044715, %v3499_v36  ;;  %v3465_v53 = vmul.f32 %v6544_v51, %v6544_v51  ;;  %v6557_v1 = vadd.f32 %v6284_v46, %v3363_v54  ;;  %4982 = vtanh.f32 %v3588_v15 }
 0x314   : > { %v3526_v50 = vmul.f32 0.044715, %v3494_v13  ;;  %v6559_v7 = vmul.f32 0.5, %v3403_v44  ;;  %v3468_v8 = vmul.f32 %v3404_v22, %v3404_v22  ;;  %v3592_v59 = vmul.f32 0.7978846, %v3560_v63 }
 0x315   : > { %v4824_v37 = vpop.f32.mrf.mxu1  ;;  %v3669_v52 = vmul.f32 %v3637_v3, %v6432_v21  ;;  %v3497_v4 = vmul.f32 %v3465_v53, %v6544_v51  ;;  %v6564_v34 = vadd.f32 %v6284_v46, %v3368_v20  ;;  %v3466_v45 = vmul.f32 %v6557_v1, %v6557_v1 }
 0x316   : > { %v3500_v60 = vmul.f32 %v3468_v8, %v3404_v22  ;;  %4984 = vtanh.f32 %v6465_v6  ;;  %v3366_v48 = vadd.f32 %v3311_v14, %v6387_v26  ;;  %v6570_v15 = vmul.f32 0.7978846, %v3557_v57 }
 0x317   : > { %v3314_v36 = vpop.f32.mrf.mxu1  ;;  %4986 = vtanh.f32 %v3591_v0  ;;  %v3563_v63 = vadd.f32 %v3531_v11, %v3403_v44  ;;  %v3471_v21 = vmul.f32 %v6564_v34, %v6564_v34  ;;  %v3558_v29 = vadd.f32 %v3526_v50, %v6518_v39 }
 0x318   : > { %v4977_v13 = vpop.eup %4976  ;;  %v3532_v3 = vmul.f32 0.044715, %v3500_v60  ;;  %v6576_v54 = vadd.f32 %v6284_v46, %v3366_v48  ;;  %v3643_v20 = vadd.f32 1.0, %v6515_v62  ;;  %4988 = vtanh.f32 %v3592_v59 }
 0x319   : > { %v4827_v53 = vpop.f32.mrf.mxu1  ;;  %v3638_v6 = vadd.f32 1.0, %v4977_v13  ;;  %v3529_v26 = vmul.f32 0.044715, %v3497_v4  ;;  %v3503_v14 = vmul.f32 %v3471_v21, %v6564_v34  ;;  %v4979_v0 = vpop.eup %4978  ;;  %v3498_v44 = vmul.f32 %v3466_v45, %v6557_v1 }
 0x31a   : > { %v6582_v57 = vmul.f32 0.5, %v6399_v31  ;;  %4990 = vtanh.f32 %v6480_v38  ;;  %v3644_v11 = vadd.f32 1.0, %v6521_v56  ;;  %v6586_v50 = vpop.eup %4980  ;;  %v3595_v8 = vmul.f32 0.7978846, %v3563_v63 }
 0x31b   : > { %v3670_v62 = vmul.f32 %v3638_v6, %v6446_v2  ;;  %v3564_v59 = vadd.f32 %v3532_v3, %v3404_v22  ;;  %v3535_v60 = vmul.f32 0.044715, %v3503_v14  ;;  %v6589_v4 = vmul.f32 0.7978846, %v3558_v29  ;;  %v3327_v38 = vpop.f32.mrf.mxu1 }
 0x31c   : > { %v3469_v48 = vmul.f32 %v6576_v54, %v6576_v54  ;;  %v6594_v45 = vmul.f32 %v3643_v20, %v6454_v40  ;;  %v6597_v31 = vmul.f32 %v3644_v11, %v6457_v24  ;;  %v3561_v21 = vadd.f32 %v3529_v26, %v6544_v51 }
 0x31d   : > { %v3701_v56 = vpack.c.bf16 %v3670_v62, %v3669_v52  ;;  %v3567_v63 = vadd.f32 %v3535_v60, %v6564_v34  ;;  %v3369_v2 = vadd.f32 %v4824_v37, %v6390_v47  ;;  %v6602_v13 = vmul.f32 0.5, %v3404_v22 }
 0x31e   : > { %v3530_v29 = vmul.f32 0.044715, %v3498_v44  ;;  %v3704_v3 = vpack.c.bf16 %v6597_v31, %v6594_v45  ;;  %v3367_v40 = vadd.f32 %v3314_v36, %v6393_v23  ;;  %4992 = vtanh.f32 %v3595_v8  ;;  %v4828_v23 = vpop.f32.mrf.mxu1 }
 0x31f   : > { %4845 = vmatprep.mubr.bf16.mxu0 %v3701_v56  ;;  %v3596_v24 = vmul.f32 0.7978846, %v3564_v59  ;;  %v6608_v20 = vadd.f32 %v6284_v46, %v3369_v2  ;;  %v3372_v52 = vadd.f32 %v4827_v53, %v6402_v10  ;;  %v6896_v6 = vpack.c.bf16 %v6488_v16, %v6485_v43 }
 0x320   : > { %v3418_v47 = vmul.f32 0.5, %v6425_v18  ;;  %v3501_v22 = vmul.f32 %v3469_v48, %v6576_v54  ;;  %v6617_v37 = vadd.f32 %v6284_v46, %v3367_v40  ;;  %4994 = vtanh.f32 %v6505_v58  ;;  %v4983_v36 = vpop.eup %4982  ;;  %v3330_v56 = vpop.f32.mrf.mxu1 }
 0x321   : > { %4846 = vmatmul.mubr.bf16.vlgmr.msra.gmra.mxu0 %v6896_v6  ;;  %v6620_v26 = vmul.f32 0.7978846, %v3561_v21  ;;  %v3599_v14 = vmul.f32 0.7978846, %v3567_v63  ;;  %v3472_v10 = vmul.f32 %v6608_v20, %v6608_v20  ;;  %v6625_v43 = vadd.f32 %v6284_v46, %v3372_v52 }
 0x322   : > { %v3562_v18 = vadd.f32 %v3530_v29, %v6557_v1  ;;  %v3470_v16 = vmul.f32 %v6617_v37, %v6617_v37  ;;  %4996 = vtanh.f32 %v6526_v17  ;;  %v3370_v58 = vadd.f32 %v3327_v38, %v6405_v19 }
 0x323   : > { %v4985_v53 = vpop.eup %4984  ;;  %4998 = vtanh.f32 %v3596_v24  ;;  %v3504_v44 = vmul.f32 %v3472_v10, %v6608_v20  ;;  %v3475_v11 = vmul.f32 %v6625_v43, %v6625_v43  ;;  %v3647_v8 = vadd.f32 1.0, %v6551_v61 }
 0x324   : > { %v6636_v62 = vpop.eup %4986  ;;  %v3533_v59 = vmul.f32 0.044715, %v3501_v22  ;;  %v3502_v60 = vmul.f32 %v3470_v16, %v6617_v37  ;;  %v6640_v48 = vadd.f32 %v6284_v46, %v3370_v58  ;;  %v3648_v17 = vadd.f32 1.0, %v4979_v0 }
 0x325   : > { %5000 = vtanh.f32 %v3599_v14  ;;  %v3536_v19 = vmul.f32 0.044715, %v3504_v44  ;;  %v3507_v38 = vmul.f32 %v3475_v11, %v6625_v43  ;;  %v3373_v21 = vadd.f32 %v4828_v23, %v6410_v30  ;;  %v6644_v63 = vpop.eup %4988 }
 0x326   : > { %v3641_v2 = vadd.f32 1.0, %v4985_v53  ;;  %v3473_v61 = vmul.f32 %v6640_v48, %v6640_v48  ;;  %v6649_v29 = vmul.f32 %v3647_v8, %v6467_v5  ;;  %v6652_v40 = vmul.f32 %v3648_v17, %v6470_v27 }
 0x327   : > { %v4991_v0 = vpop.eup %4990  ;;  %v3568_v24 = vadd.f32 %v3536_v19, %v6608_v20  ;;  %v3539_v52 = vmul.f32 0.044715, %v3507_v38  ;;  %v6656_v6 = vadd.f32 %v6284_v46, %v3373_v21  ;;  %v3371_v30 = vadd.f32 %v3330_v56, %v6418_v9 }
 0x328   : > { %v3642_v22 = vadd.f32 1.0, %v4991_v0  ;;  %v3534_v23 = vmul.f32 0.044715, %v3502_v60  ;;  %v3505_v14 = vmul.f32 %v3473_v61, %v6640_v48  ;;  %v3706_v5 = vpack.c.bf16 %v6652_v40, %v6649_v29 }
 0x329   : > { %v3594_v10 = vmul.f32 0.7978846, %v3562_v18  ;;  %v3600_v16 = vmul.f32 0.7978846, %v3568_v24  ;;  %v3571_v27 = vadd.f32 %v3539_v52, %v6625_v43  ;;  %v3476_v58 = vmul.f32 %v6656_v6, %v6656_v6 }
 0x32a   : > { %v3673_v53 = vmul.f32 %v3641_v2, %v6582_v57  ;;  %v3674_v44 = vmul.f32 %v3642_v22, %v3418_v47  ;;  %v3537_v11 = vmul.f32 0.044715, %v3505_v14  ;;  %v6667_v9 = vadd.f32 %v6284_v46, %v3371_v30 }
 0x32b   : > { %5002 = vtanh.f32 %v3600_v16  ;;  %v3603_v8 = vmul.f32 0.7978846, %v3571_v27  ;;  %v3421_v60 = vmul.f32 0.5, %v6437_v41  ;;  %v3508_v17 = vmul.f32 %v3476_v58, %v6656_v6  ;;  %v4993_v18 = vpop.eup %4992 }
 0x32c   : > { %v3703_v56 = vpack.c.bf16 %v3674_v44, %v3673_v53  ;;  %v3565_v19 = vadd.f32 %v3533_v59, %v6576_v54  ;;  %v3566_v38 = vadd.f32 %v3534_v23, %v6617_v37  ;;  %v3474_v57 = vmul.f32 %v6667_v9, %v6667_v9 }
 0x32d   : > { %v4995_v47 = vpop.eup %4994  ;;  %5004 = vtanh.f32 %v3603_v8  ;;  %v3540_v21 = vmul.f32 0.044715, %v3508_v17  ;;  %v3651_v46 = vadd.f32 1.0, %v6586_v50  ;;  %v3652_v2 = vadd.f32 1.0, %v4983_v36 }
 0x32e   : > { %4849 = vmatprep.mubr.bf16.mxu0 %v3703_v56  ;;  %v3645_v61 = vadd.f32 1.0, %v4995_v47  ;;  %v3569_v41 = vadd.f32 %v3537_v11, %v6640_v48  ;;  %v3506_v29 = vmul.f32 %v3474_v57, %v6667_v9  ;;  %5006 = vtanh.f32 %v6536_v25 }
 0x32f   : > { %v4997_v59 = vpop.eup %4996  ;;  %4850 = vmatmul.mubr.bf16.gmra.mxu0 %v3704_v3  ;;  %v3572_v40 = vadd.f32 %v3540_v21, %v6656_v6  ;;  %5008 = vtanh.f32 %v6547_v55  ;;  %v6685_v50 = vmul.f32 %v3651_v46, %v6502_v42  ;;  %v6688_v36 = vmul.f32 %v3652_v2, %v6531_v33 }
 0x330   : > { %v4999_v0 = vpop.eup %4998  ;;  %v3597_v24 = vmul.f32 0.7978846, %v3565_v19  ;;  %v3422_v52 = vmul.f32 0.5, %v6451_v32  ;;  %v3646_v25 = vadd.f32 1.0, %v4997_v59  ;;  %v3538_v30 = vmul.f32 0.044715, %v3506_v29 }
 0x331   : > { %v3677_v22 = vmul.f32 %v3645_v61, %v3421_v60  ;;  %v3604_v23 = vmul.f32 0.7978846, %v3572_v40  ;;  %v3708_v45 = vpack.c.bf16 %v6688_v36, %v6685_v50  ;;  %5010 = vtanh.f32 %v6570_v15 }
 0x332   : > { %v5001_v55 = vpop.eup %5000  ;;  %v3678_v31 = vmul.f32 %v3646_v25, %v3422_v52  ;;  %v3570_v42 = vadd.f32 %v3538_v30, %v6667_v9  ;;  %5012 = vtanh.f32 %v6589_v4  ;;  %v3655_v33 = vadd.f32 1.0, %v6636_v62 }
 0x333   : > { %v3598_v3 = vmul.f32 0.7978846, %v3566_v38  ;;  %v3601_v14 = vmul.f32 0.7978846, %v3569_v41  ;;  %5014 = vtanh.f32 %v3604_v23  ;;  %v3656_v32 = vadd.f32 1.0, %v6644_v63 }
 0x334   : > { %v3705_v16 = vpack.c.bf16 %v3678_v31, %v3677_v22  ;;  %v3602_v27 = vmul.f32 0.7978846, %v3570_v42  ;;  %v6699_v58 = vmul.f32 %v3655_v33, %v6533_v12  ;;  %5016 = vtanh.f32 %v6620_v26 }
 0x335   : > { %v6703_v15 = vmul.f32 %v3656_v32, %v6538_v28  ;;  %5018 = vtanh.f32 %v3594_v10  ;;  %v3659_v53 = vadd.f32 1.0, %v4993_v18  ;;  %v3660_v4 = vadd.f32 1.0, %v4999_v0 }
 0x336   : > { %4853 = vmatprep.mubr.bf16.mxu0 %v3705_v16  ;;  %5020 = vtanh.f32 %v3597_v24  ;;  %v3663_v62 = vadd.f32 1.0, %v5001_v55  ;;  %v3439_v28 = vmul.f32 0.5, %v6564_v34  ;;  %v3440_v10 = vmul.f32 0.5, %v6608_v20 }
 0x337   : > { %4854 = vmatmul.mubr.bf16.gmra.mxu0 %v3706_v5  ;;  %v3710_v63 = vpack.c.bf16 %v6703_v15, %v6699_v58  ;;  %v6708_v44 = vmul.f32 %v3659_v53, %v6559_v7  ;;  %v6711_v12 = vmul.f32 %v3660_v4, %v6602_v13  ;;  %5022 = vtanh.f32 %v3598_v3  ;;  %v6897_v13 = vld [vmem:[#allocation9_spill] sm:$0xff] }
 0x338   : > { %v5003_v26 = vpop.eup %5002  ;;  %5024 = vtanh.f32 %v3601_v14  ;;  %v3695_v17 = vmul.f32 %v3663_v62, %v3439_v28  ;;  %v3425_v19 = vmul.f32 0.5, %v6897_v13  ;;  %v3426_v38 = vmul.f32 0.5, %v6491_v35 }
 0x339   : > { %v3712_v11 = vpack.c.bf16 %v6711_v12, %v6708_v44  ;;  %v3664_v5 = vadd.f32 1.0, %v5003_v26  ;;  %5026 = vtanh.f32 %v3602_v27  ;;  %v3429_v29 = vmul.f32 0.5, %v6508_v49 }
 0x33a   : > { %v5005_v8 = vpop.eup %5004  ;;  %v3430_v59 = vmul.f32 0.5, %v6518_v39  ;;  %v3443_v24 = vmul.f32 0.5, %v6625_v43  ;;  %v3444_v52 = vmul.f32 0.5, %v6656_v6  ;;  %v3433_v55 = vmul.f32 0.5, %v6544_v51 }
 0x33b   : > { %v5007_v60 = vpop.eup %5006  ;;  %v3696_v7 = vmul.f32 %v3664_v5, %v3440_v10  ;;  %v3667_v61 = vadd.f32 1.0, %v5005_v8  ;;  %v3434_v49 = vmul.f32 0.5, %v6557_v1  ;;  %v3437_v6 = vmul.f32 0.5, %v6576_v54 }
 0x33c   : > { %v5009_v18 = vpop.eup %5008  ;;  %v3649_v56 = vadd.f32 1.0, %v5007_v60  ;;  %v3438_v32 = vmul.f32 0.5, %v6617_v37  ;;  %v3441_v26 = vmul.f32 0.5, %v6640_v48  ;;  %v3442_v28 = vmul.f32 0.5, %v6667_v9  ;;  %v6743_v48 = vld [vmem:[%s6865_s6] ss:$0 sm:$0xff] }
 0x33d   : > { %v3650_v57 = vadd.f32 1.0, %v5009_v18  ;;  %v3714_v34 = vpack.c.bf16 %v3696_v7, %v3695_v17  ;;  %v3699_v39 = vmul.f32 %v3667_v61, %v3443_v24 }
 0x33e   : > { %v5011_v47 = vpop.eup %5010  ;;  %v3681_v20 = vmul.f32 %v3649_v56, %v3425_v19 }
 0x33f   : > { %v5013_v21 = vpop.eup %5012  ;;  %v3682_v46 = vmul.f32 %v3650_v57, %v3426_v38  ;;  %v3653_v2 = vadd.f32 1.0, %v5011_v47 }
 0x340   : > { %v5015_v41 = vpop.eup %5014  ;;  %v3654_v40 = vadd.f32 1.0, %v5013_v21 }
 0x341   : > { %v5017_v0 = vpop.eup %5016  ;;  %v3707_v35 = vpack.c.bf16 %v3682_v46, %v3681_v20  ;;  %v3668_v25 = vadd.f32 1.0, %v5015_v41  ;;  %v3685_v22 = vmul.f32 %v3653_v2, %v3429_v29 }
 0x342   : > { %v5019_v30 = vpop.eup %5018  ;;  %v3686_v23 = vmul.f32 %v3654_v40, %v3430_v59  ;;  %v3657_v31 = vadd.f32 1.0, %v5017_v0 }
 0x343   : > { %v5021_v42 = vpop.eup %5020  ;;  %4857 = vmatprep.mubr.bf16.mxu0 %v3707_v35  ;;  %v3658_v33 = vadd.f32 1.0, %v5019_v30  ;;  %v3700_v3 = vmul.f32 %v3668_v25, %v3444_v52 }
 0x344   : > { %v5023_v14 = vpop.eup %5022  ;;  %4858 = vmatmul.mubr.bf16.gmra.mxu0 %v3708_v45  ;;  %v3709_v43 = vpack.c.bf16 %v3686_v23, %v3685_v22  ;;  %v3661_v16 = vadd.f32 1.0, %v5021_v42  ;;  %v3689_v27 = vmul.f32 %v3657_v31, %v3433_v55 }
 0x345   : > { %v5025_v51 = vpop.eup %5024  ;;  %v3690_v53 = vmul.f32 %v3658_v33, %v3434_v49  ;;  %v3662_v4 = vadd.f32 1.0, %v5023_v14  ;;  %v3716_v62 = vpack.c.bf16 %v3700_v3, %v3699_v39 }
 0x346   : > { %v5027_v1 = vpop.eup %5026  ;;  %4861 = vmatprep.mubr.bf16.mxu0 %v3709_v43  ;;  %v3665_v10 = vadd.f32 1.0, %v5025_v51  ;;  %v3693_v36 = vmul.f32 %v3661_v16, %v3437_v6 }
 0x347   : > { %v3711_v50 = vpack.c.bf16 %v3690_v53, %v3689_v27  ;;  %v3694_v54 = vmul.f32 %v3662_v4, %v3438_v32  ;;  %v3666_v45 = vadd.f32 1.0, %v5027_v1 }
 0x348   : > { %v3697_v5 = vmul.f32 %v3665_v10, %v3441_v26 }
 0x349   : > { %v3713_v37 = vpack.c.bf16 %v3694_v54, %v3693_v36  ;;  %v3698_v8 = vmul.f32 %v3666_v45, %v3442_v28 }
 0x34b   : > { %v3715_v60 = vpack.c.bf16 %v3698_v8, %v3697_v5 }
 0x34c   : > { %4862 = vmatmul.mubr.bf16.gmra.mxu0 %v3710_v63 }
 0x34d   : > { %4865 = vmatprep.mubr.bf16.mxu0 %v3711_v50 }
 0x354   : > { %4866 = vmatmul.mubr.bf16.gmra.mxu0 %v3712_v11 }
 0x355   : > { %4869 = vmatprep.mubr.bf16.mxu0 %v3713_v37 }
 0x35c   : > { %4870 = vmatmul.mubr.bf16.gmra.mxu0 %v3714_v34 }
 0x35d   : > { %4873 = vmatprep.mubr.bf16.mxu0 %v3715_v60 }
 0x364   : > { %4874 = vmatmul.mubr.bf16.gmra.mxu0 %v3716_v62 }
 0x3e1   : > { %v4847_v9 = vpop.f32.mrf.mxu0 }
 0x3e2   : > { %v3831_v58 = vadd.f32 %v4847_v9, %v6743_v48 }
 0x3e3   : > { %v3822_v15 = vpop.f32.mrf.mxu0 }
 0x3e4   : > { %3951 = vst.msk [vmem:[%s6748_s23 + $0x10] sm:$0xff] %vm386_vm0, %v3831_v58  ;;  %v3823_v63 = vadd.f32 %v6743_v48, %v3822_v15 }
 0x3e5   : > { %v4848_v44 = vpop.f32.mrf.mxu0 }
 0x3e6   : > { %3949 = vst.msk [vmem:[%s6748_s23] sm:$0xff] %vm386_vm0, %v3823_v63  ;;  %v3834_v12 = vadd.f32 %v4848_v44, %v6743_v48 }
 0x3e7   : > { %v3825_v11 = vpop.f32.mrf.mxu0 }
 0x3e8   : > { %3952 = vst.msk [vmem:[%s6748_s23 + $0x18] sm:$0xff] %vm386_vm0, %v3834_v12  ;;  %v3826_v17 = vadd.f32 %v6743_v48, %v3825_v11 }
 0x3ea   : > { %3950 = vst.msk [vmem:[%s6748_s23 + $0x8] sm:$0xff] %vm386_vm0, %v3826_v17 }
 0x3ef   : > { %v4851_v7 = vpop.f32.mrf.mxu0 }
 0x3f0   : > { %v3847_v18 = vadd.f32 %v4851_v7, %v6743_v48 }
 0x3f1   : > { %v3838_v56 = vpop.f32.mrf.mxu0 }
 0x3f2   : > { %3955 = vst.msk [vmem:[%s6748_s23 + $0x30] sm:$0xff] %vm386_vm0, %v3847_v18  ;;  %v3839_v13 = vadd.f32 %v6743_v48, %v3838_v56 }
 0x3f3   : > { %v4852_v19 = vpop.f32.mrf.mxu0 }
 0x3f4   : > { %3953 = vst.msk [vmem:[%s6748_s23 + $0x20] sm:$0xff] %vm386_vm0, %v3839_v13  ;;  %v3850_v38 = vadd.f32 %v4852_v19, %v6743_v48 }
 0x3f5   : > { %v3841_v57 = vpop.f32.mrf.mxu0 }
 0x3f6   : > { %3956 = vst.msk [vmem:[%s6748_s23 + $0x38] sm:$0xff] %vm386_vm0, %v3850_v38  ;;  %v3842_v34 = vadd.f32 %v6743_v48, %v3841_v57 }
 0x3f7   : > { %v4855_v47 = vpop.f32.mrf.mxu0 }
 0x3f8   : > { %3954 = vst.msk [vmem:[%s6748_s23 + $0x28] sm:$0xff] %vm386_vm0, %v3842_v34  ;;  %v3863_v21 = vadd.f32 %v4855_v47, %v6743_v48 }
 0x3f9   : > { %v3854_v20 = vpop.f32.mrf.mxu0 }
 0x3fa   : > { %3959 = vst.msk [vmem:[%s6748_s23 + $0x50] sm:$0xff] %vm386_vm0, %v3863_v21  ;;  %v3855_v46 = vadd.f32 %v6743_v48, %v3854_v20 }
 0x3fb   : > { %v4856_v2 = vpop.f32.mrf.mxu0 }
 0x3fc   : > { %3957 = vst.msk [vmem:[%s6748_s23 + $0x40] sm:$0xff] %vm386_vm0, %v3855_v46  ;;  %v3866_v61 = vadd.f32 %v4856_v2, %v6743_v48 }
 0x3fd   : > { %v3857_v41 = vpop.f32.mrf.mxu0 }
 0x3fe   : > { %3960 = vst.msk [vmem:[%s6748_s23 + $0x58] sm:$0xff] %vm386_vm0, %v3866_v61  ;;  %v3858_v29 = vadd.f32 %v6743_v48, %v3857_v41 }
 0x400   : > { %3958 = vst.msk [vmem:[%s6748_s23 + $0x48] sm:$0xff] %vm386_vm0, %v3858_v29 }
 0x404   : > { %v4859_v59 = vpop.f32.mrf.mxu0 }
 0x405   : > { %v3879_v40 = vadd.f32 %v4859_v59, %v6743_v48 }
 0x406   : > { %v3870_v0 = vpop.f32.mrf.mxu0 }
 0x407   : > { %3963 = vst.msk [vmem:[%s6748_s23 + $0x70] sm:$0xff] %vm386_vm0, %v3879_v40  ;;  %v3871_v24 = vadd.f32 %v6743_v48, %v3870_v0 }
 0x408   : > { %v4860_v52 = vpop.f32.mrf.mxu0 }
 0x409   : > { %3961 = vst.msk [vmem:[%s6748_s23 + $0x60] sm:$0xff] %vm386_vm0, %v3871_v24  ;;  %v3882_v35 = vadd.f32 %v4860_v52, %v6743_v48 }
 0x40a   : > { %v3873_v25 = vpop.f32.mrf.mxu0 }
 0x40b   : > { %3964 = vst.msk [vmem:[%s6748_s23 + $0x78] sm:$0xff] %vm386_vm0, %v3882_v35  ;;  %v3874_v30 = vadd.f32 %v6743_v48, %v3873_v25 }
 0x40c   : > { %v4863_v22 = vpop.f32.mrf.mxu0 }
 0x40d   : > { %3962 = vst.msk [vmem:[%s6748_s23 + $0x68] sm:$0xff] %vm386_vm0, %v3874_v30  ;;  %v3895_v23 = vadd.f32 %v4863_v22, %v6743_v48 }
 0x40e   : > { %v3886_v55 = vpop.f32.mrf.mxu0 }
 0x40f   : > { %3967 = vst.msk [vmem:[%s6748_s23 + $0x90] sm:$0xff] %vm386_vm0, %v3895_v23  ;;  %v3887_v31 = vadd.f32 %v6743_v48, %v3886_v55 }
 0x410   : > { %v4864_v42 = vpop.f32.mrf.mxu0 }
 0x411   : > { %3965 = vst.msk [vmem:[%s6748_s23 + $0x80] sm:$0xff] %vm386_vm0, %v3887_v31  ;;  %v3898_v49 = vadd.f32 %v4864_v42, %v6743_v48 }
 0x412   : > { %v3889_v33 = vpop.f32.mrf.mxu0 }
 0x413   : > { %3968 = vst.msk [vmem:[%s6748_s23 + $0x98] sm:$0xff] %vm386_vm0, %v3898_v49  ;;  %v3890_v39 = vadd.f32 %v6743_v48, %v3889_v33 }
 0x414   : > { %v4867_v3 = vpop.f32.mrf.mxu0 }
 0x415   : > { %3966 = vst.msk [vmem:[%s6748_s23 + $0x88] sm:$0xff] %vm386_vm0, %v3890_v39  ;;  %v3911_v14 = vadd.f32 %v4867_v3, %v6743_v48 }
 0x416   : > { %v3902_v43 = vpop.f32.mrf.mxu0 }
 0x417   : > { %3971 = vst.msk [vmem:[%s6748_s23 + $0xb0] sm:$0xff] %vm386_vm0, %v3911_v14  ;;  %v3903_v6 = vadd.f32 %v6743_v48, %v3902_v43 }
 0x418   : > { %v4868_v32 = vpop.f32.mrf.mxu0 }
 0x419   : > { %3969 = vst.msk [vmem:[%s6748_s23 + $0xa0] sm:$0xff] %vm386_vm0, %v3903_v6  ;;  %v3914_v16 = vadd.f32 %v4868_v32, %v6743_v48 }
 0x41a   : > { %v3905_v51 = vpop.f32.mrf.mxu0 }
 0x41b   : > { %3972 = vst.msk [vmem:[%s6748_s23 + $0xb8] sm:$0xff] %vm386_vm0, %v3914_v16  ;;  %v3906_v27 = vadd.f32 %v6743_v48, %v3905_v51 }
 0x41c   : > { %v4871_v53 = vpop.f32.mrf.mxu0 }
 0x41d   : > { %3970 = vst.msk [vmem:[%s6748_s23 + $0xa8] sm:$0xff] %vm386_vm0, %v3906_v27  ;;  %v3927_v4 = vadd.f32 %v4871_v53, %v6743_v48 }
 0x41e   : > { %v3918_v62 = vpop.f32.mrf.mxu0 }
 0x41f   : > { %3975 = vst.msk [vmem:[%s6748_s23 + $0xd0] sm:$0xff] %vm386_vm0, %v3927_v4  ;;  %v3919_v1 = vadd.f32 %v6743_v48, %v3918_v62 }
 0x420   : > { %v4872_v26 = vpop.f32.mrf.mxu0 }
 0x421   : > { %3973 = vst.msk [vmem:[%s6748_s23 + $0xc0] sm:$0xff] %vm386_vm0, %v3919_v1  ;;  %v3930_v28 = vadd.f32 %v4872_v26, %v6743_v48 }
 0x422   : > { %v3921_v10 = vpop.f32.mrf.mxu0 }
 0x423   : > { %3976 = vst.msk [vmem:[%s6748_s23 + $0xd8] sm:$0xff] %vm386_vm0, %v3930_v28  ;;  %v3922_v50 = vadd.f32 %v6743_v48, %v3921_v10 }
 0x424   : > { %v4875_v36 = vpop.f32.mrf.mxu0 }
 0x425   : > { %3974 = vst.msk [vmem:[%s6748_s23 + $0xc8] sm:$0xff] %vm386_vm0, %v3922_v50  ;;  %v3943_v54 = vadd.f32 %v4875_v36, %v6743_v48 }
 0x426   : > { %v3934_v45 = vpop.f32.mrf.mxu0 }
 0x427   : > { %3979 = vst.msk [vmem:[%s6748_s23 + $0xf0] sm:$0xff] %vm386_vm0, %v3943_v54  ;;  %v3935_v37 = vadd.f32 %v6743_v48, %v3934_v45 }
 0x428   : > { %v4876_v5 = vpop.f32.mrf.mxu0 }
 0x429   : > { %3977 = vst.msk [vmem:[%s6748_s23 + $0xe0] sm:$0xff] %vm386_vm0, %v3935_v37  ;;  %v3946_v8 = vadd.f32 %v4876_v5, %v6743_v48 }
 0x42a   : > { %v3937_v60 = vpop.f32.mrf.mxu0 }
 0x42b   : > { %3980 = vst.msk [vmem:[%s6748_s23 + $0xf8] sm:$0xff] %vm386_vm0, %v3946_v8  ;;  %v3938_v9 = vadd.f32 %v6743_v48, %v3937_v60 }
 0x42d   : > { %3978 = vst.msk [vmem:[%s6748_s23 + $0xe8] sm:$0xff] %vm386_vm0, %v3938_v9 }
 0x42e PF: > { %p18_p0 = scmp.ge.s32.totalorder %s5213_s11, 4   ;;  %s6898_s24 = smov %s5112_s25 }
 0x42f   : > { %s6899_s25 = smov %s5116_s26  ;;  %s6900_s26 = smov %s5230_s19 }
 0x430   : > { %s6901_s27 = smov %s5213_s11  ;;  %20 = sbr.rel (!%p18_p0) target bundleno = 4 (0x4), region = 102 }
 0x435   :  { %4002 = vsyncpa [#allocation4], 1 }
 0x436   :  { %4004 = vsyncpa [#allocation4 + $0x1], 1 }
 0x437   :  { %4005 = vsyncpa [#allocation6], 1 }

</bundles_post_ra>
